<compile_context>
chip_gen: v5e
topology: v5e:2x2
jax: 0.10.0
libtpu: 0.0.40
codegen_flags: <defaults>
</compile_context>

<pallas_src>
import functools

import jax
import jax.numpy as jnp
from jax.experimental import pallas as pl
from jax.experimental.pallas import tpu as pltpu


HEAD_PAD = 64          # lanes reserved per head inside a fused pair (2 -> 128)
_ROW_TARGET = 2048     # pair positions handled per grid step (review: 1024-2048)
_LANE_TILE_CAP = 256   # cap on the lane-adjacent spatial tile


# ----------------------------------------------------------------------------
# Tiling / VMEM helpers
# ----------------------------------------------------------------------------
def _aligned_divisors(l, cap):
    return [d for d in range(8, min(l, cap) + 1, 8) if l % d == 0]


def _pick_tiles(l):
    """Spatial tile (tli, tlj): both divide L exactly (no padding, no trailing
    slice copies), both multiples of 8 (or == L), tlj as large as possible
    (contiguous DMA + lane-dense stores), tli*tlj ~ _ROW_TARGET positions."""
    djs = _aligned_divisors(l, _LANE_TILE_CAP)
    if not djs:
        # TODO(synk): L not a multiple of 8 -> fall back to full-extent blocks.
        return l, l
    tlj = djs[-1]
    dis = [d for d in djs if d * tlj <= _ROW_TARGET] or [djs[0]]
    return dis[-1], tlj


def _vmem_limit_bytes():
    """Generation-aware scoped-VMEM budget (128 MiB v5e/v6e, 64 MiB v7x)."""
    try:
        cap = pltpu.get_tpu_info().vmem_capacity_bytes
    except Exception:
        cap = 64 * 1024 * 1024
    return min((cap * 3) // 4, 100 * 1024 * 1024)


# ----------------------------------------------------------------------------
# Fused kernel: LayerNorm + proj + symmetrization + 4 MLP heads
# ----------------------------------------------------------------------------
def _pair_predictor_kernel(z_ref, zt_ref, g_ref, be_ref, wp_ref, bp_ref,
                           tw1_ref, tb1_ref, tw2_ref, tb2_ref,
                           dw1_ref, db1_ref, dw2_ref, db2_ref,
                           tp_ref, do_ref):
    _, tli, tlj, c = z_ref.shape
    p = tli * tlj

    def ln_proj(x):
        # LayerNorm statistics in f32, proj on the MXU with bf16 inputs.
        x = x.astype(jnp.float32)
        mean = jnp.mean(x, axis=-1, keepdims=True)
        var = jnp.mean(jnp.square(x - mean), axis=-1, keepdims=True)
        xn = (x - mean) * jax.lax.rsqrt(var + 1e-5)
        xn = xn * g_ref[...] + be_ref[...]
        # dropout p_drop=0.0 -> identity
        return jnp.dot(xn.astype(jnp.bfloat16), wp_ref[...],
                       preferred_element_type=jnp.float32) + bp_ref[...]

    def heads(x, w1_ref, b1_ref, w2_ref, b2_ref):
        # fused head pair: W1 = [w1_a | w1_b], W2 = block-diag, 128-lane pad
        h = jnp.dot(x.astype(jnp.bfloat16), w1_ref[...],
                    preferred_element_type=jnp.float32) + b1_ref[...]
        h = jnp.maximum(h, 0.0)
        return jnp.dot(h.astype(jnp.bfloat16), w2_ref[...],
                       preferred_element_type=jnp.float32) + b2_ref[...]

    # --- straight block: theta / phi act on zp (pre-symmetrization) ---------
    zp1 = ln_proj(z_ref[...].reshape(p, c))                       # (P, C) f32
    tp = heads(zp1, tw1_ref, tb1_ref, tw2_ref, tb2_ref)           # (P, 128)
    tp_ref[...] = tp.reshape(1, tli, tlj, -1).astype(tp_ref.dtype)

    # --- mirrored block: recompute LN+proj, symmetrize fully in VMEM --------
    zp2 = ln_proj(zt_ref[...].reshape(p, c))                      # rows (y, x)
    zp2_t = pltpu.einshape("yxc->xyc", zp2.reshape(tlj, tli, c))  # XLU
    zs = 0.5 * (zp1 + zp2_t.reshape(p, c))                        # f32 in VMEM
    do = heads(zs, dw1_ref, db1_ref, dw2_ref, db2_ref)            # (P, 128)
    do_ref[...] = do.reshape(1, tli, tlj, -1).astype(do_ref.dtype)


def _pair_predictor_pallas(z, fp):
    b, l, l2, c = z.shape
    assert l == l2, "pair features must be square"
    tli, tlj = _pick_tiles(l)
    ffn2 = fp["tp_w1"].shape[1]          # 2 * 4 * c_z
    out_w = fp["tp_w2"].shape[1]         # 2 * HEAD_PAD = 128
    wmap = lambda bb, i, j: (0, 0)       # weights: resident, fetched once

    tp, do = pl.pallas_call(
        _pair_predictor_kernel,
        out_shape=(jax.ShapeDtypeStruct((b, l, l, out_w), jnp.bfloat16),
                   jax.ShapeDtypeStruct((b, l, l, out_w), jnp.bfloat16)),
        grid_spec=pltpu.PrefetchScalarGridSpec(
            num_scalar_prefetch=0,
            grid=(b, l // tli, l // tlj),
            in_specs=[
                # z, straight block (b, i, j)
                pl.BlockSpec((1, tli, tlj, c), lambda bb, i, j: (bb, i, j, 0)),
                # z again, mirrored block (b, j, i)
                pl.BlockSpec((1, tlj, tli, c), lambda bb, i, j: (bb, j, i, 0)),
                pl.BlockSpec((1, c), wmap),            # ln gamma
                pl.BlockSpec((1, c), wmap),            # ln beta
                pl.BlockSpec((c, c), wmap),            # proj W (bf16)
                pl.BlockSpec((1, c), wmap),            # proj b
                pl.BlockSpec((c, ffn2), wmap),         # theta|phi W1 (bf16)
                pl.BlockSpec((1, ffn2), wmap),         # theta|phi b1
                pl.BlockSpec((ffn2, out_w), wmap),     # theta|phi W2 (bf16)
                pl.BlockSpec((1, out_w), wmap),        # theta|phi b2
                pl.BlockSpec((c, ffn2), wmap),         # dist|omega W1 (bf16)
                pl.BlockSpec((1, ffn2), wmap),         # dist|omega b1
                pl.BlockSpec((ffn2, out_w), wmap),     # dist|omega W2 (bf16)
                pl.BlockSpec((1, out_w), wmap),        # dist|omega b2
            ],
            out_specs=(
                pl.BlockSpec((1, tli, tlj, out_w), lambda bb, i, j: (bb, i, j, 0)),
                pl.BlockSpec((1, tli, tlj, out_w), lambda bb, i, j: (bb, i, j, 0)),
            ),
        ),
        compiler_params=pltpu.CompilerParams(
            dimension_semantics=("parallel", "parallel", "parallel"),
            vmem_limit_bytes=_vmem_limit_bytes()),
    )(z, z,
      fp["ln_gamma"], fp["ln_beta"], fp["proj_w"], fp["proj_b"],
      fp["tp_w1"], fp["tp_b1"], fp["tp_w2"], fp["tp_b2"],
      fp["do_w1"], fp["do_b1"], fp["do_w2"], fp["do_b2"])
    return tp, do


# ----------------------------------------------------------------------------
# Parameter construction + one-time fusion / padding / bf16 prep
# ----------------------------------------------------------------------------
def init_params(key, c_z, bins=(37, 25, 25, 25)):
    """Raw per-head f32 parameters (stand-in for the PyTorch state dict)."""
    ks = jax.random.split(key, 20)
    ffn = 4 * c_z

    def lin(kw, kb, d_in, d_out):
        w = jax.random.normal(kw, (d_in, d_out), jnp.float32) / jnp.sqrt(d_in)
        b = 0.1 * jax.random.normal(kb, (1, d_out), jnp.float32)
        return w, b

    params = {
        "ln_gamma": jnp.ones((1, c_z), jnp.float32),
        "ln_beta": jnp.zeros((1, c_z), jnp.float32),
    }
    params["proj_w"], params["proj_b"] = lin(ks[0], ks[1], c_z, c_z)
    for idx, (name, nbin) in enumerate(zip(("dist", "omega", "theta", "phi"),
                                           bins)):
        w1, b1 = lin(ks[2 + 4 * idx], ks[3 + 4 * idx], c_z, ffn)
        w2, b2 = lin(ks[4 + 4 * idx], ks[5 + 4 * idx], ffn, nbin)
        params[f"{name}_w1"], params[f"{name}_b1"] = w1, b1
        params[f"{name}_w2"], params[f"{name}_b2"] = w2, b2
    return params


def fuse_params(p, c_z, bins=(37, 25, 25, 25)):
    """One-time prep: concat W1 per head pair, block-diag + 128-lane-pad W2,
    cast matmul weights to bf16 (biases / LN params stay f32)."""
    assert max(bins) <= HEAD_PAD, "head bins must fit in HEAD_PAD lanes"
    bf = jnp.bfloat16
    ffn = 4 * c_z

    def fuse_pair(na, nb, bins_a, bins_b):
        w1 = jnp.concatenate([p[f"{na}_w1"], p[f"{nb}_w1"]], axis=1)   # (C, 8C)
        b1 = jnp.concatenate([p[f"{na}_b1"], p[f"{nb}_b1"]], axis=1)   # (1, 8C)
        w2 = jnp.zeros((2 * ffn, 2 * HEAD_PAD), jnp.float32)
        w2 = w2.at[:ffn, :bins_a].set(p[f"{na}_w2"])
        w2 = w2.at[ffn:, HEAD_PAD:HEAD_PAD + bins_b].set(p[f"{nb}_w2"])
        b2 = jnp.zeros((1, 2 * HEAD_PAD), jnp.float32)
        b2 = b2.at[:, :bins_a].set(p[f"{na}_b2"][0])
        b2 = b2.at[:, HEAD_PAD:HEAD_PAD + bins_b].set(p[f"{nb}_b2"][0])
        return w1.astype(bf), b1, w2.astype(bf), b2

    fp = {
        "ln_gamma": p["ln_gamma"], "ln_beta": p["ln_beta"],
        "proj_w": p["proj_w"].astype(bf), "proj_b": p["proj_b"],
    }
    fp["tp_w1"], fp["tp_b1"], fp["tp_w2"], fp["tp_b2"] = fuse_pair(
        "theta", "phi", bins[2], bins[3])
    fp["do_w1"], fp["do_b1"], fp["do_w2"], fp["do_b2"] = fuse_pair(
        "dist", "omega", bins[0], bins[1])
    return fp


# ----------------------------------------------------------------------------
# Full forward
# ----------------------------------------------------------------------------
@functools.partial(jax.jit, static_argnames=("bins",))
def pair_predictor_forward(z, fp, *, bins=(37, 25, 25, 25)):
    """z: (B, L, L, C) f32 -> (dist, omega, theta, phi) f32 logits in NCHW."""
    tp, do = _pair_predictor_pallas(z, fp)

    def nchw(slab, lo, n):
        # slice channels (bf16) BEFORE the transpose, upcast after (Option A)
        return slab[..., lo:lo + n].transpose(0, 3, 1, 2).astype(jnp.float32)

    logits_theta = nchw(tp, 0, bins[2])
    logits_phi = nchw(tp, HEAD_PAD, bins[3])
    logits_dist = nchw(do, 0, bins[0])
    logits_omega = nchw(do, HEAD_PAD, bins[1])
    return logits_dist, logits_omega, logits_theta, logits_phi


# ----------------------------------------------------------------------------
# References
# ----------------------------------------------------------------------------
def reference_forward_f32(z, params):
    """True f32 module semantics (HIGHEST-precision matmuls)."""
    hi = jax.lax.Precision.HIGHEST
    mean = jnp.mean(z, axis=-1, keepdims=True)
    var = jnp.mean(jnp.square(z - mean), axis=-1, keepdims=True)
    zn = (z - mean) * jax.lax.rsqrt(var + 1e-5)
    zn = zn * params["ln_gamma"][0] + params["ln_beta"][0]
    zp = jnp.dot(zn, params["proj_w"], precision=hi) + params["proj_b"][0]

    def head(x, name):
        h = jnp.maximum(jnp.dot(x, params[f"{name}_w1"], precision=hi)
                        + params[f"{name}_b1"][0], 0.0)
        o = jnp.dot(h, params[f"{name}_w2"], precision=hi) + params[f"{name}_b2"][0]
        return o.transpose(0, 3, 1, 2)

    lt, lp = head(zp, "theta"), head(zp, "phi")
    zs = 0.5 * (zp + jnp.swapaxes(zp, 1, 2))
    ld, lo = head(zs, "dist"), head(zs, "omega")
    return ld, lo, lt, lp


def reference_forward_bf16(z, params):
    """Mirror of the kernel numerics (bf16 MXU inputs, f32 accum, bf16 logits)."""
    f32, bf = jnp.float32, jnp.bfloat16
    mean = jnp.mean(z, axis=-1, keepdims=True)
    var = jnp.mean(jnp.square(z - mean), axis=-1, keepdims=True)
    zn = (z - mean) * jax.lax.rsqrt(var + 1e-5)
    zn = zn * params["ln_gamma"][0] + params["ln_beta"][0]
    zp = jnp.dot(zn.astype(bf), params["proj_w"].astype(bf),
                 preferred_element_type=f32) + params["proj_b"][0]

    def head(x, name):
        h = jnp.dot(x.astype(bf), params[f"{name}_w1"].astype(bf),
                    preferred_element_type=f32) + params[f"{name}_b1"][0]
        h = jnp.maximum(h, 0.0)
        o = jnp.dot(h.astype(bf), params[f"{name}_w2"].astype(bf),
                    preferred_element_type=f32) + params[f"{name}_b2"][0]
        return o.astype(bf).astype(f32).transpose(0, 3, 1, 2)

    lt, lp = head(zp, "theta"), head(zp, "phi")
    zs = 0.5 * (zp + jnp.swapaxes(zp, 1, 2))
    ld, lo = head(zs, "dist"), head(zs, "omega")
    return ld, lo, lt, lp


if __name__ == "__main__":
    key = jax.random.PRNGKey(0)
    k_z, k_p = jax.random.split(key)

    B, L, C = 2, 8, 128          # c_z = 128: lane-dense (review item: c_z % 128 == 0)
    bins = (37, 25, 25, 25)

    z = jax.random.normal(k_z, (B, L, L, C), jnp.float32)
    raw_params = init_params(k_p, C, bins)
    fused_params = fuse_params(raw_params, C, bins)

    outs = jax.block_until_ready(pair_predictor_forward(z, fused_params, bins=bins))

    refs_bf = reference_forward_bf16(z, raw_params)
    refs_f32 = reference_forward_f32(z, raw_params)
    for o, rb, rf, nbin in zip(outs, refs_bf, refs_f32, bins):
        assert o.shape == (B, nbin, L, L), o.shape
        assert o.dtype == jnp.float32
        # kernel vs bf16-mirrored reference: proves the kernel implements the math
        err_b = float(jnp.max(jnp.abs(o - rb)))
        assert err_b < 2e-2, ("kernel vs bf16 reference", err_b)
        # kernel vs true-f32 module reference: quantifies bf16 MXU / storage error
        scale = max(1.0, float(jnp.max(jnp.abs(rf))))
        err_f = float(jnp.max(jnp.abs(o - rf)))
        assert err_f < 5e-2 * scale, ("kernel vs f32 reference", err_f, scale)

    print("KERNEL_OK")
</pallas_src>

<mosaic_0001>
module attributes {stable_mosaic.version = 11 : i64} {
  func.func @_pair_predictor_kernel(%arg0: i32, %arg1: i32, %arg2: i32, %arg3: memref<1x8x8x128xf32, #tpu.memory_space<vmem>>, %arg4: memref<1x8x8x128xf32, #tpu.memory_space<vmem>>, %arg5: memref<1x128xf32, #tpu.memory_space<vmem>>, %arg6: memref<1x128xf32, #tpu.memory_space<vmem>>, %arg7: memref<128x128xbf16, #tpu.memory_space<vmem>>, %arg8: memref<1x128xf32, #tpu.memory_space<vmem>>, %arg9: memref<128x1024xbf16, #tpu.memory_space<vmem>>, %arg10: memref<1x1024xf32, #tpu.memory_space<vmem>>, %arg11: memref<1024x128xbf16, #tpu.memory_space<vmem>>, %arg12: memref<1x128xf32, #tpu.memory_space<vmem>>, %arg13: memref<128x1024xbf16, #tpu.memory_space<vmem>>, %arg14: memref<1x1024xf32, #tpu.memory_space<vmem>>, %arg15: memref<1024x128xbf16, #tpu.memory_space<vmem>>, %arg16: memref<1x128xf32, #tpu.memory_space<vmem>>, %arg17: memref<1x8x8x128xbf16, #tpu.memory_space<vmem>>, %arg18: memref<1x8x8x128xbf16, #tpu.memory_space<vmem>>) attributes {dimension_semantics = [#tpu.dimension_semantics<parallel>, #tpu.dimension_semantics<parallel>, #tpu.dimension_semantics<parallel>], iteration_bounds = array<i64: 2, 1, 1>, scalar_prefetch = 0 : i64, scratch_operands = 0 : i64, tpu.core_type = #tpu.core_type<tc>, window_params = [{transform_indices = @transform_0, window_bounds = array<i64: 1, 8, 8, 128>}, {transform_indices = @transform_1, window_bounds = array<i64: 1, 8, 8, 128>}, {pipeline_mode = #tpu.pipeline_mode<synchronous>, transform_indices = @transform_2, window_bounds = array<i64: 1, 128>}, {pipeline_mode = #tpu.pipeline_mode<synchronous>, transform_indices = @transform_3, window_bounds = array<i64: 1, 128>}, {pipeline_mode = #tpu.pipeline_mode<synchronous>, transform_indices = @transform_4, window_bounds = array<i64: 128, 128>}, {pipeline_mode = #tpu.pipeline_mode<synchronous>, transform_indices = @transform_5, window_bounds = array<i64: 1, 128>}, {pipeline_mode = #tpu.pipeline_mode<synchronous>, transform_indices = @transform_6, window_bounds = array<i64: 128, 1024>}, {pipeline_mode = #tpu.pipeline_mode<synchronous>, transform_indices = @transform_7, window_bounds = array<i64: 1, 1024>}, {pipeline_mode = #tpu.pipeline_mode<synchronous>, transform_indices = @transform_8, window_bounds = array<i64: 1024, 128>}, {pipeline_mode = #tpu.pipeline_mode<synchronous>, transform_indices = @transform_9, window_bounds = array<i64: 1, 128>}, {pipeline_mode = #tpu.pipeline_mode<synchronous>, transform_indices = @transform_10, window_bounds = array<i64: 128, 1024>}, {pipeline_mode = #tpu.pipeline_mode<synchronous>, transform_indices = @transform_11, window_bounds = array<i64: 1, 1024>}, {pipeline_mode = #tpu.pipeline_mode<synchronous>, transform_indices = @transform_12, window_bounds = array<i64: 1024, 128>}, {pipeline_mode = #tpu.pipeline_mode<synchronous>, transform_indices = @transform_13, window_bounds = array<i64: 1, 128>}, {transform_indices = @transform_14, window_bounds = array<i64: 1, 8, 8, 128>}, {transform_indices = @transform_15, window_bounds = array<i64: 1, 8, 8, 128>}]} {
    %c0 = arith.constant 0 : index
    %c0_0 = arith.constant 0 : index
    %c0_1 = arith.constant 0 : index
    %c0_2 = arith.constant 0 : index
    %0 = vector.load %arg3[%c0, %c0_0, %c0_1, %c0_2] : memref<1x8x8x128xf32, #tpu.memory_space<vmem>>, vector<1x8x8x128xf32>
    %1 = vector.shape_cast %0 : vector<1x8x8x128xf32> to vector<64x128xf32>
    %cst = arith.constant dense<0.000000e+00> : vector<64xf32>
    %2 = vector.multi_reduction <add>, %1, %cst [1] : vector<64x128xf32> to vector<64xf32>
    %3 = vector.shape_cast %2 : vector<64xf32> to vector<64x1xf32>
    %cst_3 = arith.constant 1.280000e+02 : f32
    %4 = vector.broadcast %cst_3 : f32 to vector<64x1xf32>
    %5 = arith.divf %3, %4 : vector<64x1xf32>
    %6 = vector.broadcast %5 : vector<64x1xf32> to vector<64x128xf32>
    %7 = arith.subf %1, %6 : vector<64x128xf32>
    %8 = arith.mulf %7, %7 : vector<64x128xf32>
    %cst_4 = arith.constant dense<0.000000e+00> : vector<64xf32>
    %9 = vector.multi_reduction <add>, %8, %cst_4 [1] : vector<64x128xf32> to vector<64xf32>
    %10 = vector.shape_cast %9 : vector<64xf32> to vector<64x1xf32>
    %cst_5 = arith.constant 1.280000e+02 : f32
    %11 = vector.broadcast %cst_5 : f32 to vector<64x1xf32>
    %12 = arith.divf %10, %11 : vector<64x1xf32>
    %13 = vector.broadcast %5 : vector<64x1xf32> to vector<64x128xf32>
    %14 = arith.subf %1, %13 : vector<64x128xf32>
    %cst_6 = arith.constant 9.99999974E-6 : f32
    %15 = vector.broadcast %cst_6 : f32 to vector<64x1xf32>
    %16 = arith.addf %12, %15 : vector<64x1xf32>
    %17 = math.rsqrt %16 : vector<64x1xf32>
    %18 = vector.broadcast %17 : vector<64x1xf32> to vector<64x128xf32>
    %19 = arith.mulf %14, %18 : vector<64x128xf32>
    %c0_7 = arith.constant 0 : index
    %c0_8 = arith.constant 0 : index
    %20 = vector.load %arg5[%c0_7, %c0_8] : memref<1x128xf32, #tpu.memory_space<vmem>>, vector<1x128xf32>
    %21 = vector.broadcast %20 : vector<1x128xf32> to vector<64x128xf32>
    %22 = arith.mulf %19, %21 : vector<64x128xf32>
    %c0_9 = arith.constant 0 : index
    %c0_10 = arith.constant 0 : index
    %23 = vector.load %arg6[%c0_9, %c0_10] : memref<1x128xf32, #tpu.memory_space<vmem>>, vector<1x128xf32>
    %24 = vector.broadcast %23 : vector<1x128xf32> to vector<64x128xf32>
    %25 = arith.addf %22, %24 : vector<64x128xf32>
    %26 = arith.truncf %25 : vector<64x128xf32> to vector<64x128xbf16>
    %c0_11 = arith.constant 0 : index
    %c0_12 = arith.constant 0 : index
    %27 = vector.load %arg7[%c0_11, %c0_12] : memref<128x128xbf16, #tpu.memory_space<vmem>>, vector<128x128xbf16>
    %cst_13 = arith.constant dense<0.000000e+00> : vector<64x128xf32>
    %28 = tpu.matmul %26, %27, %cst_13 {dimension_numbers = #tpu.dot_dimension_numbers<[1], [0], [0], [1], [0, 0, 1, 1], [], []>} : vector<64x128xbf16>, vector<128x128xbf16>, vector<64x128xf32> -> vector<64x128xf32>
    %c0_14 = arith.constant 0 : index
    %c0_15 = arith.constant 0 : index
    %29 = vector.load %arg8[%c0_14, %c0_15] : memref<1x128xf32, #tpu.memory_space<vmem>>, vector<1x128xf32>
    %30 = vector.broadcast %29 : vector<1x128xf32> to vector<64x128xf32>
    %31 = arith.addf %28, %30 : vector<64x128xf32>
    %32 = arith.truncf %31 : vector<64x128xf32> to vector<64x128xbf16>
    %c0_16 = arith.constant 0 : index
    %c0_17 = arith.constant 0 : index
    %33 = vector.load %arg9[%c0_16, %c0_17] : memref<128x1024xbf16, #tpu.memory_space<vmem>>, vector<128x1024xbf16>
    %cst_18 = arith.constant dense<0.000000e+00> : vector<64x1024xf32>
    %34 = tpu.matmul %32, %33, %cst_18 {dimension_numbers = #tpu.dot_dimension_numbers<[1], [0], [0], [1], [0, 0, 1, 1], [], []>} : vector<64x128xbf16>, vector<128x1024xbf16>, vector<64x1024xf32> -> vector<64x1024xf32>
    %c0_19 = arith.constant 0 : index
    %c0_20 = arith.constant 0 : index
    %35 = vector.load %arg10[%c0_19, %c0_20] : memref<1x1024xf32, #tpu.memory_space<vmem>>, vector<1x1024xf32>
    %36 = vector.broadcast %35 : vector<1x1024xf32> to vector<64x1024xf32>
    %37 = arith.addf %34, %36 : vector<64x1024xf32>
    %cst_21 = arith.constant 0.000000e+00 : f32
    %38 = vector.broadcast %cst_21 : f32 to vector<64x1024xf32>
    %39 = arith.maximumf %37, %38 : vector<64x1024xf32>
    %40 = arith.truncf %39 : vector<64x1024xf32> to vector<64x1024xbf16>
    %c0_22 = arith.constant 0 : index
    %c0_23 = arith.constant 0 : index
    %41 = vector.load %arg11[%c0_22, %c0_23] : memref<1024x128xbf16, #tpu.memory_space<vmem>>, vector<1024x128xbf16>
    %cst_24 = arith.constant dense<0.000000e+00> : vector<64x128xf32>
    %42 = tpu.matmul %40, %41, %cst_24 {dimension_numbers = #tpu.dot_dimension_numbers<[1], [0], [0], [1], [0, 0, 1, 1], [], []>} : vector<64x1024xbf16>, vector<1024x128xbf16>, vector<64x128xf32> -> vector<64x128xf32>
    %c0_25 = arith.constant 0 : index
    %c0_26 = arith.constant 0 : index
    %43 = vector.load %arg12[%c0_25, %c0_26] : memref<1x128xf32, #tpu.memory_space<vmem>>, vector<1x128xf32>
    %44 = vector.broadcast %43 : vector<1x128xf32> to vector<64x128xf32>
    %45 = arith.addf %42, %44 : vector<64x128xf32>
    %46 = vector.shape_cast %45 : vector<64x128xf32> to vector<1x8x8x128xf32>
    %47 = arith.truncf %46 : vector<1x8x8x128xf32> to vector<1x8x8x128xbf16>
    %c0_27 = arith.constant 0 : index
    %c0_28 = arith.constant 0 : index
    %c0_29 = arith.constant 0 : index
    %c0_30 = arith.constant 0 : index
    %48 = vector.load %arg17[%c0_27, %c0_28, %c0_29, %c0_30] : memref<1x8x8x128xbf16, #tpu.memory_space<vmem>>, vector<1x8x8x128xbf16>
    tpu.vector_store %arg17[%c0_27, %c0_28, %c0_29, %c0_30], %47 {strides = array<i32>} : memref<1x8x8x128xbf16, #tpu.memory_space<vmem>>, vector<1x8x8x128xbf16>,
    %c0_31 = arith.constant 0 : index
    %c0_32 = arith.constant 0 : index
    %c0_33 = arith.constant 0 : index
    %c0_34 = arith.constant 0 : index
    %49 = vector.load %arg4[%c0_31, %c0_32, %c0_33, %c0_34] : memref<1x8x8x128xf32, #tpu.memory_space<vmem>>, vector<1x8x8x128xf32>
    %50 = vector.shape_cast %49 : vector<1x8x8x128xf32> to vector<64x128xf32>
    %cst_35 = arith.constant dense<0.000000e+00> : vector<64xf32>
    %51 = vector.multi_reduction <add>, %50, %cst_35 [1] : vector<64x128xf32> to vector<64xf32>
    %52 = vector.shape_cast %51 : vector<64xf32> to vector<64x1xf32>
    %cst_36 = arith.constant 1.280000e+02 : f32
    %53 = vector.broadcast %cst_36 : f32 to vector<64x1xf32>
    %54 = arith.divf %52, %53 : vector<64x1xf32>
    %55 = vector.broadcast %54 : vector<64x1xf32> to vector<64x128xf32>
    %56 = arith.subf %50, %55 : vector<64x128xf32>
    %57 = arith.mulf %56, %56 : vector<64x128xf32>
    %cst_37 = arith.constant dense<0.000000e+00> : vector<64xf32>
    %58 = vector.multi_reduction <add>, %57, %cst_37 [1] : vector<64x128xf32> to vector<64xf32>
    %59 = vector.shape_cast %58 : vector<64xf32> to vector<64x1xf32>
    %cst_38 = arith.constant 1.280000e+02 : f32
    %60 = vector.broadcast %cst_38 : f32 to vector<64x1xf32>
    %61 = arith.divf %59, %60 : vector<64x1xf32>
    %62 = vector.broadcast %54 : vector<64x1xf32> to vector<64x128xf32>
    %63 = arith.subf %50, %62 : vector<64x128xf32>
    %cst_39 = arith.constant 9.99999974E-6 : f32
    %64 = vector.broadcast %cst_39 : f32 to vector<64x1xf32>
    %65 = arith.addf %61, %64 : vector<64x1xf32>
    %66 = math.rsqrt %65 : vector<64x1xf32>
    %67 = vector.broadcast %66 : vector<64x1xf32> to vector<64x128xf32>
    %68 = arith.mulf %63, %67 : vector<64x128xf32>
    %c0_40 = arith.constant 0 : index
    %c0_41 = arith.constant 0 : index
    %69 = vector.load %arg5[%c0_40, %c0_41] : memref<1x128xf32, #tpu.memory_space<vmem>>, vector<1x128xf32>
    %70 = vector.broadcast %69 : vector<1x128xf32> to vector<64x128xf32>
    %71 = arith.mulf %68, %70 : vector<64x128xf32>
    %c0_42 = arith.constant 0 : index
    %c0_43 = arith.constant 0 : index
    %72 = vector.load %arg6[%c0_42, %c0_43] : memref<1x128xf32, #tpu.memory_space<vmem>>, vector<1x128xf32>
    %73 = vector.broadcast %72 : vector<1x128xf32> to vector<64x128xf32>
    %74 = arith.addf %71, %73 : vector<64x128xf32>
    %75 = arith.truncf %74 : vector<64x128xf32> to vector<64x128xbf16>
    %c0_44 = arith.constant 0 : index
    %c0_45 = arith.constant 0 : index
    %76 = vector.load %arg7[%c0_44, %c0_45] : memref<128x128xbf16, #tpu.memory_space<vmem>>, vector<128x128xbf16>
    %cst_46 = arith.constant dense<0.000000e+00> : vector<64x128xf32>
    %77 = tpu.matmul %75, %76, %cst_46 {dimension_numbers = #tpu.dot_dimension_numbers<[1], [0], [0], [1], [0, 0, 1, 1], [], []>} : vector<64x128xbf16>, vector<128x128xbf16>, vector<64x128xf32> -> vector<64x128xf32>
    %c0_47 = arith.constant 0 : index
    %c0_48 = arith.constant 0 : index
    %78 = vector.load %arg8[%c0_47, %c0_48] : memref<1x128xf32, #tpu.memory_space<vmem>>, vector<1x128xf32>
    %79 = vector.broadcast %78 : vector<1x128xf32> to vector<64x128xf32>
    %80 = arith.addf %77, %79 : vector<64x128xf32>
    %81 = vector.shape_cast %80 : vector<64x128xf32> to vector<8x8x128xf32>
    %82 = tpu.transpose %81, [1, 0, 2] : vector<8x8x128xf32> -> vector<8x8x128xf32>
    %83 = vector.shape_cast %82 : vector<8x8x128xf32> to vector<64x128xf32>
    %84 = arith.addf %31, %83 : vector<64x128xf32>
    %cst_49 = arith.constant 5.000000e-01 : f32
    %85 = vector.broadcast %cst_49 : f32 to vector<64x128xf32>
    %86 = arith.mulf %85, %84 : vector<64x128xf32>
    %87 = arith.truncf %86 : vector<64x128xf32> to vector<64x128xbf16>
    %c0_50 = arith.constant 0 : index
    %c0_51 = arith.constant 0 : index
    %88 = vector.load %arg13[%c0_50, %c0_51] : memref<128x1024xbf16, #tpu.memory_space<vmem>>, vector<128x1024xbf16>
    %cst_52 = arith.constant dense<0.000000e+00> : vector<64x1024xf32>
    %89 = tpu.matmul %87, %88, %cst_52 {dimension_numbers = #tpu.dot_dimension_numbers<[1], [0], [0], [1], [0, 0, 1, 1], [], []>} : vector<64x128xbf16>, vector<128x1024xbf16>, vector<64x1024xf32> -> vector<64x1024xf32>
    %c0_53 = arith.constant 0 : index
    %c0_54 = arith.constant 0 : index
    %90 = vector.load %arg14[%c0_53, %c0_54] : memref<1x1024xf32, #tpu.memory_space<vmem>>, vector<1x1024xf32>
    %91 = vector.broadcast %90 : vector<1x1024xf32> to vector<64x1024xf32>
    %92 = arith.addf %89, %91 : vector<64x1024xf32>
    %cst_55 = arith.constant 0.000000e+00 : f32
    %93 = vector.broadcast %cst_55 : f32 to vector<64x1024xf32>
    %94 = arith.maximumf %92, %93 : vector<64x1024xf32>
    %95 = arith.truncf %94 : vector<64x1024xf32> to vector<64x1024xbf16>
    %c0_56 = arith.constant 0 : index
    %c0_57 = arith.constant 0 : index
    %96 = vector.load %arg15[%c0_56, %c0_57] : memref<1024x128xbf16, #tpu.memory_space<vmem>>, vector<1024x128xbf16>
    %cst_58 = arith.constant dense<0.000000e+00> : vector<64x128xf32>
    %97 = tpu.matmul %95, %96, %cst_58 {dimension_numbers = #tpu.dot_dimension_numbers<[1], [0], [0], [1], [0, 0, 1, 1], [], []>} : vector<64x1024xbf16>, vector<1024x128xbf16>, vector<64x128xf32> -> vector<64x128xf32>
    %c0_59 = arith.constant 0 : index
    %c0_60 = arith.constant 0 : index
    %98 = vector.load %arg16[%c0_59, %c0_60] : memref<1x128xf32, #tpu.memory_space<vmem>>, vector<1x128xf32>
    %99 = vector.broadcast %98 : vector<1x128xf32> to vector<64x128xf32>
    %100 = arith.addf %97, %99 : vector<64x128xf32>
    %101 = vector.shape_cast %100 : vector<64x128xf32> to vector<1x8x8x128xf32>
    %102 = arith.truncf %101 : vector<1x8x8x128xf32> to vector<1x8x8x128xbf16>
    %c0_61 = arith.constant 0 : index
    %c0_62 = arith.constant 0 : index
    %c0_63 = arith.constant 0 : index
    %c0_64 = arith.constant 0 : index
    %103 = vector.load %arg18[%c0_61, %c0_62, %c0_63, %c0_64] : memref<1x8x8x128xbf16, #tpu.memory_space<vmem>>, vector<1x8x8x128xbf16>
    tpu.vector_store %arg18[%c0_61, %c0_62, %c0_63, %c0_64], %102 {strides = array<i32>} : memref<1x8x8x128xbf16, #tpu.memory_space<vmem>>, vector<1x8x8x128xbf16>,
    return
  }
  func.func @transform_0(%arg0: i32, %arg1: i32, %arg2: i32) -> (i32, i32, i32, i32) {
    %c0_i32 = arith.constant 0 : i32
    %c0_i32_0 = arith.constant 0 : i32
    return %arg0, %arg1, %arg2, %c0_i32 : i32, i32, i32, i32
  }
  func.func @transform_1(%arg0: i32, %arg1: i32, %arg2: i32) -> (i32, i32, i32, i32) {
    %c0_i32 = arith.constant 0 : i32
    %c0_i32_0 = arith.constant 0 : i32
    return %arg0, %arg2, %arg1, %c0_i32 : i32, i32, i32, i32
  }
  func.func @transform_2(%arg0: i32, %arg1: i32, %arg2: i32) -> (i32, i32) {
    %c0_i32 = arith.constant 0 : i32
    %c0_i32_0 = arith.constant 0 : i32
    %c0_i32_1 = arith.constant 0 : i32
    return %c0_i32, %c0_i32_0 : i32, i32
  }
  func.func @transform_3(%arg0: i32, %arg1: i32, %arg2: i32) -> (i32, i32) {
    %c0_i32 = arith.constant 0 : i32
    %c0_i32_0 = arith.constant 0 : i32
    %c0_i32_1 = arith.constant 0 : i32
    return %c0_i32, %c0_i32_0 : i32, i32
  }
  func.func @transform_4(%arg0: i32, %arg1: i32, %arg2: i32) -> (i32, i32) {
    %c0_i32 = arith.constant 0 : i32
    %c0_i32_0 = arith.constant 0 : i32
    %c0_i32_1 = arith.constant 0 : i32
    return %c0_i32, %c0_i32_0 : i32, i32
  }
  func.func @transform_5(%arg0: i32, %arg1: i32, %arg2: i32) -> (i32, i32) {
    %c0_i32 = arith.constant 0 : i32
    %c0_i32_0 = arith.constant 0 : i32
    %c0_i32_1 = arith.constant 0 : i32
    return %c0_i32, %c0_i32_0 : i32, i32
  }
  func.func @transform_6(%arg0: i32, %arg1: i32, %arg2: i32) -> (i32, i32) {
    %c0_i32 = arith.constant 0 : i32
    %c0_i32_0 = arith.constant 0 : i32
    %c0_i32_1 = arith.constant 0 : i32
    return %c0_i32, %c0_i32_0 : i32, i32
  }
  func.func @transform_7(%arg0: i32, %arg1: i32, %arg2: i32) -> (i32, i32) {
    %c0_i32 = arith.constant 0 : i32
    %c0_i32_0 = arith.constant 0 : i32
    %c0_i32_1 = arith.constant 0 : i32
    return %c0_i32, %c0_i32_0 : i32, i32
  }
  func.func @transform_8(%arg0: i32, %arg1: i32, %arg2: i32) -> (i32, i32) {
    %c0_i32 = arith.constant 0 : i32
    %c0_i32_0 = arith.constant 0 : i32
    %c0_i32_1 = arith.constant 0 : i32
    return %c0_i32, %c0_i32_0 : i32, i32
  }
  func.func @transform_9(%arg0: i32, %arg1: i32, %arg2: i32) -> (i32, i32) {
    %c0_i32 = arith.constant 0 : i32
    %c0_i32_0 = arith.constant 0 : i32
    %c0_i32_1 = arith.constant 0 : i32
    return %c0_i32, %c0_i32_0 : i32, i32
  }
  func.func @transform_10(%arg0: i32, %arg1: i32, %arg2: i32) -> (i32, i32) {
    %c0_i32 = arith.constant 0 : i32
    %c0_i32_0 = arith.constant 0 : i32
    %c0_i32_1 = arith.constant 0 : i32
    return %c0_i32, %c0_i32_0 : i32, i32
  }
  func.func @transform_11(%arg0: i32, %arg1: i32, %arg2: i32) -> (i32, i32) {
    %c0_i32 = arith.constant 0 : i32
    %c0_i32_0 = arith.constant 0 : i32
    %c0_i32_1 = arith.constant 0 : i32
    return %c0_i32, %c0_i32_0 : i32, i32
  }
  func.func @transform_12(%arg0: i32, %arg1: i32, %arg2: i32) -> (i32, i32) {
    %c0_i32 = arith.constant 0 : i32
    %c0_i32_0 = arith.constant 0 : i32
    %c0_i32_1 = arith.constant 0 : i32
    return %c0_i32, %c0_i32_0 : i32, i32
  }
  func.func @transform_13(%arg0: i32, %arg1: i32, %arg2: i32) -> (i32, i32) {
    %c0_i32 = arith.constant 0 : i32
    %c0_i32_0 = arith.constant 0 : i32
    %c0_i32_1 = arith.constant 0 : i32
    return %c0_i32, %c0_i32_0 : i32, i32
  }
  func.func @transform_14(%arg0: i32, %arg1: i32, %arg2: i32) -> (i32, i32, i32, i32) {
    %c0_i32 = arith.constant 0 : i32
    %c0_i32_0 = arith.constant 0 : i32
    return %arg0, %arg1, %arg2, %c0_i32 : i32, i32, i32, i32
  }
  func.func @transform_15(%arg0: i32, %arg1: i32, %arg2: i32) -> (i32, i32, i32, i32) {
    %c0_i32 = arith.constant 0 : i32
    %c0_i32_0 = arith.constant 0 : i32
    return %arg0, %arg1, %arg2, %c0_i32 : i32, i32, i32, i32
  }
}

</mosaic_0001>

<bundles_post_ra>
// kernel: pair_predictor_forward.1
= control target key start
LH: loop header
LB: loop body
LE: loop exit
PB: predicated region body
PF: predicated region fallthrough
CT: control target
= control target key end

     0   :  { %s8217_s0 = inlined_call_operand.hbm [shape: f32[2,8,8,128], index: 0, kind: input, shape index: {}, may-alias: {0,1}]   ;;  %s8218_s1 = inlined_call_operand.hbm [shape: f32[2,8,8,128], index: 1, kind: input, shape index: {}, may-alias: {0,1}]   ;;  %s8219_s2 = inlined_call_operand.vmem [shape: f32[1,128], index: 2, kind: input, shape index: {}]   ;;  %s8220_s3 = inlined_call_operand.vmem [shape: f32[1,128], index: 3, kind: input, shape index: {}]   ;;  %s8221_s4 = inlined_call_operand.hbm [shape: bf16[128,128], index: 4, kind: input, shape index: {}]   ;;  %s8222_s5 = inlined_call_operand.hbm [shape: f32[1,128], index: 5, kind: input, shape index: {}]   ;;  %s8223_s6 = inlined_call_operand.hbm [shape: bf16[128,1024], index: 6, kind: input, shape index: {}]   ;;  %s8224_s7 = inlined_call_operand.hbm [shape: f32[1,1024], index: 7, kind: input, shape index: {}]   ;;  %s8225_s8 = inlined_call_operand.hbm [shape: bf16[1024,128], index: 8, kind: input, shape index: {}]   ;;  %s8226_s9 = inlined_call_operand.hbm [shape: f32[1,128], index: 9, kind: input, shape index: {}]   ;;  %s8227_s10 = inlined_call_operand.hbm [shape: bf16[128,1024], index: 10, kind: input, shape index: {}]   ;;  %s8228_s11 = inlined_call_operand.vmem [shape: f32[1,1024], index: 11, kind: input, shape index: {}]   ;;  %s8229_s12 = inlined_call_operand.hbm [shape: bf16[1024,128], index: 12, kind: input, shape index: {}]   ;;  %s8230_s13 = inlined_call_operand.hbm [shape: f32[1,128], index: 13, kind: input, shape index: {}]   ;;  %s8231_s14 = inlined_call_operand.vmem [shape: bf16[2,8,8,128], index: 14, kind: output, shape index: {0}]   ;;  %s8232_s15 = inlined_call_operand.vmem [shape: bf16[2,8,8,128], index: 15, kind: output, shape index: {1}]  }
   0x1   :  { %8238 = sst [smem:[#allocation28_spill]] %s8217_s0 }
   0x2   :  { %8239 = sst [smem:[#allocation29_spill]] %s8219_s2 }
   0x3   :  { %8240 = sst [smem:[#allocation30_spill]] %s8220_s3 }
   0x4   :  { %8241 = sst [smem:[#allocation31_spill]] %s8221_s4 }
   0x5   :  { %8242 = sst [smem:[#allocation32_spill]] %s8222_s5 }
   0x6   :  { %8243 = sst [smem:[#allocation33_spill]] %s8223_s6 }
   0x7   :  { %8244 = sst [smem:[#allocation34_spill]] %s8224_s7 }
   0x8   :  { %8245 = sst [smem:[#allocation35_spill]] %s8225_s8 }
   0x9   :  { %8246 = sst [smem:[#allocation36_spill]] %s8228_s11 }
   0xa   :  { %8247 = sst [smem:[#allocation37_spill]] %s8231_s14 }
   0xb   :  { %8248 = sst [smem:[#allocation38_spill]] %s8232_s15 }
   0xc   :  { %21 = vsyncpa [#allocation3], 0 }
   0xd   :  { %23 = vsyncpa [#allocation3 + $0x1], 0 }
   0xe   :  { %24 = vsyncpa [#allocation5], 0 }
   0xf   :  { %26 = vsyncpa [#allocation5 + $0x1], 0 }
  0x10   :  { %27 = vsyncpa [#allocation8], 0 }
  0x11   :  { %28 = vsyncpa [#allocation11], 0 }
  0x12   :  { %29 = vsyncpa [#allocation14], 0 }
  0x13   :  { %30 = vsyncpa [#allocation17], 0  ;;  %s6953_s18 = smov 0   ;;  %s6955_s19 = smov 0  }
  0x14   :  { %s6957_s20 = smov 0   ;;  %s6959_s21 = smov 0  }
  0x15   :  { %s6961_s22 = smov 0   ;;  %s6963_s23 = smov 0  }
  0x16 LB: > { %8249 = sst [smem:[#allocation26_spill]] %s6845_s21  ;;  %s8233_s24 = sadd.s32 4294967295, %s6853_s23   ;;  %s6853_s23 = sphi %s6963_s23, %s36_s23   ;;  %s6849_s22 = sphi %s6961_s22, %s8298_s22   ;;  %s6845_s21 = sphi %s6959_s21, %s8297_s21   ;;  %s6841_s20 = sphi %s6957_s20, %s8296_s20   ;;  %s6837_s19 = sphi %s6955_s19, %s8295_s19   ;;  %s6833_s18 = sphi %s6953_s18, %s8294_s18  }
  0x17   : > { %p4786_p0 = scmp.ge.s32.totalorder %s6853_s23, 1  ;;  %p6987_p1 = scmp.eq.s32.totalorder %s8233_s24, 0 }
  0x18   : > { %p432_p2 = scmp.lt.s32.totalorder %s6853_s23, 3  ;;  %s8251_s4 = sld [smem:[#allocation31_spill]] }
  0x19   : > { %s6855_s30 = smov [#allocation6]   ;;  %s8255_s5 = sld [smem:[#allocation32_spill]] }
  0x1a   : > { %p6995_p3 = pnand %p4786_p0, %p432_p2  ;;  %s451_s16 = sshll.u32 %s6855_s30, 4  ;;  %s452_s16 = int_to_ptr.vmem [resolvable:$true] %s451_s16 }
  0x1b   : > { %s6856_s27 = smov 64   ;;  %s6858_s30 = smov [#allocation7]  }
  0x1c   : > { %s8252_s29 = scalar_select %p6995_p3, 1, 0 }
  0x1d   : > { %p6287_p4 = pneg %p6995_p3  ;;  %s466_s11 = sshll.u32 %s6858_s30, 4  ;;  %s467_s11 = int_to_ptr.vmem [resolvable:$true] %s466_s11 }
  0x1e   : > { %s449_s28 = sshll.u32 %s8251_s4, 4  ;;  %8253 = sst [smem:[#allocation27_spill]] %s8252_s29  ;;  %s450_s28 = int_to_ptr.hbm [resolvable:$true] %s449_s28 }
  0x1f   : > { %p7003_p5 = pnand %p6287_p4, %p6987_p1  ;;  %s464_s26 = sshll.u32 %s8255_s5, 4  ;;  %s465_s26 = int_to_ptr.hbm [resolvable:$true] %s464_s26 }
  0x20   : > { %s6857_s4 = smov 4   ;;  %s8256_s7 = sld [smem:[#allocation34_spill]] }
  0x21   : > { %6290 = dma.hbm_to_vmem [thread:$0]  (!%p7003_p5), %s450_s28, 1024, %s452_s16, [#allocation5], %s6856_s27, %s6856_s27, %s6857_s4  }
  0x22   : > { %6293 = dma.hbm_to_vmem [thread:$0]  (!%p7003_p5), %s465_s26, 16, %s467_s11, [#allocation8]  }
  0x23   : > { %s516_s5 = sshll.u32 %s8226_s9, 4  ;;  %s6859_s2 = smov [#allocation10]   ;;  %s517_s5 = int_to_ptr.hbm [resolvable:$true] %s516_s5 }
  0x24   : > { %s492_s29 = sshll.u32 %s6859_s2, 4  ;;  %s6860_s28 = smov [#allocation13]   ;;  %s493_s29 = int_to_ptr.vmem [resolvable:$true] %s492_s29 }
  0x25   : > { %s518_s16 = sshll.u32 %s6860_s28, 4  ;;  %s544_s30 = sshll.u32 %s8229_s12, 4  ;;  %s519_s16 = int_to_ptr.vmem [resolvable:$true] %s518_s16  ;;  %s545_s30 = int_to_ptr.hbm [resolvable:$true] %s544_s30 }
  0x26   : > { %s490_s3 = sshll.u32 %s8256_s7, 4  ;;  %s8257_s6 = sld [smem:[#allocation33_spill]]  ;;  %s491_s3 = int_to_ptr.hbm [resolvable:$true] %s490_s3 }
  0x27   : > { %6299 = dma.hbm_to_vmem [thread:$0]  (!%p7003_p5), %s491_s3, 128, %s493_s29, [#allocation11]  }
  0x28   : > { %6305 = dma.hbm_to_vmem [thread:$0]  (!%p7003_p5), %s517_s5, 16, %s519_s16, [#allocation14]  }
  0x29   : > { %s6861_s2 = smov [#allocation16]   ;;  %s6862_s3 = smov [#allocation9]  }
  0x2a   : > { %s546_s24 = sshll.u32 %s6861_s2, 4  ;;  %s477_s29 = sshll.u32 %s6862_s3, 4  ;;  %s547_s24 = int_to_ptr.vmem [resolvable:$true] %s546_s24  ;;  %s478_s29 = int_to_ptr.vmem [resolvable:$true] %s477_s29 }
  0x2b   : > { %6311 = dma.hbm_to_vmem [thread:$0]  (!%p7003_p5), %s545_s30, 8192, %s547_s24, [#allocation17], %s6856_s27, %s6856_s27, %s6857_s4  }
  0x2c   : > { %s475_s15 = sshll.u32 %s8257_s6, 4  ;;  %s6863_s28 = smov 512   ;;  %s476_s15 = int_to_ptr.hbm [resolvable:$true] %s475_s15 }
  0x2d   : > { %s6864_s5 = smov 32   ;;  %s8258_s8 = sld [smem:[#allocation35_spill]] }
  0x2e   : > { %6296 = dma.hbm_to_vmem [thread:$0]  (!%p7003_p5), %s476_s15, 8192, %s478_s29, [#allocation8], %s6863_s28, %s6863_s28, %s6864_s5  }
  0x2f   : > { %s6865_s11 = smov [#allocation12]   ;;  %s527_s24 = sshll.u32 %s8227_s10, 4  ;;  %s528_s24 = int_to_ptr.hbm [resolvable:$true] %s527_s24 }
  0x30   : > { %s503_s26 = sshll.u32 %s6865_s11, 4  ;;  %s6866_s15 = smov [#allocation15]   ;;  %s504_s26 = int_to_ptr.vmem [resolvable:$true] %s503_s26 }
  0x31   : > { %s529_s3 = sshll.u32 %s6866_s15, 4  ;;  %s559_s14 = sshll.u32 %s8230_s13, 4  ;;  %s530_s3 = int_to_ptr.vmem [resolvable:$true] %s529_s3  ;;  %s560_s14 = int_to_ptr.hbm [resolvable:$true] %s559_s14 }
  0x32   : > { %6308 = dma.hbm_to_vmem [thread:$0]  (!%p7003_p5), %s528_s24, 8192, %s530_s3, [#allocation14], %s6863_s28, %s6863_s28, %s6864_s5  }
  0x33   : > { %s501_s21 = sshll.u32 %s8258_s8, 4  ;;  %s6867_s11 = smov [#allocation18]   ;;  %s502_s21 = int_to_ptr.hbm [resolvable:$true] %s501_s21 }
  0x34   : > { %6302 = dma.hbm_to_vmem [thread:$0]  (!%p7003_p5), %s502_s21, 8192, %s504_s26, [#allocation11], %s6856_s27, %s6856_s27, %s6857_s4  }
  0x35   : > { %s561_s4 = sshll.u32 %s6867_s11, 4  ;;  %s55_s27 = sadd.s32 1, %s6849_s22  ;;  %s562_s4 = int_to_ptr.vmem [resolvable:$true] %s561_s4 }
  0x36   : > { %6314 = dma.hbm_to_vmem [thread:$0]  (!%p7003_p5), %s560_s14, 16, %s562_s4, [#allocation17]  }
  0x37   : > { %p57_p6 = scmp.ge.s32.totalorder %s55_s27, 2  ;;  %s66_s21 = sadd.s32 1, %s6841_s20 }
  0x38   : > { %p73_p7 = scmp.ne.s32.totalorder %s6841_s20, %s6837_s19  ;;  %p74_p8 = scmp.eq.s32.totalorder %s6853_s23, 0 }
  0x39   : > { %s8300_s27 = smov (%p57_p6, %s55_s27), 0  ;;  %p79_p10 = scmp.ne.s32.totalorder %s6837_s19, %s6833_s18 }
  0x3a   : > { %p7065_p9 = por %p74_p8, %p73_p7  ;;  %s59_s28 = ssub.s32 %s6849_s22, %s8300_s27 }
  0x3b   : > { %p6331_p11 = scmp.lt.s32.totalorder %s6853_s23, 2  ;;  %p64_p12 = scmp.eq.s32.totalorder %s59_s28, 0 }
  0x3c   : > { %p7076_p13 = por %p6987_p1, %p79_p10  ;;  %s572_s5 = sand.u32 1, %s6841_s20  }
  0x3d   : > { %s5909_s2 = sshll.u32 %s6849_s22, 6  ;;  %s4797_s24 = sshll.u32 %s572_s5, 6 }
  0x3e   : > { %s7083_s30 = scalar_select %p64_p12, %s6841_s20, %s66_s21  }
  0x3f   : > { %s8261_s0 = sld [smem:[#allocation28_spill]]  ;;  %s576_s18 = scalar_lea.vmem [#allocation2], %s4797_s24 }
  0x40   : > { %s587_s14 = sshll.u32 %s576_s18, 4  ;;  %p6316_p0 = pnand %p6331_p11, %p7065_p9  ;;  %s588_s14 = int_to_ptr.vmem [resolvable:$true] %s587_s14 }
  0x41   : > { %s609_s28 = scalar_lea.hbm %s8218_s1, %s5909_s2  ;;  %s573_s21 = scalar_lea.sflag [#allocation3], %s572_s5 }
  0x42   : > { %s6868_s6 = smov 128   ;;  %s6869_s7 = smov 8  }
  0x43   : > { %s610_s8 = sshll.u32 %s609_s28, 4  ;;  %s601_s15 = scalar_lea.vmem [#allocation4], %s4797_s24  ;;  %s611_s8 = int_to_ptr.hbm [resolvable:$true] %s610_s8 }
  0x44   : > { %s612_s3 = sshll.u32 %s601_s15, 4  ;;  %s626_s26 = sand.u32 (!%p6995_p3), 1, %s6837_s19   ;;  %s613_s3 = int_to_ptr.vmem [resolvable:$true] %s612_s3 }
  0x45   : > { %s584_s29 = scalar_lea.hbm %s8261_s0, %s5909_s2  ;;  %624 = sbr.rel (%p6995_p3) target bundleno = 1387 (0x56b), region = 76 }
  0x46   : > { %s585_s16 = sshll.u32 %s584_s29, 4  ;;  %s597_s29 = sand.u32 1, %s6853_s23   ;;  %s586_s16 = int_to_ptr.hbm [resolvable:$true] %s585_s16 }
  0x47   : > { %6318 = dma.hbm_to_vmem [thread:$0]  (!%p6316_p0), %s586_s16, 1024, %s588_s14, %s573_s21, %s6868_s6, %s6868_s6, %s6869_s7  }
  0x48   : > { %s598_s18 = scalar_lea.sflag [#allocation5], %s597_s29  ;;  %s4804_s11 = sshll.u32 (!%p6995_p3), %s626_s26, 6 }
  0x49   : > { %6321 = dma.hbm_to_vmem [thread:$0]  (!%p6316_p0), %s611_s8, 1024, %s613_s3, %s598_s18, %s6868_s6, %s6868_s6, %s6869_s7  }
  0x4a   : > { %s627_s2 = scalar_lea.sflag [#allocation3], %s626_s26  ;;  %s7099_s5 = scalar_lea.vmem [#allocation2], %s4804_s11 }
  0x4b   : > { %6804 = dma.done.wait (%p7076_p13), %s627_s2, 1024  }
  0x4c   : > { %6806 = vsyncadd (%p7076_p13), %s627_s2, 4294966272  ;;  %s8263_s24 = sadd.s32 4294967295, %s6853_s23   ;;  %s7107_s7 = scalar_lea.vmem [#allocation4], %s4804_s11 }
  0x4d   : > { %s636_s16 = sand.u32 1, %s8263_s24  }
  0x4e   : > { %s637_s6 = scalar_lea.sflag [#allocation5], %s636_s16 }
  0x4f   : > { %6808 = dma.done.wait (%p7076_p13), %s637_s6, 1024  }
  0x50   : > { %6810 = vsyncadd (%p7076_p13), %s637_s6, 4294966272 }
  0x51   : > { %6812 = dma.done.wait (%p6987_p1), [#allocation5], 1024  }
  0x52   : > { %6814 = vsyncadd (%p6987_p1), [#allocation5], 4294966272 }
  0x53   : > { %6816 = dma.done.wait (%p6987_p1), [#allocation8], 8208  }
  0x54   : > { %6818 = vsyncadd (%p6987_p1), [#allocation8], 4294959088 }
  0x55   : > { %6820 = dma.done.wait (%p6987_p1), [#allocation11], 8320  }
  0x56   : > { %6822 = vsyncadd (%p6987_p1), [#allocation11], 4294958976 }
  0x57   : > { %6824 = dma.done.wait (%p6987_p1), [#allocation14], 8208  }
  0x58   : > { %6826 = vsyncadd (%p6987_p1), [#allocation14], 4294959088 }
  0x59   : > { %6828 = dma.done.wait (%p6987_p1), [#allocation17], 8208  }
  0x5a   : > { %6830 = vsyncadd (%p6987_p1), [#allocation17], 4294959088  ;;  %v789_v0 = vld [vmem:[%s7099_s5 + $0x20] sm:$0xff]  ;;  %v787_v1 = vld [vmem:[%s7099_s5 + $0x10] sm:$0xff]  ;;  %v6870_v8 = vmov 128.0   ;;  %s8268_s25 = sld [smem:[#allocation29_spill]] }
  0x5b   : > { %v785_v2 = vld [vmem:[%s7099_s5] sm:$0xff]  ;;  %801 = vadd.xlane.f32.xlu2 %v789_v0  ;;  %797 = vadd.xlane.f32.xlu1 %v787_v1  ;;  %v790_v3 = vld [vmem:[%s7099_s5 + $0x28] sm:$0xff]  ;;  %v788_v4 = vld [vmem:[%s7099_s5 + $0x18] sm:$0xff]  ;;  %6415 = vrcp.f32 %v6870_v8  ;;  %s8271_s4 = sld [smem:[#allocation30_spill]] }
  0x5c   : > { %793 = vadd.xlane.f32.xlu0 %v785_v2  ;;  %v786_v5 = vld [vmem:[%s7099_s5 + $0x8] sm:$0xff]  ;;  %v792_v6 = vld [vmem:[%s7099_s5 + $0x38] sm:$0xff]  ;;  %v791_v7 = vld [vmem:[%s7099_s5 + $0x30] sm:$0xff]  ;;  %s8290_s29 = sld [smem:[#allocation26_spill]] }
  0x5d   : > { %v7178_v44 = vld [vmem:[%s7107_s7] sm:$0xff]  ;;  %v7188_v48 = vld [vmem:[%s7107_s7 + $0x8] sm:$0xff]  ;;  %v5920_v49 = vld [vmem:[#allocation6 + $0x38] sm:$0xff]  ;;  %s8291_s2 = sld [smem:[#allocation37_spill]] }
  0x5e   : > { %1056 = vmatpush.bf16.msra.mxu0 %v5920_v49  ;;  %6231 = vmatpush.bf16.msra.mxu2 %v5920_v49  ;;  %v5919_v50 = vld [vmem:[#allocation6 + $0x30] sm:$0xff]  ;;  %v5918_v51 = vld [vmem:[#allocation6 + $0x28] sm:$0xff]  ;;  %v5917_v52 = vld [vmem:[#allocation6 + $0x20] sm:$0xff]  ;;  %s8292_s6 = sld [smem:[#allocation36_spill]] }
  0x5f   : > { %v5916_v53 = vld [vmem:[#allocation6 + $0x18] sm:$0xff]  ;;  %v5915_v54 = vld [vmem:[#allocation6 + $0x10] sm:$0xff]  ;;  %v5914_v56 = vld [vmem:[#allocation6 + $0x8] sm:$0xff]  ;;  %s8293_s8 = sld [smem:[#allocation38_spill]] }
  0x60   : > { %v5913_v62 = vld [vmem:[#allocation6] sm:$0xff] }
  0x61   : > { %v6416_v9 = vpop.eup %6415 }
  0x62   : > { %v810_v10 = vmul.f32 128.0, %v6416_v9  ;;  %vm814_vm0 = vweird.f32 %v6416_v9  ;;  %1057 = vmatpush.bf16.msra.mxu0 %v5919_v50  ;;  %6232 = vmatpush.bf16.msra.mxu2 %v5919_v50  ;;  %p760_p1 = scmp.lt.s32.totalorder %s8290_s29, 1 }
  0x63   : > { %803 = vadd.xlane.f32.xlu2 %v790_v3  ;;  %799 = vadd.xlane.f32.xlu1 %v788_v4 }
  0x64   : > { %795 = vadd.xlane.f32.xlu0 %v786_v5  ;;  %v811_v11 = vsub.f32 1.0, %v810_v10  ;;  %s8302_s29 = smov (!%p760_p1, %s8290_s29), 1 }
  0x65   : > { %s5911_s18 = sshll.u32 %s8302_s29, 5 }
  0x66   : > { %v812_v12 = vmul.f32 %v6416_v9, %v811_v11  ;;  %1058 = vmatpush.bf16.msra.mxu0 %v5918_v51  ;;  %6233 = vmatpush.bf16.msra.mxu2 %v5918_v51  ;;  %s7877_s5 = scalar_lea.vmem %s8291_s2, %s5911_s18  ;;  %s8183_s17 = scalar_lea.vmem %s8293_s8, %s5911_s18 }
  0x68   : > { %v813_v13 = vadd.f32 %v6416_v9, %v812_v12 }
  0x6a   : > { %v7141_v14 = vsel %vm814_vm0, %v6416_v9, %v813_v13  ;;  %1059 = vmatpush.bf16.msra.mxu0 %v5917_v52  ;;  %6234 = vmatpush.bf16.msra.mxu2 %v5917_v52 }
  0x6b   : > { %807 = vadd.xlane.f32.xlu1 %v792_v6 }
  0x6c   : > { %805 = vadd.xlane.f32.xlu0 %v791_v7 }
  0x6e   : > { %1060 = vmatpush.bf16.msra.mxu0 %v5916_v53  ;;  %6235 = vmatpush.bf16.msra.mxu2 %v5916_v53 }
  0x72   : > { %1061 = vmatpush.bf16.msra.mxu0 %v5915_v54  ;;  %6236 = vmatpush.bf16.msra.mxu2 %v5915_v54 }
  0x76   : > { %1062 = vmatpush.bf16.msra.mxu0 %v5914_v56  ;;  %6237 = vmatpush.bf16.msra.mxu2 %v5914_v56 }
  0x7a   : > { %1063 = vmatpush.bf16.msra.mxu0 %v5913_v62  ;;  %6238 = vmatpush.bf16.msra.mxu2 %v5913_v62 }
  0xce   : > { %v802_v15 = vpop.xlane.xlu2 %801  ;;  %v798_v16 = vpop.xlane.xlu1 %797 }
  0xcf   : > { %v818_v17 = vmul.f32 %v7141_v14, %v798_v16  ;;  %v794_v18 = vpop.xlane.xlu0 %793  ;;  %v820_v32 = vmul.f32 %v7141_v14, %v802_v15 }
  0xd0   : > { %v816_v19 = vmul.f32 %v7141_v14, %v794_v18  ;;  %v7214_v18 = vld [vmem:[%s7107_s7 + $0x18] sm:$0xff] }
  0xd1   : > { %v7145_v20 = vsub.f32 %v787_v1, %v818_v17  ;;  %v7169_v37 = vsub.f32 %v789_v0, %v820_v32 }
  0xd2   : > { %v7147_v21 = vsub.f32 %v785_v2, %v816_v19  ;;  %v7217_v19 = vld [vmem:[%s7107_s7 + $0x10] sm:$0xff] }
  0xd3   : > { %v834_v22 = vmul.f32 %v7145_v20, %v7145_v20  ;;  %v836_v42 = vmul.f32 %v7169_v37, %v7169_v37 }
  0xd4   : > { %v832_v23 = vmul.f32 %v7147_v21, %v7147_v21 }
  0xd5   : > { %844 = vadd.xlane.f32.xlu1 %v834_v22 }
  0xd6   : > { %840 = vadd.xlane.f32.xlu2 %v832_v23  ;;  %v804_v24 = vpop.xlane.xlu2 %803  ;;  %v800_v25 = vpop.xlane.xlu1 %799 }
  0xd7   : > { %v821_v26 = vmul.f32 %v7141_v14, %v804_v24  ;;  %v819_v27 = vmul.f32 %v7141_v14, %v800_v25  ;;  %v796_v28 = vpop.xlane.xlu0 %795 }
  0xd8   : > { %v817_v29 = vmul.f32 %v7141_v14, %v796_v28 }
  0xd9   : > { %v7156_v30 = vsub.f32 %v790_v3, %v821_v26  ;;  %v7158_v31 = vsub.f32 %v788_v4, %v819_v27 }
  0xda   : > { %v7161_v33 = vsub.f32 %v786_v5, %v817_v29 }
  0xdb   : > { %v837_v34 = vmul.f32 %v7156_v30, %v7156_v30  ;;  %v835_v35 = vmul.f32 %v7158_v31, %v7158_v31 }
  0xdc   : > { %v833_v36 = vmul.f32 %v7161_v33, %v7161_v33 }
  0xdd   : > { %850 = vadd.xlane.f32.xlu1 %v837_v34 }
  0xde   : > { %846 = vadd.xlane.f32.xlu2 %v835_v35  ;;  %842 = vadd.xlane.f32.xlu0 %v833_v36  ;;  %v808_v39 = vpop.xlane.xlu1 %807 }
  0xdf   : > { %v806_v38 = vpop.xlane.xlu0 %805  ;;  %v823_v43 = vmul.f32 %v7141_v14, %v808_v39 }
  0xe0   : > { %v822_v40 = vmul.f32 %v7141_v14, %v806_v38 }
  0xe1   : > { %v7183_v46 = vsub.f32 %v792_v6, %v823_v43 }
  0xe2   : > { %v7172_v41 = vsub.f32 %v791_v7, %v822_v40 }
  0xe3   : > { %v839_v47 = vmul.f32 %v7183_v46, %v7183_v46 }
  0xe4   : > { %v838_v45 = vmul.f32 %v7172_v41, %v7172_v41 }
  0xe5   : > { %2591 = vadd.xlane.f32.xlu1 %v7178_v44 }
  0xe6   : > { %848 = vadd.xlane.f32.xlu0 %v836_v42  ;;  %852 = vadd.xlane.f32.xlu2 %v838_v45 }
  0xed   : > { %2597 = vadd.xlane.f32.xlu1 %v7214_v18 }
  0xee   : > { %854 = vadd.xlane.f32.xlu0 %v839_v47  ;;  %2593 = vadd.xlane.f32.xlu2 %v7188_v48 }
  0xf6   : > { %2595 = vadd.xlane.f32.xlu0 %v7217_v19 }
 0x148   : > { %v845_v55 = vpop.xlane.xlu1 %844 }
 0x149   : > { %v858_v57 = vmul.f32 %v845_v55, %v7141_v14  ;;  %v841_v58 = vpop.xlane.xlu2 %840 }
 0x14a   : > { %v856_v59 = vmul.f32 %v841_v58, %v7141_v14 }
 0x14b   : > { %v7193_v60 = vadd.f32 1e-05, %v858_v57 }
 0x14c   : > { %v864_v61 = vadd.f32 1e-05, %v856_v59 }
 0x14d   : > { %6417 = vrsqrt.f32 %v7193_v60  ;;  %vm898_vm4 = vweird.f32 %v7193_v60 }
 0x14e   : > { %6419 = vrsqrt.f32 %v864_v61  ;;  %vm878_vm2 = vweird.f32 %v864_v61 }
 0x150   : > { %v851_v63 = vpop.xlane.xlu1 %850 }
 0x151   : > { %v861_v0 = vmul.f32 %v851_v63, %v7141_v14  ;;  %v847_v1 = vpop.xlane.xlu2 %846  ;;  %v843_v2 = vpop.xlane.xlu0 %842 }
 0x152   : > { %v859_v3 = vmul.f32 %v847_v1, %v7141_v14  ;;  %v857_v4 = vmul.f32 %v843_v2, %v7141_v14  ;;  %v7276_v1 = vld [vmem:[%s8268_s25] ss:$0 sm:$0xff] }
 0x153   : > { %v7199_v5 = vpop.eup %6417  ;;  %v7201_v6 = vadd.f32 1e-05, %v861_v0 }
 0x154   : > { %v6420_v7 = vpop.eup %6419  ;;  %v7203_v8 = vadd.f32 1e-05, %v859_v3  ;;  %v7205_v9 = vadd.f32 1e-05, %v857_v4  ;;  %v893_v10 = vmul.f32 %v7199_v5, %v7193_v60  ;;  %vm899_vm5 = vweird.f32 %v7199_v5 }
 0x155   : > { %v873_v11 = vmul.f32 %v6420_v7, %v864_v61  ;;  %6421 = vrsqrt.f32 %v7201_v6  ;;  %vm879_vm1 = vweird.f32 %v6420_v7  ;;  %vm928_vm6 = vweird.f32 %v7201_v6  ;;  %vm7265_vm10 = vmor %vm898_vm4, %vm899_vm5 }
 0x156   : > { %6423 = vrsqrt.f32 %v7203_v8  ;;  %v894_v13 = vmul.f32 %v7199_v5, %v893_v10  ;;  %vm7240_vm3 = vmor %vm878_vm2, %vm879_vm1  ;;  %vm888_vm8 = vweird.f32 %v7205_v9  ;;  %vm908_vm13 = vweird.f32 %v7203_v8 }
 0x157   : > { %v874_v12 = vmul.f32 %v6420_v7, %v873_v11  ;;  %6425 = vrsqrt.f32 %v7205_v9 }
 0x158   : > { %v895_v32 = vmul.f32 0.5, %v894_v13  ;;  %v7302_v13 = vld [vmem:[%s7107_s7 + $0x28] sm:$0xff] }
 0x159   : > { %v875_v15 = vmul.f32 0.5, %v874_v12  ;;  %v853_v16 = vpop.xlane.xlu2 %852  ;;  %v849_v17 = vpop.xlane.xlu0 %848  ;;  %v7296_v12 = vld [vmem:[%s8271_s4] ss:$0 sm:$0xff]  ;;  %2601 = vadd.xlane.f32.xlu0 %v7302_v13 }
 0x15a   : > { %v862_v22 = vmul.f32 %v853_v16, %v7141_v14  ;;  %v860_v23 = vmul.f32 %v849_v17, %v7141_v14  ;;  %v896_v47 = vsub.f32 1.5, %v895_v32  ;;  %v2592_v16 = vpop.xlane.xlu1 %2591 }
 0x15b   : > { %v7223_v24 = vpop.eup %6421  ;;  %v876_v25 = vsub.f32 1.5, %v875_v15  ;;  %v7305_v15 = vld [vmem:[%s7107_s7 + $0x20] sm:$0xff] }
 0x15c   : > { %v7225_v26 = vpop.eup %6423  ;;  %v923_v27 = vmul.f32 %v7223_v24, %v7201_v6  ;;  %v7229_v28 = vadd.f32 1e-05, %v862_v22  ;;  %v7233_v36 = vadd.f32 1e-05, %v860_v23  ;;  %vm929_vm7 = vweird.f32 %v7223_v24  ;;  %2599 = vadd.xlane.f32.xlu2 %v7305_v15 }
 0x15d   : > { %v6426_v29 = vpop.eup %6425  ;;  %v877_v34 = vmul.f32 %v6420_v7, %v876_v25  ;;  %v903_v35 = vmul.f32 %v7225_v26, %v7203_v8  ;;  %v7259_v59 = vmul.f32 %v7199_v5, %v896_v47  ;;  %vm7278_vm11 = vmor %vm928_vm6, %vm929_vm7  ;;  %vm909_vm14 = vweird.f32 %v7225_v26  ;;  %v5077_v25 = vld [vmem:[#allocation9 + $0x1c0] sm:$0xf]  ;;  %v5079_v47 = vld [vmem:[#allocation9 + $0x1e0] sm:$0xf0] }
 0x15e   : > { %v924_v38 = vmul.f32 %v7223_v24, %v923_v27  ;;  %v883_v39 = vmul.f32 %v6426_v29, %v7205_v9  ;;  %6427 = vrsqrt.f32 %v7229_v28  ;;  %vm889_vm9 = vweird.f32 %v6426_v29  ;;  %v5981_v27 = vld [vmem:[#allocation9 + $0x1dc] sm:$0xf0]  ;;  %vm7325_vm1 = vmor %vm908_vm13, %vm909_vm14 }
 0x15f   : > { %v904_v40 = vmul.f32 %v7225_v26, %v903_v35  ;;  %6429 = vrsqrt.f32 %v7233_v36  ;;  %v881_v50 = vsel %vm7240_vm3, %v6420_v7, %v877_v34  ;;  %vm890_vm12 = vmor %vm888_vm8, %vm889_vm9  ;;  %v901_v23 = vsel %vm7265_vm10, %v7199_v5, %v7259_v59  ;;  %v5953_v59 = vld [vmem:[#allocation9 + $0x104] sm:$0xf] }
 0x160   : > { %v925_v43 = vmul.f32 0.5, %v924_v38  ;;  %v884_v45 = vmul.f32 %v6426_v29, %v883_v39  ;;  %v952_v0 = vmul.f32 %v881_v50, %v7147_v21  ;;  %vm938_vm15 = vweird.f32 %v7229_v28  ;;  %v5962_v38 = vld [vmem:[#allocation9 + $0x14c] sm:$0xf] }
 0x161   : > { %v855_v49 = vpop.xlane.xlu0 %854  ;;  %v905_v52 = vmul.f32 0.5, %v904_v40  ;;  %v2594_v17 = vpop.xlane.xlu2 %2593  ;;  %v5078_v34 = vor.u32 %v5981_v27, %v5077_v25  ;;  %vm918_vm2 = vweird.f32 %v7233_v36  ;;  %v5961_v25 = vld [vmem:[#allocation9 + $0x144] sm:$0xf] }
 0x162   : > { %v926_v51 = vsub.f32 1.5, %v925_v43  ;;  %v885_v53 = vmul.f32 0.5, %v884_v45  ;;  %v863_v54 = vmul.f32 %v855_v49, %v7141_v14  ;;  %v964_v11 = vmul.f32 %v7276_v1, %v952_v0  ;;  %v5977_v45 = vld [vmem:[#allocation9 + $0x1c4] sm:$0xf] }
 0x163   : > { %v906_v60 = vsub.f32 1.5, %v905_v52  ;;  %v2608_v32 = vmul.f32 %v2594_v17, %v7141_v14  ;;  %1491 = vmatpush.bf16.msra.mxu1 %v5078_v34  ;;  %v5087_v52 = vld [vmem:[#allocation9 + $0x1e8] sm:$0xf0]  ;;  %6239 = vmatpush.bf16.msra.mxu3 %v5078_v34  ;;  %v5015_v34 = vld [vmem:[#allocation9 + $0x160] sm:$0xf0] }
 0x164   : > { %v7251_v55 = vpop.eup %6427  ;;  %v886_v56 = vsub.f32 1.5, %v885_v53  ;;  %v7254_v57 = vadd.f32 1e-05, %v863_v54  ;;  %v927_v62 = vmul.f32 %v7223_v24, %v926_v51  ;;  %v976_v8 = vadd.f32 %v7296_v12, %v964_v11  ;;  %v5978_v51 = vld [vmem:[#allocation9 + $0x1cc] sm:$0xf] }
 0x165   : > { %v7256_v58 = vpop.eup %6429  ;;  %v933_v63 = vmul.f32 %v7251_v55, %v7229_v28  ;;  %v907_v22 = vmul.f32 %v7225_v26, %v906_v60  ;;  %v5045_v53 = vld [vmem:[#allocation9 + $0x180] sm:$0xf]  ;;  %vm939_vm3 = vweird.f32 %v7251_v55  ;;  %v5055_v11 = vld [vmem:[#allocation9 + $0x1a8] sm:$0xf0]  ;;  %v5018_v61 = vor.u32 %v5961_v25, %v5015_v34  ;;  %v2598_v25 = vpop.xlane.xlu1 %2597 }
 0x166   : > { %v887_v3 = vmul.f32 %v6426_v29, %v886_v56  ;;  %v913_v4 = vmul.f32 %v7256_v58, %v7233_v36  ;;  %6431 = vrsqrt.f32 %v7254_v57  ;;  %v931_v9 = vsel %vm7278_vm11, %v7223_v24, %v927_v62  ;;  %v5973_v56 = vld [vmem:[#allocation9 + $0x19c] sm:$0xf0]  ;;  %v5969_v62 = vld [vmem:[#allocation9 + $0x184] sm:$0xf]  ;;  %vm7400_vm8 = vmor %vm938_vm15, %vm939_vm3 }
 0x167   : > { %v934_v21 = vmul.f32 %v7251_v55, %v933_v63  ;;  %v2607_v24 = vmul.f32 %v2592_v16, %v7141_v14  ;;  %vm919_vm0 = vweird.f32 %v7256_v58  ;;  %v957_v42 = vmul.f32 %v931_v9, %v7156_v30  ;;  %v5047_v63 = vld [vmem:[#allocation9 + $0x1a0] sm:$0xf0]  ;;  %v5013_v9 = vld [vmem:[#allocation9 + $0x140] sm:$0xf]  ;;  %v4991_v28 = vld [vmem:[#allocation9 + $0x128] sm:$0xf0] }
 0x168   : > { %v914_v6 = vmul.f32 %v7256_v58, %v913_v4  ;;  %v891_v7 = vsel %vm890_vm12, %v6426_v29, %v887_v3  ;;  %vm7351_vm4 = vmor %vm918_vm2, %vm919_vm0  ;;  %v7360_v3 = vld [vmem:[%s7107_s7 + $0x30] sm:$0xff]  ;;  %v5082_v4 = vor.u32 %v5977_v45, %v5079_v47  ;;  %v5965_v16 = vld [vmem:[#allocation9 + $0x15c] sm:$0xf0]  ;;  %vm948_vm5 = vweird.f32 %v7254_v57 }
 0x169   : > { %v953_v10 = vmul.f32 %v891_v7, %v7161_v33  ;;  %v7329_v39 = vmul.f32 0.5, %v934_v21  ;;  %v7333_v43 = vsub.f32 %v7178_v44, %v2607_v24  ;;  %v7343_v44 = vsub.f32 %v7188_v48, %v2608_v32  ;;  %v5970_v21 = vld [vmem:[#allocation9 + $0x18c] sm:$0xf]  ;;  %2603 = vadd.xlane.f32.xlu0 %v7360_v3 }
 0x16a   : > { %v915_v33 = vmul.f32 0.5, %v914_v6  ;;  %v911_v48 = vsel %vm7325_vm1, %v7225_v26, %v907_v22  ;;  %v969_v36 = vmul.f32 %v7276_v1, %v957_v42  ;;  %1520 = vmatpush.bf16.msrb.mxu2 %v5082_v4  ;;  %v5046_v22 = vor.u32 %v5973_v56, %v5045_v53  ;;  %v5957_v42 = vld [vmem:[#allocation9 + $0x11c] sm:$0xf0]  ;;  %v4927_v34 = vld [vmem:[#allocation9 + $0xa8] sm:$0xf0] }
 0x16b   : > { %v965_v29 = vmul.f32 %v7276_v1, %v953_v10  ;;  %v2623_v54 = vmul.f32 %v7333_v43, %v7333_v43  ;;  %v2624_v7 = vmul.f32 %v7343_v44, %v7343_v44  ;;  %v5090_v10 = vor.u32 %v5978_v51, %v5087_v52  ;;  %v4949_v56 = vld [vmem:[#allocation9 + $0xc0] sm:$0xf] }
 0x16c   : > { %v7319_v35 = vpop.eup %6431  ;;  %v916_v40 = vsub.f32 1.5, %v915_v33  ;;  %v5050_v33 = vor.u32 %v5969_v62, %v5047_v63  ;;  %v936_v24 = vsub.f32 1.5, %v7329_v39  ;;  %1492 = vmatpush.bf16.msra.mxu1 %v5046_v22  ;;  %v5014_v32 = vor.u32 %v5965_v16, %v5013_v9  ;;  %v5023_v39 = vld [vmem:[#allocation9 + $0x168] sm:$0xf0]  ;;  %6240 = vmatpush.bf16.msra.mxu3 %v5046_v22  ;;  %v5949_v62 = vld [vmem:[#allocation9 + $0xdc] sm:$0xf0] }
 0x16d   : > { %v943_v49 = vmul.f32 %v7319_v35, %v7254_v57  ;;  %v977_v50 = vadd.f32 %v7296_v12, %v965_v29  ;;  %2631 = vadd.xlane.f32.xlu1 %v2623_v54  ;;  %vm949_vm6 = vweird.f32 %v7319_v35  ;;  %2633 = vadd.xlane.f32.xlu2 %v2624_v7  ;;  %v4950_v4 = vor.u32 %v5949_v62, %v4949_v56  ;;  %v4959_v7 = vld [vmem:[#allocation9 + $0xe8] sm:$0xf0]  ;;  %v5093_v62 = vld [vmem:[#allocation9 + $0x1d0] sm:$0xf] }
 0x16e   : > { %v917_v30 = vmul.f32 %v7256_v58, %v916_v40  ;;  %1578 = vmatpush.bf16.msrb.mxu0 %v5090_v10  ;;  %v4981_v40 = vld [vmem:[#allocation9 + $0x100] sm:$0xf]  ;;  %vm7380_vm7 = vmor %vm948_vm5, %vm949_vm6  ;;  %1521 = vmatpush.bf16.msrb.mxu2 %v5050_v33  ;;  %v937_v57 = vmul.f32 %v7251_v55, %v936_v24 }
 0x16f   : > { %v944_v2 = vmul.f32 %v7319_v35, %v943_v49  ;;  %v984_v60 = vpack.c.bf16 %v977_v50, %v976_v8  ;;  %v981_v49 = vadd.f32 %v7296_v12, %v969_v36  ;;  %v954_v8 = vmul.f32 %v901_v23, %v7145_v20  ;;  %v7393_v50 = vld [vmem:[%s7107_s7 + $0x38] sm:$0xff]  ;;  %v4983_v23 = vld [vmem:[#allocation9 + $0x120] sm:$0xf0]  ;;  %v5946_v36 = vld [vmem:[#allocation9 + $0xcc] sm:$0xf] }
 0x170   : > { %v921_v6 = vsel %vm7351_vm4, %v7256_v58, %v917_v30  ;;  %v955_v58 = vmul.f32 %v911_v48, %v7158_v31  ;;  %1493 = vmatpush.bf16.msra.mxu1 %v5014_v32  ;;  %v5026_v20 = vor.u32 %v5962_v38, %v5023_v39  ;;  %v4982_v5 = vor.u32 %v5957_v42, %v4981_v40  ;;  %v5954_v30 = vld [vmem:[#allocation9 + $0x10c] sm:$0xf]  ;;  %v5941_v24 = vld [vmem:[#allocation9 + $0x9c] sm:$0xf0] }
 0x171   : > { %v945_v17 = vmul.f32 0.5, %v944_v2  ;;  %1064 = vmatmul.bf16.vlgmr.msra.gmra.mxu0 %v984_v60  ;;  %v956_v26 = vmul.f32 %v921_v6, %v7169_v37  ;;  %v5058_v37 = vor.u32 %v5970_v21, %v5055_v11  ;;  %6241 = vmatpush.bf16.msra.mxu3 %v5014_v32  ;;  %v966_v63 = vmul.f32 %v7276_v1, %v954_v8  ;;  %v5945_v21 = vld [vmem:[#allocation9 + $0xc4] sm:$0xf]  ;;  %v5938_v32 = vld [vmem:[#allocation9 + $0x8c] sm:$0xf] }
 0x172   : > { %v967_v52 = vmul.f32 %v7276_v1, %v955_v58  ;;  %v941_v2 = vsel %vm7400_vm8, %v7251_v55, %v937_v57  ;;  %1522 = vmatpush.bf16.msrb.mxu2 %v5018_v61  ;;  %v4986_v60 = vor.u32 %v5953_v59, %v4983_v23  ;;  %v4951_v6 = vld [vmem:[#allocation9 + $0xe0] sm:$0xf0]  ;;  %v4930_v39 = vor.u32 %v5938_v32, %v4927_v34  ;;  %v4885_v42 = vld [vmem:[#allocation9 + $0x40] sm:$0xf]  ;;  %v4895_v8 = vld [vmem:[#allocation9 + $0x68] sm:$0xf0] }
 0x173   : > { %v946_v27 = vsub.f32 1.5, %v945_v17  ;;  %v968_v29 = vmul.f32 %v7276_v1, %v956_v26  ;;  %1579 = vmatpush.bf16.msrb.mxu0 %v5058_v37  ;;  %v978_v10 = vadd.f32 %v7296_v12, %v966_v63  ;;  %v958_v11 = vmul.f32 %v941_v2, %v7172_v41  ;;  %v4917_v41 = vld [vmem:[#allocation9 + $0x80] sm:$0xf]  ;;  %v5937_v58 = vld [vmem:[#allocation9 + $0x84] sm:$0xf] }
 0x174   : > { %v979_v0 = vadd.f32 %v7296_v12, %v967_v52  ;;  %1494 = vmatpush.bf16.msra.mxu1 %v4982_v5  ;;  %v4954_v9 = vor.u32 %v5945_v21, %v4951_v6  ;;  %v4919_v37 = vld [vmem:[#allocation9 + $0xa0] sm:$0xf0]  ;;  %v5983_v63 = vld [vmem:[#allocation9 + $0x1ec] sm:$0xf0] }
 0x175   : > { %v947_v31 = vmul.f32 %v7319_v35, %v946_v27  ;;  %v980_v47 = vadd.f32 %v7296_v12, %v968_v29  ;;  %2605 = vadd.xlane.f32.xlu1 %v7393_v50  ;;  %6242 = vmatpush.bf16.msra.mxu3 %v4982_v5  ;;  %v970_v17 = vmul.f32 %v7276_v1, %v958_v11  ;;  %v2596_v27 = vpop.xlane.xlu0 %2595  ;;  %v5921_v5 = vld [vmem:[#allocation9 + $0x4] sm:$0xf]  ;;  %v5061_v2 = vld [vmem:[#allocation9 + $0x190] sm:$0xf] }
 0x176   : > { %1523 = vmatpush.bf16.msrb.mxu2 %v4986_v60  ;;  %v985_v55 = vpack.c.bf16 %v979_v0, %v978_v10  ;;  %v4918_v29 = vor.u32 %v5941_v24, %v4917_v41  ;;  %v4922_v38 = vor.u32 %v5937_v58, %v4919_v37  ;;  %v2609_v40 = vmul.f32 %v2596_v27, %v7141_v14  ;;  %v5975_v60 = vld [vmem:[#allocation9 + $0x1ac] sm:$0xf0]  ;;  %v5053_v58 = vld [vmem:[#allocation9 + $0x188] sm:$0xf] }
 0x177   : > { %v986_v53 = vpack.c.bf16 %v981_v49, %v980_v47  ;;  %v951_v54 = vsel %vm7380_vm7, %v7319_v35, %v947_v31  ;;  %1580 = vmatpush.bf16.msrb.mxu0 %v5026_v20  ;;  %v4994_v35 = vor.u32 %v5954_v30, %v4991_v28  ;;  %v982_v22 = vadd.f32 %v7296_v12, %v970_v17  ;;  %v5933_v31 = vld [vmem:[#allocation9 + $0x5c] sm:$0xf0]  ;;  %v4887_v47 = vld [vmem:[#allocation9 + $0x60] sm:$0xf0]  ;;  %v5930_v49 = vld [vmem:[#allocation9 + $0x4c] sm:$0xf] }
 0x178   : > { %v959_v48 = vmul.f32 %v951_v54, %v7183_v46  ;;  %1495 = vmatpush.bf16.msra.mxu1 %v4950_v4  ;;  %v4962_v46 = vor.u32 %v5946_v36, %v4959_v7  ;;  %v4886_v45 = vor.u32 %v5933_v31, %v4885_v42  ;;  %v4898_v51 = vor.u32 %v5930_v49, %v4895_v8  ;;  %v5925_v20 = vld [vmem:[#allocation9 + $0x1c] sm:$0xf0]  ;;  %v4855_v54 = vld [vmem:[#allocation9 + $0x20] sm:$0xf0]  ;;  %v4863_v28 = vld [vmem:[#allocation9 + $0x28] sm:$0xf0] }
 0x179   : > { %1074 = vmatmul.bf16.vlgmr.msra.gmra.mxu2 %v986_v53  ;;  %6243 = vmatpush.bf16.msra.mxu3 %v4950_v4  ;;  %v7427_v61 = vsub.f32 %v7217_v19, %v2609_v40  ;;  %v4853_v53 = vld [vmem:[#allocation9] sm:$0xf]  ;;  %v4858_v56 = vor.u32 %v5921_v5, %v4855_v54  ;;  %v5094_v0 = vor.u32 %v5983_v63, %v5093_v62  ;;  %v5029_v10 = vld [vmem:[#allocation9 + $0x150] sm:$0xf]  ;;  %v4957_v62 = vld [vmem:[#allocation9 + $0xc8] sm:$0xf] }
 0x17a   : > { %v971_v16 = vmul.f32 %v7276_v1, %v959_v48  ;;  %1524 = vmatpush.bf16.msrb.mxu2 %v4954_v9  ;;  %v2610_v1 = vmul.f32 %v2598_v25, %v7141_v14  ;;  %v4854_v30 = vor.u32 %v5925_v20, %v4853_v53  ;;  %v5062_v4 = vor.u32 %v5975_v60, %v5061_v2  ;;  %v5967_v11 = vld [vmem:[#allocation9 + $0x16c] sm:$0xf0]  ;;  %v5950_v63 = vld [vmem:[#allocation9 + $0xe4] sm:$0xf0]  ;;  %v5979_v60 = vld [vmem:[#allocation9 + $0x1d4] sm:$0xf] }
 0x17b   : > { %1581 = vmatpush.bf16.msrb.mxu0 %v4994_v35  ;;  %v2625_v23 = vmul.f32 %v7427_v61, %v7427_v61  ;;  %v5030_v9 = vor.u32 %v5967_v11, %v5029_v10  ;;  %v4965_v41 = vld [vmem:[#allocation9 + $0xd0] sm:$0xf] }
 0x17c   : > { %v983_v26 = vadd.f32 %v7296_v12, %v971_v16  ;;  %v5929_v12 = vld [vmem:[#allocation9 + $0x44] sm:$0xf]  ;;  %1496 = vmatpush.bf16.msra.mxu1 %v4918_v29  ;;  %v7424_v52 = vsub.f32 %v7214_v18, %v2610_v1  ;;  %v5922_v18 = vld [vmem:[#allocation9 + $0xc] sm:$0xf]  ;;  %v5959_v16 = vld [vmem:[#allocation9 + $0x12c] sm:$0xf0] }
 0x17d   : > { %6244 = vmatpush.bf16.msra.mxu3 %v4918_v29  ;;  %v4890_v57 = vor.u32 %v5929_v12, %v4887_v47  ;;  %v4866_v19 = vor.u32 %v5922_v18, %v4863_v28  ;;  %2635 = vadd.xlane.f32.xlu2 %v2625_v23  ;;  %v5951_v24 = vld [vmem:[#allocation9 + $0xec] sm:$0xf0]  ;;  %v5974_v29 = vld [vmem:[#allocation9 + $0x1a4] sm:$0xf0]  ;;  %v7449_v47 = vld [vmem:[#allocation7] ss:$0 sm:$0xff] }
 0x17e   : > { %v987_v33 = vpack.c.bf16 %v983_v26, %v982_v22  ;;  %1525 = vmatpush.bf16.msrb.mxu2 %v4922_v38  ;;  %v2626_v59 = vmul.f32 %v7424_v52, %v7424_v52  ;;  %v5085_v26 = vld [vmem:[#allocation9 + $0x1c8] sm:$0xf]  ;;  %v4966_v27 = vor.u32 %v5951_v24, %v4965_v41  ;;  %v4933_v37 = vld [vmem:[#allocation9 + $0x90] sm:$0xf]  ;;  %v5054_v38 = vor.u32 %v5974_v29, %v5053_v58  ;;  %v5963_v24 = vld [vmem:[#allocation9 + $0x154] sm:$0xf] }
 0x17f   : > { %1582 = vmatpush.bf16.msrb.mxu0 %v4962_v46  ;;  %v5943_v32 = vld [vmem:[#allocation9 + $0xac] sm:$0xf0]  ;;  %v5966_v1 = vld [vmem:[#allocation9 + $0x164] sm:$0xf0]  ;;  %v5031_v58 = vld [vmem:[#allocation9 + $0x170] sm:$0xf0] }
 0x180   : > { %1497 = vmatpush.bf16.msra.mxu1 %v4886_v45  ;;  %2637 = vadd.xlane.f32.xlu0 %v2626_v59  ;;  %v4934_v40 = vor.u32 %v5943_v32, %v4933_v37  ;;  %v4989_v23 = vld [vmem:[#allocation9 + $0x108] sm:$0xf]  ;;  %v4869_v18 = vld [vmem:[#allocation9 + $0x10] sm:$0xf]  ;;  %v5034_v37 = vor.u32 %v5963_v24, %v5031_v58 }
 0x181   : > { %1069 = vmatmul.bf16.gmra.mxu0 %v985_v55  ;;  %6245 = vmatpush.bf16.msra.mxu3 %v4886_v45  ;;  %v4997_v55 = vld [vmem:[#allocation9 + $0x110] sm:$0xf]  ;;  %v5934_v41 = vld [vmem:[#allocation9 + $0x64] sm:$0xf0] }
 0x182   : > { %1526 = vmatpush.bf16.msrb.mxu2 %v4890_v57  ;;  %v4901_v57 = vld [vmem:[#allocation9 + $0x50] sm:$0xf]  ;;  %v4861_v32 = vld [vmem:[#allocation9 + $0x8] sm:$0xf] }
 0x183   : > { %1583 = vmatpush.bf16.msrb.mxu0 %v4930_v39  ;;  %v5021_v39 = vld [vmem:[#allocation9 + $0x148] sm:$0xf] }
 0x184   : > { %1498 = vmatpush.bf16.msra.mxu1 %v4854_v30  ;;  %v5022_v42 = vor.u32 %v5966_v1, %v5021_v39 }
 0x185   : > { %6246 = vmatpush.bf16.msra.mxu3 %v4854_v30  ;;  %v5958_v30 = vld [vmem:[#allocation9 + $0x124] sm:$0xf0] }
 0x186   : > { %1527 = vmatpush.bf16.msrb.mxu2 %v4858_v56  ;;  %v4990_v54 = vor.u32 %v5958_v30, %v4989_v23 }
 0x187   : > { %1584 = vmatpush.bf16.msrb.mxu0 %v4898_v51  ;;  %v5935_v51 = vld [vmem:[#allocation9 + $0x6c] sm:$0xf0] }
 0x188   : > { %1607 = vmatpush.bf16.msrb.mxu1 %v5094_v0  ;;  %v4902_v20 = vor.u32 %v5935_v51, %v4901_v57  ;;  %v4958_v0 = vor.u32 %v5950_v63, %v4957_v62  ;;  %v5956_v57 = vld [vmem:[#allocation9 + $0x11c] sm:$0xf] }
 0x189   : > { %1079 = vmatmul.bf16.gmra.mxu2 %v987_v33  ;;  %v5982_v33 = vld [vmem:[#allocation9 + $0x1e4] sm:$0xf0]  ;;  %v5007_v51 = vld [vmem:[#allocation9 + $0x138] sm:$0xf0] }
 0x18a   : > { %v4975_v63 = vld [vmem:[#allocation9 + $0xf8] sm:$0xf0] }
 0x18b   : > { %1585 = vmatpush.bf16.msrb.mxu0 %v4866_v19 }
 0x18c   : > { %1608 = vmatpush.bf16.msrb.mxu1 %v5062_v4  ;;  %v5980_v4 = vld [vmem:[#allocation9 + $0x1dc] sm:$0xf] }
 0x190   : > { %1609 = vmatpush.bf16.msrb.mxu1 %v5030_v9  ;;  %v5942_v9 = vld [vmem:[#allocation9 + $0xa4] sm:$0xf0] }
 0x1cc   : > { %v2602_v35 = vpop.xlane.xlu0 %2601 }
 0x1cd   : > { %v2612_v6 = vmul.f32 %v2602_v35, %v7141_v14 }
 0x1cf   : > { %v2600_v48 = vpop.xlane.xlu2 %2599  ;;  %v7439_v7 = vsub.f32 %v7302_v13, %v2612_v6  ;;  %v5086_v13 = vor.u32 %v5982_v33, %v5085_v26  ;;  %v4925_v6 = vld [vmem:[#allocation9 + $0x88] sm:$0xf]  ;;  %v5972_v26 = vld [vmem:[#allocation9 + $0x19c] sm:$0xf] }
 0x1d0   : > { %v2611_v21 = vmul.f32 %v2600_v48, %v7141_v14  ;;  %v5095_v48 = vld [vmem:[#allocation9 + $0x1f0] sm:$0xf0]  ;;  %v4893_v33 = vld [vmem:[#allocation9 + $0x48] sm:$0xf] }
 0x1d1   : > { %v2628_v17 = vmul.f32 %v7439_v7, %v7439_v7  ;;  %1549 = vmatpush.bf16.msrb.mxu3 %v5086_v13  ;;  %v5098_v35 = vor.u32 %v5979_v60, %v5095_v48  ;;  %v4894_v29 = vor.u32 %v5934_v41, %v4893_v33  ;;  %v5940_v48 = vld [vmem:[#allocation9 + $0x9c] sm:$0xf]  ;;  %v4871_v33 = vld [vmem:[#allocation9 + $0x30] sm:$0xf0] }
 0x1d2   : > { %v7436_v36 = vsub.f32 %v7305_v15, %v2611_v21  ;;  %v4998_v15 = vor.u32 %v5959_v16, %v4997_v55  ;;  %v5103_v21 = vld [vmem:[#allocation9 + $0x1f8] sm:$0xf0]  ;;  %v5971_v55 = vld [vmem:[#allocation9 + $0x194] sm:$0xf] }
 0x1d3   : > { %2641 = vadd.xlane.f32.xlu2 %v2628_v17  ;;  %v5106_v11 = vor.u32 %v5980_v4, %v5103_v21  ;;  %v5063_v16 = vld [vmem:[#allocation9 + $0x1b0] sm:$0xf0]  ;;  %1636 = vmatpush.bf16.msra.mxu2 %v5098_v35  ;;  %v4943_v35 = vld [vmem:[#allocation9 + $0xb8] sm:$0xf0] }
 0x1d4   : > { %v2627_v46 = vmul.f32 %v7436_v36, %v7436_v36  ;;  %1610 = vmatpush.bf16.msrb.mxu1 %v4998_v15  ;;  %v5066_v17 = vor.u32 %v5971_v55, %v5063_v16  ;;  %v5071_v15 = vld [vmem:[#allocation9 + $0x1b8] sm:$0xf0]  ;;  %v4946_v21 = vor.u32 %v5940_v48, %v4943_v35  ;;  %v6016_v48 = vld [vmem:[#allocation12 + $0xf8] sm:$0xff] }
 0x1d5   : > { %1550 = vmatpush.bf16.msrb.mxu3 %v5054_v38  ;;  %1694 = vmatpush.bf16.msra.mxu0 %v5106_v11  ;;  %v5074_v13 = vor.u32 %v5972_v26, %v5071_v15  ;;  %v5932_v11 = vld [vmem:[#allocation9 + $0x5c] sm:$0xf]  ;;  %v5923_v15 = vld [vmem:[#allocation9 + $0x14] sm:$0xf] }
 0x1d6   : > { %2639 = vadd.xlane.f32.xlu1 %v2627_v46  ;;  %v4926_v46 = vor.u32 %v5942_v9, %v4925_v6  ;;  %v5931_v6 = vld [vmem:[#allocation9 + $0x54] sm:$0xf]  ;;  %v4911_v9 = vld [vmem:[#allocation9 + $0x78] sm:$0xf0]  ;;  %v4874_v58 = vor.u32 %v5923_v15, %v4871_v33  ;;  %v6013_v15 = vld [vmem:[#allocation12 + $0xe0] sm:$0xff] }
 0x1d7   : > { %1637 = vmatpush.bf16.msra.mxu2 %v5066_v17  ;;  %v4914_v26 = vor.u32 %v5932_v11, %v4911_v9  ;;  %v4879_v41 = vld [vmem:[#allocation9 + $0x38] sm:$0xf0]  ;;  %v6000_v11 = vld [vmem:[#allocation12 + $0x78] sm:$0xff]  ;;  %v5998_v33 = vld [vmem:[#allocation12 + $0x68] sm:$0xff] }
 0x1d8   : > { %1611 = vmatpush.bf16.msrb.mxu1 %v4966_v27  ;;  %v5039_v27 = vld [vmem:[#allocation9 + $0x178] sm:$0xf0] }
 0x1d9   : > { %1551 = vmatpush.bf16.msrb.mxu3 %v5022_v42  ;;  %1695 = vmatpush.bf16.msra.mxu0 %v5074_v13  ;;  %v5955_v42 = vld [vmem:[#allocation9 + $0x114] sm:$0xf]  ;;  %v5924_v13 = vld [vmem:[#allocation9 + $0x1c] sm:$0xf] }
 0x1da   : > { %v5987_v9 = vld [vmem:[#allocation12 + $0x10] sm:$0xff] }
 0x1db   : > { %1638 = vmatpush.bf16.msra.mxu2 %v5034_v37 }
 0x1dc   : > { %v2604_v34 = vpop.xlane.xlu0 %2603  ;;  %1612 = vmatpush.bf16.msrb.mxu1 %v4934_v40 }
 0x1dd   : > { %v2613_v12 = vmul.f32 %v2604_v34, %v7141_v14  ;;  %1552 = vmatpush.bf16.msrb.mxu3 %v4990_v54  ;;  %v5926_v34 = vld [vmem:[#allocation9 + $0x24] sm:$0xf0]  ;;  %v5010_v54 = vor.u32 %v5956_v57, %v5007_v51  ;;  %v5005_v57 = vld [vmem:[#allocation9 + $0x118] sm:$0xf] }
 0x1de   : > { %v5960_v51 = vld [vmem:[#allocation9 + $0x134] sm:$0xf0] }
 0x1df   : > { %v7455_v8 = vsub.f32 %v7360_v3, %v2613_v12  ;;  %v5927_v3 = vld [vmem:[#allocation9 + $0x2c] sm:$0xf0] }
 0x1e0   : > { %v7445_v22 = vpop.xlane.xlu1 %2631  ;;  %1613 = vmatpush.bf16.msrb.mxu1 %v4902_v20  ;;  %v4870_v56 = vor.u32 %v5927_v3, %v4869_v18  ;;  %v5947_v3 = vld [vmem:[#allocation9 + $0xd4] sm:$0xf] }
 0x1e1   : > { %v2629_v19 = vmul.f32 %v7455_v8, %v7455_v8  ;;  %1553 = vmatpush.bf16.msrb.mxu3 %v4958_v0  ;;  %v5939_v0 = vld [vmem:[#allocation9 + $0x94] sm:$0xf] }
 0x1e3   : > { %2643 = vadd.xlane.f32.xlu0 %v2629_v19  ;;  %v5948_v19 = vld [vmem:[#allocation9 + $0xdc] sm:$0xf] }
 0x1e4   : > { %1614 = vmatpush.bf16.msrb.mxu1 %v4870_v56  ;;  %v4967_v56 = vld [vmem:[#allocation9 + $0xf0] sm:$0xf0]  ;;  %v4978_v60 = vor.u32 %v5948_v19, %v4975_v63  ;;  %v5944_v19 = vld [vmem:[#allocation9 + $0xb4] sm:$0xf0] }
 0x1e5   : > { %1554 = vmatpush.bf16.msrb.mxu3 %v4926_v46  ;;  %v4970_v62 = vor.u32 %v5947_v3, %v4967_v56  ;;  %v4941_v56 = vld [vmem:[#allocation9 + $0x98] sm:$0xf] }
 0x1e6   : > { %v4942_v63 = vor.u32 %v5944_v19, %v4941_v56 }
 0x1e8   : > { %v2606_v31 = vpop.xlane.xlu1 %2605 }
 0x1e9   : > { %v2614_v45 = vmul.f32 %v2606_v31, %v7141_v14  ;;  %v4999_v31 = vld [vmem:[#allocation9 + $0x130] sm:$0xf0]  ;;  %1555 = vmatpush.bf16.msrb.mxu3 %v4894_v29  ;;  %v5984_v29 = vld [vmem:[#allocation9 + $0x1f4] sm:$0xf0] }
 0x1ea   : > { %v5002_v30 = vor.u32 %v5955_v42, %v4999_v31  ;;  %v5037_v42 = vld [vmem:[#allocation9 + $0x158] sm:$0xf] }
 0x1eb   : > { %v7452_v49 = vsub.f32 %v7393_v50, %v2614_v45  ;;  %v4862_v45 = vor.u32 %v5926_v34, %v4861_v32  ;;  %v5069_v32 = vld [vmem:[#allocation9 + $0x198] sm:$0xf] }
 0x1ec   : > { %1639 = vmatpush.bf16.msra.mxu2 %v5002_v30  ;;  %v5976_v34 = vld [vmem:[#allocation9 + $0x1b4] sm:$0xf0]  ;;  %v5006_v30 = vor.u32 %v5960_v51, %v5005_v57 }
 0x1ed   : > { %v2630_v50 = vmul.f32 %v7452_v49, %v7452_v49  ;;  %1556 = vmatpush.bf16.msrb.mxu3 %v4862_v45  ;;  %v5968_v31 = vld [vmem:[#allocation9 + $0x174] sm:$0xf0] }
 0x1ee   : > { %v1065_v25 = vpop.f32.mrf.mxu0  ;;  %v5038_v45 = vor.u32 %v5968_v31, %v5037_v42  ;;  %v7530_v42 = vld [vmem:[#allocation10] sm:$0xff] }
 0x1ef   : > { %v7458_v5 = vadd.f32 %v7449_v47, %v1065_v25  ;;  %2645 = vadd.xlane.f32.xlu1 %v2630_v50  ;;  %v5964_v25 = vld [vmem:[#allocation9 + $0x15c] sm:$0xf]  ;;  %v7537_v57 = vperm.slane %v7530_v42, 3  ;;  %v7542_v56 = vperm.slane %v7530_v42, 1 }
 0x1f0   : > { %v5042_v39 = vor.u32 %v5964_v25, %v5039_v27  ;;  %1640 = vmatpush.bf16.msra.mxu2 %v4970_v62  ;;  %v4882_v25 = vor.u32 %v5924_v13, %v4879_v41  ;;  %v5101_v27 = vld [vmem:[#allocation9 + $0x1d8] sm:$0xf]  ;;  %v5989_v62 = vld [vmem:[#allocation12 + $0x20] sm:$0xff]  ;;  %v6012_v13 = vld [vmem:[#allocation12 + $0xd8] sm:$0xff] }
 0x1f1   : > { %v5102_v37 = vor.u32 %v5984_v29, %v5101_v27  ;;  %v5997_v41 = vld [vmem:[#allocation12 + $0x60] sm:$0xff]  ;;  %v6010_v27 = vld [vmem:[#allocation12 + $0xc8] sm:$0xff]  ;;  %v5995_v29 = vld [vmem:[#allocation12 + $0x50] sm:$0xff] }
 0x1f2   : > { %1696 = vmatpush.bf16.msra.mxu0 %v5042_v39  ;;  %v5070_v39 = vor.u32 %v5976_v34, %v5069_v32  ;;  %v5994_v32 = vld [vmem:[#allocation12 + $0x48] sm:$0xff]  ;;  %v6024_v34 = vld [vmem:[#allocation12 + $0x138] sm:$0xff] }
 0x1f6   : > { %v1067_v53 = vpop.f32.mrf.mxu0  ;;  %1697 = vmatpush.bf16.msra.mxu0 %v5010_v54  ;;  %v4973_v54 = vld [vmem:[#allocation9 + $0xd8] sm:$0xf] }
 0x1f7   : > { %v7461_v59 = vadd.f32 %v7449_v47, %v1067_v53 }
 0x1f9   : > { %v7467_v28 = vpack.c.bf16 %v7461_v59, %v7458_v5 }
 0x1fa   : > { %1698 = vmatpush.bf16.msra.mxu0 %v4978_v60  ;;  %v5988_v60 = vld [vmem:[#allocation12 + $0x18] sm:$0xff] }
 0x1fb   : > { %1499 = vmatmul.bf16.vlgmr.msra.gmra.mxu1 %v7467_v28  ;;  %1528 = vmatmul.bf16.vlgmr.msrb.gmra.mxu2 %v7467_v28 }
 0x1fc   : > { %1586 = vmatmul.bf16.vlgmr.msrb.gmra.mxu0 %v7467_v28  ;;  %v1075_v2 = vpop.f32.mrf.mxu2 }
 0x1fd   : > { %v7475_v1 = vadd.f32 %v7449_v47, %v1075_v2  ;;  %v4935_v2 = vld [vmem:[#allocation9 + $0xb0] sm:$0xf0] }
 0x1fe   : > { %v1070_v10 = vpop.f32.mrf.mxu0  ;;  %v4938_v4 = vor.u32 %v5939_v0, %v4935_v2  ;;  %1699 = vmatpush.bf16.msra.mxu0 %v4946_v21  ;;  %v4909_v0 = vld [vmem:[#allocation9 + $0x58] sm:$0xf] }
 0x1ff   : > { %v7481_v53 = vadd.f32 %v7449_v47, %v1070_v10  ;;  %v4903_v10 = vld [vmem:[#allocation9 + $0x70] sm:$0xf0]  ;;  %v5936_v2 = vld [vmem:[#allocation9 + $0x74] sm:$0xf0] }
 0x200   : > { %1641 = vmatpush.bf16.msra.mxu2 %v4938_v4  ;;  %v4906_v16 = vor.u32 %v5931_v6, %v4903_v10  ;;  %v4910_v35 = vor.u32 %v5936_v2, %v4909_v0  ;;  %v4877_v4 = vld [vmem:[#allocation9 + $0x18] sm:$0xf] }
 0x201   : > { %v5928_v21 = vld [vmem:[#allocation9 + $0x34] sm:$0xf0] }
 0x202   : > { %1700 = vmatpush.bf16.msra.mxu0 %v4914_v26  ;;  %v4878_v6 = vor.u32 %v5928_v21, %v4877_v4  ;;  %v6015_v10 = vld [vmem:[#allocation12 + $0xf0] sm:$0xff]  ;;  %v5986_v26 = vld [vmem:[#allocation12 + $0x8] sm:$0xff] }
 0x203   : > { %v6007_v0 = vld [vmem:[#allocation12 + $0xb0] sm:$0xff] }
 0x204   : > { %v1077_v38 = vpop.f32.mrf.mxu2  ;;  %1642 = vmatpush.bf16.msra.mxu2 %v4906_v16  ;;  %v5999_v16 = vld [vmem:[#allocation12 + $0x70] sm:$0xff] }
 0x205   : > { %v7478_v40 = vadd.f32 %v7449_v47, %v1077_v38  ;;  %v5991_v38 = vld [vmem:[#allocation12 + $0x30] sm:$0xff] }
 0x206   : > { %v1072_v12 = vpop.f32.mrf.mxu0  ;;  %1701 = vmatpush.bf16.msra.mxu0 %v4882_v25  ;;  %v5996_v25 = vld [vmem:[#allocation12 + $0x58] sm:$0xff] }
 0x207   : > { %v7485_v20 = vpack.c.bf16 %v7478_v40, %v7475_v1  ;;  %v7488_v23 = vadd.f32 %v7449_v47, %v1072_v12  ;;  %v5990_v12 = vld [vmem:[#allocation12 + $0x28] sm:$0xff] }
 0x208   : > { %1643 = vmatpush.bf16.msra.mxu2 %v4874_v58  ;;  %v6011_v58 = vld [vmem:[#allocation12 + $0xd0] sm:$0xff] }
 0x209   : > { %v7492_v50 = vpack.c.bf16 %v7488_v23, %v7481_v53  ;;  %1509 = vmatmul.bf16.vlgmr.msra.gmra.mxu3 %v7485_v20 }
 0x20a   : > { %1665 = vmatpush.bf16.msra.mxu3 %v5102_v37  ;;  %2422 = vmatpush.bf16.msrb.mxu0 %v6016_v48  ;;  %v6009_v37 = vld [vmem:[#allocation12 + $0xc0] sm:$0xff] }
 0x20b   : > { %1504 = vmatmul.bf16.gmra.mxu1 %v7492_v50  ;;  %1533 = vmatmul.bf16.gmra.mxu2 %v7492_v50 }
 0x20c   : > { %1591 = vmatmul.bf16.gmra.mxu0 %v7492_v50  ;;  %v1080_v18 = vpop.f32.mrf.mxu2  ;;  %2364 = vmatpush.bf16.msrb.mxu2 %v6000_v11  ;;  %v6006_v11 = vld [vmem:[#allocation12 + $0xa8] sm:$0xff] }
 0x20d   : > { %v7499_v46 = vadd.f32 %v7449_v47, %v1080_v18  ;;  %v5952_v18 = vld [vmem:[#allocation9 + $0xf4] sm:$0xf0] }
 0x20e   : > { %1666 = vmatpush.bf16.msra.mxu3 %v5070_v39  ;;  %v4974_v3 = vor.u32 %v5952_v18, %v4973_v54  ;;  %2423 = vmatpush.bf16.msrb.mxu0 %v6015_v10  ;;  %v6023_v39 = vld [vmem:[#allocation12 + $0x130] sm:$0xff] }
 0x210   : > { %2365 = vmatpush.bf16.msrb.mxu2 %v5999_v16 }
 0x212   : > { %1667 = vmatpush.bf16.msra.mxu3 %v5038_v45  ;;  %v6022_v45 = vld [vmem:[#allocation12 + $0x128] sm:$0xff] }
 0x214   : > { %v1082_v55 = vpop.f32.mrf.mxu2  ;;  %2366 = vmatpush.bf16.msrb.mxu2 %v5998_v33  ;;  %v6020_v33 = vld [vmem:[#allocation12 + $0x118] sm:$0xff] }
 0x215   : > { %v7502_v17 = vadd.f32 %v7449_v47, %v1082_v55  ;;  %v5992_v47 = vld [vmem:[#allocation12 + $0x38] sm:$0xff]  ;;  %v6014_v55 = vld [vmem:[#allocation12 + $0xe8] sm:$0xff] }
 0x216   : > { %2335 = vmatpush.bf16.msra.mxu1 %v5992_v47  ;;  %1668 = vmatpush.bf16.msra.mxu3 %v5006_v30  ;;  %v5985_v47 = vld [vmem:[#allocation12] sm:$0xff]  ;;  %v6008_v30 = vld [vmem:[#allocation12 + $0xb8] sm:$0xff] }
 0x217   : > { %v7506_v24 = vpack.c.bf16 %v7502_v17, %v7499_v46  ;;  %2424 = vmatpush.bf16.msrb.mxu0 %v6014_v55 }
 0x218   : > { %2367 = vmatpush.bf16.msrb.mxu2 %v5997_v41  ;;  %v6048_v41 = vld [vmem:[#allocation12 + $0x1f8] sm:$0xff] }
 0x219   : > { %1514 = vmatmul.bf16.gmra.mxu3 %v7506_v24 }
 0x21a   : > { %2336 = vmatpush.bf16.msra.mxu1 %v5991_v38  ;;  %1669 = vmatpush.bf16.msra.mxu3 %v4974_v3  ;;  %v5993_v38 = vld [vmem:[#allocation12 + $0x40] sm:$0xff] }
 0x21b   : > { %1538 = vmatmul.bf16.gmra.mxu2 %v7485_v20  ;;  %1615 = vmatmul.bf16.vlgmr.msrb.gmra.mxu1 %v7467_v28 }
 0x21c   : > { %1596 = vmatmul.bf16.gmra.mxu0 %v7485_v20  ;;  %2368 = vmatpush.bf16.msrb.mxu2 %v5996_v25 }
 0x21d   : > { %2425 = vmatpush.bf16.msrb.mxu0 %v6013_v15 }
 0x21e   : > { %2337 = vmatpush.bf16.msra.mxu1 %v5990_v12  ;;  %1670 = vmatpush.bf16.msra.mxu3 %v4942_v63 }
 0x220   : > { %2369 = vmatpush.bf16.msrb.mxu2 %v5995_v29  ;;  %v6047_v29 = vld [vmem:[#allocation12 + $0x1f0] sm:$0xff] }
 0x221   : > { %2426 = vmatpush.bf16.msrb.mxu0 %v6012_v13  ;;  %v6005_v13 = vld [vmem:[#allocation12 + $0xa0] sm:$0xff] }
 0x222   : > { %2338 = vmatpush.bf16.msra.mxu1 %v5989_v62  ;;  %1671 = vmatpush.bf16.msra.mxu3 %v4910_v35  ;;  %v6021_v62 = vld [vmem:[#allocation12 + $0x120] sm:$0xff] }
 0x224   : > { %2370 = vmatpush.bf16.msrb.mxu2 %v5994_v32 }
 0x225   : > { %2427 = vmatpush.bf16.msrb.mxu0 %v6011_v58 }
 0x226   : > { %2339 = vmatpush.bf16.msra.mxu1 %v5988_v60  ;;  %1672 = vmatpush.bf16.msra.mxu3 %v4878_v6 }
 0x228   : > { %2371 = vmatpush.bf16.msrb.mxu2 %v5993_v38 }
 0x229   : > { %1557 = vmatmul.bf16.vlgmr.msrb.gmra.mxu3 %v7467_v28  ;;  %2428 = vmatpush.bf16.msrb.mxu0 %v6010_v27  ;;  %v6004_v27 = vld [vmem:[#allocation12 + $0x98] sm:$0xff] }
 0x22a   : > { %2340 = vmatpush.bf16.msra.mxu1 %v5987_v9  ;;  %2393 = vmatpush.bf16.msrb.mxu3 %v6008_v30 }
 0x22b   : > { %1543 = vmatmul.bf16.gmra.mxu2 %v7506_v24  ;;  %1620 = vmatmul.bf16.gmra.mxu1 %v7492_v50 }
 0x22c   : > { %1601 = vmatmul.bf16.gmra.mxu0 %v7506_v24 }
 0x22d   : > { %2429 = vmatpush.bf16.msrb.mxu0 %v6009_v37 }
 0x22e   : > { %2341 = vmatpush.bf16.msra.mxu1 %v5986_v26  ;;  %2394 = vmatpush.bf16.msrb.mxu3 %v6007_v0 }
 0x232   : > { %2342 = vmatpush.bf16.msra.mxu1 %v5985_v47  ;;  %2395 = vmatpush.bf16.msrb.mxu3 %v6006_v11  ;;  %v6018_v11 = vld [vmem:[#allocation12 + $0x108] sm:$0xff] }
 0x236   : > { %2451 = vmatpush.bf16.msrb.mxu1 %v6024_v34  ;;  %2396 = vmatpush.bf16.msrb.mxu3 %v6005_v13 }
 0x239   : > { %1562 = vmatmul.bf16.gmra.mxu3 %v7492_v50 }
 0x23a   : > { %2452 = vmatpush.bf16.msrb.mxu1 %v6023_v39  ;;  %2397 = vmatpush.bf16.msrb.mxu3 %v6004_v27 }
 0x23b   : > { %1625 = vmatmul.bf16.gmra.mxu1 %v7485_v20  ;;  %1644 = vmatmul.bf16.vlgmr.msra.gmra.mxu2 %v7467_v28 }
 0x23c   : > { %1702 = vmatmul.bf16.vlgmr.msra.gmra.mxu0 %v7467_v28 }
 0x23d   : > { %2538 = vmatpush.bf16.msra.mxu0 %v6048_v41  ;;  %v6043_v41 = vld [vmem:[#allocation12 + $0x1d0] sm:$0xff] }
 0x23e   : > { %2453 = vmatpush.bf16.msrb.mxu1 %v6022_v45  ;;  %v6003_v45 = vld [vmem:[#allocation12 + $0x90] sm:$0xff] }
 0x23f   : > { %2398 = vmatpush.bf16.msrb.mxu3 %v6003_v45  ;;  %v6027_v45 = vld [vmem:[#allocation12 + $0x150] sm:$0xff] }
 0x241   : > { %2539 = vmatpush.bf16.msra.mxu0 %v6047_v29 }
 0x242   : > { %2454 = vmatpush.bf16.msrb.mxu1 %v6021_v62 }
 0x246   : > { %2455 = vmatpush.bf16.msrb.mxu1 %v6020_v33 }
 0x249   : > { %1567 = vmatmul.bf16.gmra.mxu3 %v7485_v20 }
 0x24b   : > { %1630 = vmatmul.bf16.gmra.mxu1 %v7506_v24  ;;  %1649 = vmatmul.bf16.gmra.mxu2 %v7492_v50 }
 0x24c   : > { %1707 = vmatmul.bf16.gmra.mxu0 %v7492_v50 }
 0x259   : > { %1572 = vmatmul.bf16.gmra.mxu3 %v7506_v24 }
 0x25b   : > { %1654 = vmatmul.bf16.gmra.mxu2 %v7485_v20 }
 0x25c   : > { %1712 = vmatmul.bf16.gmra.mxu0 %v7485_v20 }
 0x269   : > { %1673 = vmatmul.bf16.vlgmr.msra.gmra.mxu3 %v7467_v28  ;;  %v7534_v28 = vperm.slane %v7530_v42, 0 }
 0x26b   : > { %1659 = vmatmul.bf16.gmra.mxu2 %v7506_v24 }
 0x26c   : > { %1717 = vmatmul.bf16.gmra.mxu0 %v7506_v24 }
 0x278   : > { %v1500_v31 = vpop.f32.mrf.mxu1 }
 0x279   : > { %v1587_v12 = vpop.f32.mrf.mxu0  ;;  %1678 = vmatmul.bf16.gmra.mxu3 %v7492_v50  ;;  %v1501_v54 = vadd.f32 %v1500_v31, %v7534_v28  ;;  %v6019_v31 = vld [vmem:[#allocation12 + $0x110] sm:$0xff] }
 0x27a   : > { %v1588_v18 = vadd.f32 %v1587_v12, %v7537_v57  ;;  %2456 = vmatpush.bf16.msrb.mxu1 %v6019_v31 }
 0x27b   : > { %v1723_v2 = vmax.f32 %v1501_v54, 0.0 }
 0x27c   : > { %v1726_v48 = vmax.f32 %v1588_v18, 0.0 }
 0x27e   : > { %v1529_v51 = vpop.f32.mrf.mxu2  ;;  %2457 = vmatpush.bf16.msrb.mxu1 %v6018_v11 }
 0x27f   : > { %v1530_v4 = vadd.f32 %v1529_v51, %v7542_v56  ;;  %v6046_v51 = vld [vmem:[#allocation12 + $0x1e8] sm:$0xff] }
 0x280   : > { %v1502_v3 = vpop.f32.mrf.mxu1  ;;  %2540 = vmatpush.bf16.msra.mxu0 %v6046_v51 }
 0x281   : > { %v1503_v50 = vadd.f32 %v1502_v3, %v7534_v28  ;;  %v1589_v19 = vpop.f32.mrf.mxu0  ;;  %v1724_v16 = vmax.f32 %v1530_v4, 0.0  ;;  %v6030_v4 = vld [vmem:[#allocation12 + $0x168] sm:$0xff] }
 0x282   : > { %v1590_v63 = vadd.f32 %v1589_v19, %v7537_v57  ;;  %v6031_v19 = vld [vmem:[#allocation12 + $0x170] sm:$0xff] }
 0x283   : > { %v1731_v60 = vmax.f32 %v1503_v50, 0.0 }
 0x284   : > { %v1734_v35 = vmax.f32 %v1590_v63, 0.0 }
 0x285   : > { %v1787_v21 = vpack.c.bf16 %v1731_v60, %v1723_v2  ;;  %v6002_v60 = vld [vmem:[#allocation12 + $0x88] sm:$0xff] }
 0x286   : > { %v1790_v6 = vpack.c.bf16 %v1734_v35, %v1726_v48  ;;  %v1531_v10 = vpop.f32.mrf.mxu2  ;;  %v6045_v48 = vld [vmem:[#allocation12 + $0x1e0] sm:$0xff]  ;;  %2399 = vmatpush.bf16.msrb.mxu3 %v6002_v60 }
 0x287   : > { %v1532_v9 = vadd.f32 %v1531_v10, %v7542_v56  ;;  %2343 = vmatmul.bf16.vlgmr.msra.gmra.mxu1 %v1787_v21  ;;  %2541 = vmatpush.bf16.msra.mxu0 %v6045_v48  ;;  %v6025_v48 = vld [vmem:[#allocation12 + $0x140] sm:$0xff] }
 0x288   : > { %2430 = vmatmul.bf16.vlgmr.msrb.gmra.mxu0 %v1790_v6  ;;  %v1505_v55 = vpop.f32.mrf.mxu1 }
 0x289   : > { %v1732_v26 = vmax.f32 %v1532_v9, 0.0  ;;  %v1592_v15 = vpop.f32.mrf.mxu0  ;;  %1683 = vmatmul.bf16.gmra.mxu3 %v7485_v20  ;;  %v1506_v37 = vadd.f32 %v1505_v55, %v7534_v28  ;;  %v6032_v20 = vld [vmem:[#allocation12 + $0x178] sm:$0xff]  ;;  %v6001_v9 = vld [vmem:[#allocation12 + $0x80] sm:$0xff] }
 0x28a   : > { %v1593_v32 = vadd.f32 %v1592_v15, %v7537_v57  ;;  %2480 = vmatpush.bf16.msra.mxu2 %v6032_v20  ;;  %v6044_v55 = vld [vmem:[#allocation12 + $0x1d8] sm:$0xff]  ;;  %2400 = vmatpush.bf16.msrb.mxu3 %v6001_v9  ;;  %v6029_v15 = vld [vmem:[#allocation12 + $0x160] sm:$0xff] }
 0x28b   : > { %v1788_v58 = vpack.c.bf16 %v1732_v26, %v1724_v16  ;;  %v1739_v30 = vmax.f32 %v1506_v37, 0.0  ;;  %2542 = vmatpush.bf16.msra.mxu0 %v6044_v55  ;;  %v6017_v37 = vld [vmem:[#allocation12 + $0x100] sm:$0xff] }
 0x28c   : > { %v1510_v25 = vpop.f32.mrf.mxu3  ;;  %v1742_v18 = vmax.f32 %v1593_v32, 0.0  ;;  %2458 = vmatpush.bf16.msrb.mxu1 %v6017_v37 }
 0x28d   : > { %2372 = vmatmul.bf16.vlgmr.msrb.gmra.mxu2 %v1788_v58  ;;  %v1511_v58 = vadd.f32 %v1510_v25, %v7534_v28 }
 0x28e   : > { %v1534_v47 = vpop.f32.mrf.mxu2  ;;  %2481 = vmatpush.bf16.msra.mxu2 %v6031_v19 }
 0x28f   : > { %v1535_v62 = vadd.f32 %v1534_v47, %v7542_v56  ;;  %v6028_v47 = vld [vmem:[#allocation12 + $0x158] sm:$0xff]  ;;  %2543 = vmatpush.bf16.msra.mxu0 %v6043_v41  ;;  %v1755_v20 = vmax.f32 %v1511_v58, 0.0 }
 0x290   : > { %v1507_v34 = vpop.f32.mrf.mxu1 }
 0x291   : > { %v1508_v38 = vadd.f32 %v1507_v34, %v7534_v28  ;;  %v1594_v39 = vpop.f32.mrf.mxu0  ;;  %v1740_v21 = vmax.f32 %v1535_v62, 0.0  ;;  %v6042_v34 = vld [vmem:[#allocation12 + $0x1c8] sm:$0xff] }
 0x292   : > { %v1595_v12 = vadd.f32 %v1594_v39, %v7537_v57  ;;  %2482 = vmatpush.bf16.msra.mxu2 %v6030_v4 }
 0x293   : > { %v1747_v54 = vmax.f32 %v1508_v38, 0.0  ;;  %2544 = vmatpush.bf16.msra.mxu0 %v6042_v34 }
 0x294   : > { %v1750_v3 = vmax.f32 %v1595_v12, 0.0  ;;  %v1512_v50 = vpop.f32.mrf.mxu3 }
 0x295   : > { %v1795_v63 = vpack.c.bf16 %v1747_v54, %v1739_v30  ;;  %v1513_v33 = vadd.f32 %v1512_v50, %v7534_v28  ;;  %v6026_v50 = vld [vmem:[#allocation12 + $0x148] sm:$0xff] }
 0x296   : > { %v1536_v0 = vpop.f32.mrf.mxu2  ;;  %v1798_v2 = vpack.c.bf16 %v1750_v3, %v1742_v18  ;;  %2483 = vmatpush.bf16.msra.mxu2 %v6029_v15  ;;  %v6041_v18 = vld [vmem:[#allocation12 + $0x1c0] sm:$0xff] }
 0x297   : > { %v1537_v35 = vadd.f32 %v1536_v0, %v7542_v56  ;;  %2348 = vmatmul.bf16.gmra.mxu1 %v1795_v63  ;;  %v1763_v27 = vmax.f32 %v1513_v33, 0.0  ;;  %2545 = vmatpush.bf16.msra.mxu0 %v6041_v18 }
 0x298   : > { %2435 = vmatmul.bf16.gmra.mxu0 %v1798_v2  ;;  %v7560_v39 = vpop.f32.mrf.mxu1  ;;  %v6056_v2 = vld [vmem:[#allocation6 + $0x38] sm:$0xff] }
 0x299   : > { %v1748_v6 = vmax.f32 %v1537_v35, 0.0  ;;  %v1597_v10 = vpop.f32.mrf.mxu0  ;;  %1688 = vmatmul.bf16.gmra.mxu3 %v7506_v24  ;;  %v1803_v51 = vpack.c.bf16 %v1763_v27, %v1755_v20  ;;  %2847 = vmatpush.bf16.msra.mxu1 %v6056_v2  ;;  %v6053_v2 = vld [vmem:[#allocation6 + $0x20] sm:$0xff] }
 0x29a   : > { %v1598_v24 = vadd.f32 %v1597_v10, %v7537_v57  ;;  %2484 = vmatpush.bf16.msra.mxu2 %v6028_v47  ;;  %v7567_v10 = vperm.slane %v7530_v42, 2 }
 0x29b   : > { %v1796_v16 = vpack.c.bf16 %v1748_v6, %v1740_v21 }
 0x29c   : > { %v1515_v26 = vpop.f32.mrf.mxu3  ;;  %v1758_v38 = vmax.f32 %v1598_v24, 0.0 }
 0x29d   : > { %2377 = vmatmul.bf16.gmra.mxu2 %v1796_v16  ;;  %v1516_v6 = vadd.f32 %v1515_v26, %v7534_v28  ;;  %v6055_v16 = vld [vmem:[#allocation6 + $0x30] sm:$0xff] }
 0x29e   : > { %v1539_v13 = vpop.f32.mrf.mxu2  ;;  %2485 = vmatpush.bf16.msra.mxu2 %v6027_v45  ;;  %2848 = vmatpush.bf16.msra.mxu1 %v6055_v16  ;;  %v6054_v45 = vld [vmem:[#allocation6 + $0x28] sm:$0xff] }
 0x29f   : > { %v1540_v25 = vadd.f32 %v1539_v13, %v7542_v56  ;;  %v1771_v33 = vmax.f32 %v1516_v6, 0.0 }
 0x2a0   : > { %v1618_v4 = vpop.f32.mrf.mxu1 }
 0x2a1   : > { %v1599_v29 = vpop.f32.mrf.mxu0  ;;  %v1756_v19 = vmax.f32 %v1540_v25, 0.0  ;;  %v7578_v25 = vperm.slane %v7530_v42, 4 }
 0x2a2   : > { %v1600_v32 = vadd.f32 %v1599_v29, %v7537_v57  ;;  %2486 = vmatpush.bf16.msra.mxu2 %v6026_v50  ;;  %2849 = vmatpush.bf16.msra.mxu1 %v6054_v45 }
 0x2a3   : > { %v1617_v50 = vadd.f32 %v7560_v39, %v7578_v25 }
 0x2a4   : > { %v1766_v31 = vmax.f32 %v1600_v32, 0.0  ;;  %v1517_v12 = vpop.f32.mrf.mxu3 }
 0x2a5   : > { %v1518_v35 = vadd.f32 %v1517_v12, %v7534_v28 }
 0x2a6   : > { %v1541_v30 = vpop.f32.mrf.mxu2  ;;  %v1806_v54 = vpack.c.bf16 %v1766_v31, %v1758_v38  ;;  %2487 = vmatpush.bf16.msra.mxu2 %v6025_v48  ;;  %2850 = vmatpush.bf16.msra.mxu1 %v6053_v2  ;;  %v6035_v2 = vld [vmem:[#allocation12 + $0x190] sm:$0xff] }
 0x2a7   : > { %v1542_v3 = vadd.f32 %v1541_v30, %v7542_v56  ;;  %2353 = vmatmul.bf16.gmra.mxu1 %v1803_v51  ;;  %v1779_v9 = vmax.f32 %v1518_v35, 0.0  ;;  %v7581_v30 = vperm.slane %v7530_v42, 7  ;;  %v6039_v35 = vld [vmem:[#allocation12 + $0x1b0] sm:$0xff] }
 0x2a8   : > { %2440 = vmatmul.bf16.gmra.mxu0 %v1806_v54 }
 0x2a9   : > { %v1764_v62 = vmax.f32 %v1542_v3, 0.0  ;;  %v1602_v63 = vpop.f32.mrf.mxu0  ;;  %v1811_v26 = vpack.c.bf16 %v1779_v9, %v1771_v33  ;;  %v6040_v3 = vld [vmem:[#allocation12 + $0x1b8] sm:$0xff] }
 0x2aa   : > { %v1603_v11 = vadd.f32 %v1602_v63, %v7537_v57  ;;  %2509 = vmatpush.bf16.msra.mxu3 %v6040_v3  ;;  %v7588_v63 = vperm.slane %v7530_v42, 5 }
 0x2ab   : > { %v1804_v0 = vpack.c.bf16 %v1764_v62, %v1756_v19 }
 0x2ac   : > { %v1558_v60 = vpop.f32.mrf.mxu3  ;;  %v1774_v41 = vmax.f32 %v1603_v11, 0.0 }
 0x2ad   : > { %2382 = vmatmul.bf16.gmra.mxu2 %v1804_v0  ;;  %v1559_v13 = vadd.f32 %v1558_v60, %v7567_v10 }
 0x2ae   : > { %v1544_v21 = vpop.f32.mrf.mxu2  ;;  %2510 = vmatpush.bf16.msra.mxu3 %v6039_v35 }
 0x2af   : > { %v1545_v47 = vadd.f32 %v1544_v21, %v7542_v56  ;;  %v1725_v37 = vmax.f32 %v1559_v13, 0.0  ;;  %v6038_v13 = vld [vmem:[#allocation12 + $0x1a8] sm:$0xff] }
 0x2b1   : > { %v1604_v55 = vpop.f32.mrf.mxu0  ;;  %v1772_v20 = vmax.f32 %v1545_v47, 0.0 }
 0x2b2   : > { %v1605_v15 = vadd.f32 %v1604_v55, %v7537_v57  ;;  %v7575_v57 = vpop.f32.mrf.mxu1  ;;  %2511 = vmatpush.bf16.msra.mxu3 %v6038_v13 }
 0x2b4   : > { %v1782_v58 = vmax.f32 %v1605_v15, 0.0  ;;  %v1560_v24 = vpop.f32.mrf.mxu3 }
 0x2b5   : > { %v1561_v28 = vadd.f32 %v1560_v24, %v7567_v10 }
 0x2b6   : > { %v1546_v27 = vpop.f32.mrf.mxu2  ;;  %v1814_v29 = vpack.c.bf16 %v1782_v58, %v1774_v41 }
 0x2b7   : > { %v1733_v32 = vmax.f32 %v1561_v28, 0.0  ;;  %v1547_v34 = vadd.f32 %v1546_v27, %v7542_v56  ;;  %2358 = vmatmul.bf16.gmra.mxu1 %v1811_v26  ;;  %v1619_v56 = vadd.f32 %v1618_v4, %v7578_v25  ;;  %v1727_v4 = vmax.f32 %v1617_v50, 0.0 }
 0x2b8   : > { %2445 = vmatmul.bf16.gmra.mxu0 %v1814_v29  ;;  %v6052_v29 = vld [vmem:[#allocation6 + $0x18] sm:$0xff] }
 0x2b9   : > { %v1789_v38 = vpack.c.bf16 %v1733_v32, %v1725_v37  ;;  %v1780_v31 = vmax.f32 %v1547_v34, 0.0  ;;  %v1703_v12 = vpop.f32.mrf.mxu0  ;;  %v1735_v62 = vmax.f32 %v1619_v56, 0.0  ;;  %v6037_v37 = vld [vmem:[#allocation12 + $0x1a0] sm:$0xff]  ;;  %v2634_v32 = vpop.xlane.xlu2 %2633  ;;  %2851 = vmatpush.bf16.msra.mxu1 %v6052_v29  ;;  %v1622_v56 = vadd.f32 %v7575_v57, %v7578_v25 }
 0x2ba   : > { %v1704_v19 = vadd.f32 %v1703_v12, %v7581_v30  ;;  %v1623_v60 = vpop.f32.mrf.mxu1  ;;  %2512 = vmatpush.bf16.msra.mxu3 %v6037_v37  ;;  %v2647_v12 = vmul.f32 %v7445_v22, %v7141_v14 }
 0x2bb   : > { %2401 = vmatmul.bf16.vlgmr.msrb.gmra.mxu3 %v1789_v38  ;;  %v1812_v51 = vpack.c.bf16 %v1780_v31, %v1772_v20  ;;  %v1791_v9 = vpack.c.bf16 %v1735_v62, %v1727_v4  ;;  %v1624_v31 = vadd.f32 %v1623_v60, %v7578_v25  ;;  %v1743_v22 = vmax.f32 %v1622_v56, 0.0 }
 0x2bc   : > { %v1563_v54 = vpop.f32.mrf.mxu3  ;;  %v1730_v6 = vmax.f32 %v1704_v19, 0.0  ;;  %v6051_v19 = vld [vmem:[#allocation6 + $0x10] sm:$0xff]  ;;  %v7602_v62 = vadd.f32 1e-05, %v2647_v12 }
 0x2bd   : > { %2387 = vmatmul.bf16.gmra.mxu2 %v1812_v51  ;;  %v1564_v21 = vadd.f32 %v1563_v54, %v7567_v10  ;;  %v6036_v51 = vld [vmem:[#allocation12 + $0x198] sm:$0xff]  ;;  %v2648_v54 = vmul.f32 %v2634_v32, %v7141_v14  ;;  %v1751_v3 = vmax.f32 %v1624_v31, 0.0  ;;  %2852 = vmatpush.bf16.msra.mxu1 %v6051_v19  ;;  %v2638_v31 = vpop.xlane.xlu0 %2637 }
 0x2be   : > { %v1645_v18 = vpop.f32.mrf.mxu2  ;;  %2513 = vmatpush.bf16.msra.mxu3 %v6036_v51  ;;  %6433 = vrsqrt.f32 %v7602_v62  ;;  %v2650_v19 = vmul.f32 %v2638_v31, %v7141_v14  ;;  %vm2669_vm9 = vweird.f32 %v7602_v62 }
 0x2bf   : > { %v1646_v55 = vadd.f32 %v1645_v18, %v7588_v63  ;;  %v1741_v41 = vmax.f32 %v1564_v21, 0.0  ;;  %v7605_v60 = vadd.f32 1e-05, %v2648_v54  ;;  %v6049_v54 = vld [vmem:[#allocation6] sm:$0xff] }
 0x2c1   : > { %v1705_v0 = vpop.f32.mrf.mxu0  ;;  %v1728_v47 = vmax.f32 %v1646_v55, 0.0  ;;  %6435 = vrsqrt.f32 %v7605_v60  ;;  %vm2679_vm11 = vweird.f32 %v7605_v60 }
 0x2c2   : > { %v1706_v48 = vadd.f32 %v1705_v0, %v7581_v30  ;;  %v1626_v20 = vpop.f32.mrf.mxu1  ;;  %2514 = vmatpush.bf16.msra.mxu3 %v6035_v2 }
 0x2c3   : > { %v1627_v51 = vadd.f32 %v1626_v20, %v7578_v25 }
 0x2c4   : > { %v1738_v11 = vmax.f32 %v1706_v48, 0.0  ;;  %v1565_v39 = vpop.f32.mrf.mxu3  ;;  %v7613_v29 = vpop.eup %6433 }
 0x2c5   : > { %v1566_v16 = vadd.f32 %v1565_v39, %v7567_v10  ;;  %vm2670_vm10 = vweird.f32 %v7613_v29 }
 0x2c6   : > { %v1794_v15 = vpack.c.bf16 %v1738_v11, %v1730_v6  ;;  %v1647_v33 = vpop.f32.mrf.mxu2  ;;  %v1799_v11 = vpack.c.bf16 %v1751_v3, %v1743_v22  ;;  %vm7653_vm13 = vmor %vm2669_vm9, %vm2670_vm10 }
 0x2c7   : > { %v1749_v58 = vmax.f32 %v1566_v16, 0.0  ;;  %v1648_v24 = vadd.f32 %v1647_v33, %v7588_v63  ;;  %2459 = vmatmul.bf16.vlgmr.msrb.gmra.mxu1 %v1791_v9  ;;  %v6034_v16 = vld [vmem:[#allocation12 + $0x188] sm:$0xff]  ;;  %v7615_v32 = vpop.eup %6435 }
 0x2c8   : > { %2546 = vmatmul.bf16.vlgmr.msra.gmra.mxu0 %v1794_v15  ;;  %2515 = vmatpush.bf16.msra.mxu3 %v6034_v16  ;;  %v2674_v56 = vmul.f32 %v7615_v32, %v7605_v60  ;;  %vm2680_vm12 = vweird.f32 %v7615_v32 }
 0x2c9   : > { %v1736_v28 = vmax.f32 %v1648_v24, 0.0  ;;  %v1708_v26 = vpop.f32.mrf.mxu0  ;;  %v1797_v27 = vpack.c.bf16 %v1749_v58, %v1741_v41  ;;  %vm7660_vm14 = vmor %vm2679_vm11, %vm2680_vm12 }
 0x2ca   : > { %v1709_v18 = vadd.f32 %v1708_v26, %v7581_v30  ;;  %v1628_v39 = vpop.f32.mrf.mxu1  ;;  %v6033_v26 = vld [vmem:[#allocation12 + $0x180] sm:$0xff] }
 0x2cb   : > { %v1792_v34 = vpack.c.bf16 %v1736_v28, %v1728_v47  ;;  %2406 = vmatmul.bf16.gmra.mxu3 %v1797_v27  ;;  %v6050_v28 = vld [vmem:[#allocation6 + $0x8] sm:$0xff] }
 0x2cc   : > { %v1568_v38 = vpop.f32.mrf.mxu3  ;;  %v1746_v35 = vmax.f32 %v1709_v18, 0.0  ;;  %2853 = vmatpush.bf16.msra.mxu1 %v6050_v28  ;;  %2516 = vmatpush.bf16.msra.mxu3 %v6033_v26 }
 0x2cd   : > { %2488 = vmatmul.bf16.vlgmr.msra.gmra.mxu2 %v1792_v34  ;;  %v1569_v48 = vadd.f32 %v1568_v38, %v7567_v10  ;;  %v2636_v34 = vpop.xlane.xlu2 %2635  ;;  %v1629_v38 = vadd.f32 %v1628_v39, %v7578_v25  ;;  %v7632_v39 = vadd.f32 1e-05, %v2650_v19 }
 0x2ce   : > { %v1650_v45 = vpop.f32.mrf.mxu2  ;;  %v2649_v18 = vmul.f32 %v2636_v34, %v7141_v14 }
 0x2cf   : > { %v1651_v21 = vadd.f32 %v1650_v45, %v7588_v63  ;;  %v1757_v15 = vmax.f32 %v1569_v48, 0.0  ;;  %v2664_v45 = vmul.f32 %v7613_v29, %v7602_v62  ;;  %vm2699_vm1 = vweird.f32 %v7632_v39 }
 0x2d0   : > { %2854 = vmatpush.bf16.msra.mxu1 %v6049_v54 }
 0x2d1   : > { %v1710_v50 = vpop.f32.mrf.mxu0  ;;  %v1744_v41 = vmax.f32 %v1651_v21, 0.0  ;;  %v2665_v48 = vmul.f32 %v7613_v29, %v2664_v45  ;;  %v2640_v45 = vpop.xlane.xlu1 %2639 }
 0x2d2   : > { %v1711_v0 = vadd.f32 %v1710_v50, %v7581_v30  ;;  %v1631_v3 = vpop.f32.mrf.mxu1  ;;  %v2651_v60 = vmul.f32 %v2640_v45, %v7141_v14 }
 0x2d3   : > { %v1632_v62 = vadd.f32 %v1631_v3, %v7578_v25 }
 0x2d4   : > { %v1754_v4 = vmax.f32 %v1711_v0, 0.0  ;;  %v1570_v57 = vpop.f32.mrf.mxu3  ;;  %v1767_v0 = vmax.f32 %v1629_v38, 0.0 }
 0x2d5   : > { %v1571_v6 = vadd.f32 %v1570_v57, %v7567_v10  ;;  %v7630_v57 = vadd.f32 1e-05, %v2649_v18 }
 0x2d6   : > { %v1652_v9 = vpop.f32.mrf.mxu2  ;;  %v1802_v55 = vpack.c.bf16 %v1754_v4, %v1746_v35  ;;  %v1759_v35 = vmax.f32 %v1627_v51, 0.0  ;;  %v2675_v4 = vmul.f32 %v7615_v32, %v2674_v56  ;;  %v2642_v56 = vpop.xlane.xlu2 %2641 }
 0x2d7   : > { %v1765_v33 = vmax.f32 %v1571_v6, 0.0  ;;  %v1653_v13 = vadd.f32 %v1652_v9, %v7588_v63  ;;  %2464 = vmatmul.bf16.gmra.mxu1 %v1799_v11  ;;  %6437 = vrsqrt.f32 %v7630_v57  ;;  %vm2689_vm15 = vweird.f32 %v7630_v57 }
 0x2d8   : > { %2551 = vmatmul.bf16.gmra.mxu0 %v1802_v55  ;;  %v1807_v16 = vpack.c.bf16 %v1767_v0, %v1759_v35  ;;  %6439 = vrsqrt.f32 %v7632_v39  ;;  %v7651_v0 = vperm.slane %v7530_v42, 6 }
 0x2d9   : > { %v1752_v58 = vmax.f32 %v1653_v13, 0.0  ;;  %v1713_v24 = vpop.f32.mrf.mxu0  ;;  %v1805_v47 = vpack.c.bf16 %v1765_v33, %v1757_v15  ;;  %v2666_v13 = vmul.f32 0.5, %v2665_v48 }
 0x2da   : > { %v1714_v50 = vadd.f32 %v1713_v24, %v7581_v30 }
 0x2db   : > { %2411 = vmatmul.bf16.gmra.mxu3 %v1805_v47  ;;  %v1800_v27 = vpack.c.bf16 %v1752_v58, %v1744_v41  ;;  %v2676_v47 = vmul.f32 0.5, %v2675_v4  ;;  %v2667_v34 = vsub.f32 1.5, %v2666_v13 }
 0x2dc   : > { %v1573_v37 = vpop.f32.mrf.mxu3  ;;  %v1762_v21 = vmax.f32 %v1714_v50, 0.0 }
 0x2dd   : > { %2493 = vmatmul.bf16.gmra.mxu2 %v1800_v27  ;;  %v1574_v20 = vadd.f32 %v1573_v37, %v7567_v10  ;;  %v2677_v31 = vsub.f32 1.5, %v2676_v47  ;;  %v7642_v54 = vpop.eup %6437  ;;  %v2668_v19 = vmul.f32 %v7613_v29, %v2667_v34 }
 0x2de   : > { %v1655_v12 = vpop.f32.mrf.mxu2  ;;  %v7646_v50 = vpop.eup %6439  ;;  %v2684_v42 = vmul.f32 %v7642_v54, %v7630_v57  ;;  %vm2690_vm0 = vweird.f32 %v7642_v54 }
 0x2df   : > { %v1656_v9 = vadd.f32 %v1655_v12, %v7588_v63  ;;  %v1773_v41 = vmax.f32 %v1574_v20, 0.0  ;;  %v2652_v20 = vmul.f32 %v2642_v56, %v7141_v14  ;;  %v2694_v4 = vmul.f32 %v7646_v50, %v7632_v39  ;;  %vm7715_vm3 = vmor %vm2689_vm15, %vm2690_vm0 }
 0x2e0   : > { %vm2700_vm2 = vweird.f32 %v7646_v50 }
 0x2e1   : > { %v1715_v2 = vpop.f32.mrf.mxu0  ;;  %v1760_v28 = vmax.f32 %v1656_v9, 0.0  ;;  %v2695_v47 = vmul.f32 %v7646_v50, %v2694_v4  ;;  %vm7724_vm4 = vmor %vm2699_vm1, %vm2700_vm2  ;;  %vm2877_vm1 = vcmask 1047556  }
 0x2e2   : > { %v1716_v22 = vadd.f32 %v1715_v2, %v7581_v30 }
 0x2e4   : > { %v1770_v6 = vmax.f32 %v1716_v22, 0.0  ;;  %v1575_v11 = vpop.f32.mrf.mxu3  ;;  %v2678_v22 = vmul.f32 %v7615_v32, %v2677_v31 }
 0x2e5   : > { %v1576_v55 = vadd.f32 %v1575_v11, %v7567_v10  ;;  %v1633_v10 = vpop.f32.mrf.mxu1  ;;  %v1775_v11 = vmax.f32 %v1632_v62, 0.0  ;;  %v2646_v62 = vpop.xlane.xlu1 %2645 }
 0x2e6   : > { %v1657_v15 = vpop.f32.mrf.mxu2  ;;  %v1810_v33 = vpack.c.bf16 %v1770_v6, %v1762_v21  ;;  %v1634_v51 = vadd.f32 %v1633_v10, %v7578_v25  ;;  %v2672_v6 = vsel %vm7653_vm13, %v7613_v29, %v2668_v19  ;;  %v2685_v29 = vmul.f32 %v7642_v54, %v2684_v42 }
 0x2e7   : > { %v1781_v58 = vmax.f32 %v1576_v55, 0.0  ;;  %v1658_v24 = vadd.f32 %v1657_v15, %v7588_v63  ;;  %2469 = vmatmul.bf16.gmra.mxu1 %v1807_v16  ;;  %v2682_v55 = vsel %vm7660_vm14, %v7615_v32, %v2678_v22  ;;  %v7677_v16 = vadd.f32 1e-05, %v2651_v60 }
 0x2e8   : > { %2556 = vmatmul.bf16.gmra.mxu0 %v1810_v33  ;;  %v1783_v25 = vmax.f32 %v1634_v51, 0.0  ;;  %v2743_v10 = vmul.f32 %v2672_v6, %v7333_v43  ;;  %v2744_v34 = vmul.f32 %v2682_v55, %v7343_v44  ;;  %v2686_v51 = vmul.f32 0.5, %v2685_v29  ;;  %v7698_v44 = vld [vmem:[%s8271_s4] ss:$0 sm:$0xff] }
 0x2e9   : > { %v1768_v26 = vmax.f32 %v1658_v24, 0.0  ;;  %v1718_v27 = vpop.f32.mrf.mxu0  ;;  %v1813_v37 = vpack.c.bf16 %v1781_v58, %v1773_v41  ;;  %v7679_v41 = vadd.f32 1e-05, %v2652_v20  ;;  %6441 = vrsqrt.f32 %v7677_v16 }
 0x2ea   : > { %v1719_v48 = vadd.f32 %v1718_v27, %v7581_v30  ;;  %v1815_v24 = vpack.c.bf16 %v1783_v25, %v1775_v11  ;;  %v2687_v22 = vsub.f32 1.5, %v2686_v51  ;;  %v2654_v20 = vmul.f32 %v2646_v62, %v7141_v14 }
 0x2eb   : > { %2416 = vmatmul.bf16.gmra.mxu3 %v1813_v37  ;;  %v1808_v38 = vpack.c.bf16 %v1768_v26, %v1760_v28  ;;  %6443 = vrsqrt.f32 %v7679_v41  ;;  %vm2709_vm5 = vweird.f32 %v7677_v16  ;;  %vm2719_vm7 = vweird.f32 %v7679_v41 }
 0x2ec   : > { %v1674_v12 = vpop.f32.mrf.mxu3  ;;  %v1778_v15 = vmax.f32 %v1719_v48, 0.0  ;;  %v2644_v48 = vpop.xlane.xlu0 %2643  ;;  %v2688_v4 = vmul.f32 %v7642_v54, %v2687_v22 }
 0x2ed   : > { %2498 = vmatmul.bf16.gmra.mxu2 %v1808_v38  ;;  %v1675_v9 = vadd.f32 %v1674_v12, %v7651_v0  ;;  %v7692_v38 = vld [vmem:[%s8268_s25] ss:$0 sm:$0xff]  ;;  %v2653_v42 = vmul.f32 %v2644_v48, %v7141_v14 }
 0x2ee   : > { %v1660_v18 = vpop.f32.mrf.mxu2  ;;  %v2756_v19 = vmul.f32 %v7692_v38, %v2744_v34  ;;  %v7746_v34 = vld [vmem:[#allocation13] ss:$0 sm:$0xff] }
 0x2ef   : > { %v1729_v27 = vmax.f32 %v1675_v9, 0.0  ;;  %v7702_v2 = vpop.eup %6441  ;;  %v7729_v9 = vadd.f32 1e-05, %v2654_v20 }
 0x2f0   : > { %v2704_v39 = vmul.f32 %v7702_v2, %v7677_v16  ;;  %vm2710_vm6 = vweird.f32 %v7702_v2 }
 0x2f1   : > { %v1720_v3 = vpop.f32.mrf.mxu0  ;;  %v7704_v35 = vpop.eup %6443  ;;  %6445 = vrsqrt.f32 %v7729_v9  ;;  %vm7766_vm9 = vmor %vm2709_vm5, %vm2710_vm6  ;;  %vm2739_vm11 = vweird.f32 %v7729_v9 }
 0x2f2   : > { %v1721_v21 = vadd.f32 %v1720_v3, %v7581_v30  ;;  %v1661_v30 = vadd.f32 %v1660_v18, %v7588_v63  ;;  %v2755_v18 = vmul.f32 %v7692_v38, %v2743_v10  ;;  %v2768_v3 = vadd.f32 %v7698_v44, %v2756_v19 }
 0x2f3   : > { %v2714_v6 = vmul.f32 %v7704_v35, %v7679_v41  ;;  %v2705_v29 = vmul.f32 %v7702_v2, %v2704_v39  ;;  %vm2720_vm8 = vweird.f32 %v7704_v35 }
 0x2f4   : > { %v1786_v33 = vmax.f32 %v1721_v21, 0.0  ;;  %v1676_v13 = vpop.f32.mrf.mxu3  ;;  %v1776_v31 = vmax.f32 %v1661_v30, 0.0  ;;  %v2767_v25 = vadd.f32 %v7698_v44, %v2755_v18  ;;  %vm2721_vm10 = vmor %vm2719_vm7, %vm2720_vm8 }
 0x2f5   : > { %v1677_v58 = vadd.f32 %v1676_v13, %v7651_v0 }
 0x2f6   : > { %v1662_v28 = vpop.f32.mrf.mxu2  ;;  %v1818_v26 = vpack.c.bf16 %v1786_v33, %v1778_v15  ;;  %v7731_v33 = vadd.f32 1e-05, %v2653_v42  ;;  %v2775_v30 = vpack.c.bf16 %v2768_v3, %v2767_v25 }
 0x2f7   : > { %v1737_v32 = vmax.f32 %v1677_v58, 0.0  ;;  %v1663_v37 = vadd.f32 %v1662_v28, %v7588_v63  ;;  %2474 = vmatmul.bf16.gmra.mxu1 %v1815_v24  ;;  %v2696_v63 = vmul.f32 0.5, %v2695_v47  ;;  %v2692_v58 = vsel %vm7715_vm3, %v7642_v54, %v2688_v4  ;;  %v7752_v51 = vpop.eup %6445 }
 0x2f8   : > { %2561 = vmatmul.bf16.gmra.mxu0 %v1818_v26  ;;  %v2715_v47 = vmul.f32 %v7704_v35, %v2714_v6  ;;  %6447 = vrsqrt.f32 %v7731_v33  ;;  %v2734_v41 = vmul.f32 %v7752_v51, %v7729_v9  ;;  %vm2740_vm12 = vweird.f32 %v7752_v51 }
 0x2f9   : > { %v1793_v12 = vpack.c.bf16 %v1737_v32, %v1729_v27  ;;  %v1784_v45 = vmax.f32 %v1663_v37, 0.0  ;;  %v2697_v60 = vsub.f32 1.5, %v2696_v63  ;;  %v2745_v27 = vmul.f32 %v2692_v58, %v7427_v61  ;;  %vm2741_vm15 = vmor %vm2739_vm11, %vm2740_vm12 }
 0x2fa   : > { %v2706_v37 = vmul.f32 0.5, %v2705_v29  ;;  %v2716_v10 = vmul.f32 0.5, %v2715_v47  ;;  %v2735_v39 = vmul.f32 %v7752_v51, %v2734_v41  ;;  %vm2729_vm13 = vweird.f32 %v7731_v33 }
 0x2fb   : > { %2517 = vmatmul.bf16.vlgmr.msra.gmra.mxu3 %v1793_v12  ;;  %v1816_v56 = vpack.c.bf16 %v1784_v45, %v1776_v31  ;;  %v2698_v57 = vmul.f32 %v7646_v50, %v2697_v60  ;;  %v2757_v12 = vmul.f32 %v7692_v38, %v2745_v27 }
 0x2fc   : > { %v1679_v43 = vpop.f32.mrf.mxu3  ;;  %v2707_v61 = vsub.f32 1.5, %v2706_v37  ;;  %v2717_v63 = vsub.f32 1.5, %v2716_v10  ;;  %v2736_v58 = vmul.f32 0.5, %v2735_v39 }
 0x2fd   : > { %2503 = vmatmul.bf16.gmra.mxu2 %v1816_v56  ;;  %v1680_v14 = vadd.f32 %v1679_v43, %v7651_v0  ;;  %v2702_v24 = vsel %vm7724_vm4, %v7646_v50, %v2698_v57  ;;  %v2769_v19 = vadd.f32 %v7698_v44, %v2757_v12 }
 0x2fe   : > { %v2746_v32 = vmul.f32 %v2702_v24, %v7424_v52  ;;  %v7754_v52 = vpop.eup %6447  ;;  %v2708_v22 = vmul.f32 %v7702_v2, %v2707_v61  ;;  %v2718_v16 = vmul.f32 %v7704_v35, %v2717_v63 }
 0x2ff   : > { %v1745_v28 = vmax.f32 %v1680_v14, 0.0  ;;  %v2724_v48 = vmul.f32 %v7754_v52, %v7731_v33  ;;  %vm2730_vm14 = vweird.f32 %v7754_v52 }
 0x300   : > { %v2758_v45 = vmul.f32 %v7692_v38, %v2746_v32  ;;  %v2712_v21 = vsel %vm7766_vm9, %v7702_v2, %v2708_v22  ;;  %v2722_v57 = vsel %vm2721_vm10, %v7704_v35, %v2718_v16  ;;  %vm2731_vm0 = vmor %vm2729_vm13, %vm2730_vm14 }
 0x301   : > { %v2725_v6 = vmul.f32 %v7754_v52, %v2724_v48 }
 0x302   : > { %v2770_v62 = vadd.f32 %v7698_v44, %v2758_v45 }
 0x303   : > { %v2726_v24 = vmul.f32 0.5, %v2725_v6 }
 0x304   : > { %v1681_v55 = vpop.f32.mrf.mxu3  ;;  %v2344_v15 = vpop.f32.mrf.mxu1  ;;  %v2776_v4 = vpack.c.bf16 %v2770_v62, %v2769_v19 }
 0x305   : > { %v1682_v13 = vadd.f32 %v1681_v55, %v7651_v0  ;;  %v2345_v56 = vadd.f32 %v7746_v34, %v2344_v15  ;;  %v2747_v15 = vmul.f32 %v2712_v21, %v7436_v36  ;;  %v2431_v9 = vpop.f32.mrf.mxu0 }
 0x307   : > { %v1753_v26 = vmax.f32 %v1682_v13, 0.0  ;;  %2855 = vmatmul.bf16.vlgmr.msra.gmra.mxu1 %v2775_v30  ;;  %v2748_v13 = vmul.f32 %v2722_v57, %v7439_v7  ;;  %v2759_v35 = vmul.f32 %v7692_v38, %v2747_v15 }
 0x309   : > { %v1801_v54 = vpack.c.bf16 %v1753_v26, %v1745_v28  ;;  %v2760_v47 = vmul.f32 %v7692_v38, %v2748_v13  ;;  %v2737_v28 = vsub.f32 1.5, %v2736_v58  ;;  %v2727_v26 = vsub.f32 1.5, %v2726_v24 }
 0x30a   : > { %v2771_v32 = vadd.f32 %v7698_v44, %v2759_v35 }
 0x30b   : > { %2522 = vmatmul.bf16.gmra.mxu3 %v1801_v54  ;;  %v2772_v54 = vadd.f32 %v7698_v44, %v2760_v47  ;;  %v2738_v37 = vmul.f32 %v7752_v51, %v2737_v28  ;;  %v2728_v10 = vmul.f32 %v7754_v52, %v2727_v26 }
 0x30c   : > { %v1684_v50 = vpop.f32.mrf.mxu3  ;;  %v7748_v31 = vpop.f32.mrf.mxu1 }
 0x30d   : > { %v1685_v20 = vadd.f32 %v1684_v50, %v7651_v0  ;;  %v2777_v61 = vpack.c.bf16 %v2772_v54, %v2771_v32  ;;  %v2742_v63 = vsel %vm2741_vm15, %v7752_v51, %v2738_v37  ;;  %v7808_v41 = vpop.f32.mrf.mxu0 }
 0x30e   : > { %v2750_v22 = vmul.f32 %v2742_v63, %v7452_v49 }
 0x30f   : > { %v1761_v11 = vmax.f32 %v1685_v20, 0.0 }
 0x310   : > { %v2373_v43 = vpop.f32.mrf.mxu2  ;;  %v2762_v51 = vmul.f32 %v7692_v38, %v2750_v22 }
 0x311   : > { %v7761_v18 = vadd.f32 %v2373_v43, %v2345_v56  ;;  %v2732_v56 = vsel %vm2731_vm0, %v7754_v52, %v2728_v10 }
 0x312   : > { %v2749_v60 = vmul.f32 %v2732_v56, %v7455_v8  ;;  %v2774_v49 = vadd.f32 %v7698_v44, %v2762_v51  ;;  %v5621_v56 = vld [vmem:[#allocation15 + $0x1c0] sm:$0xf]  ;;  %v2347_v51 = vadd.f32 %v7746_v34, %v7748_v31 }
 0x314   : > { %v1686_v25 = vpop.f32.mrf.mxu3  ;;  %v2349_v3 = vpop.f32.mrf.mxu1 }
 0x315   : > { %v1687_v42 = vadd.f32 %v1686_v25, %v7651_v0  ;;  %v2350_v36 = vadd.f32 %v7746_v34, %v2349_v3 }
 0x317   : > { %v1769_v14 = vmax.f32 %v1687_v42, 0.0  ;;  %2860 = vmatmul.bf16.gmra.mxu1 %v2776_v4  ;;  %v2436_v4 = vpop.f32.mrf.mxu0 }
 0x318   : > { %v7783_v55 = vpop.f32.mrf.mxu2 }
 0x319   : > { %v1809_v30 = vpack.c.bf16 %v1769_v14, %v1761_v11 }
 0x31b   : > { %2527 = vmatmul.bf16.gmra.mxu3 %v1809_v30 }
 0x31c   : > { %v1689_v2 = vpop.f32.mrf.mxu3  ;;  %v7787_v29 = vpop.f32.mrf.mxu1 }
 0x31d   : > { %v1690_v50 = vadd.f32 %v1689_v2, %v7651_v0 }
 0x31f   : > { %v1777_v43 = vmax.f32 %v1690_v50, 0.0  ;;  %v7823_v11 = vpop.f32.mrf.mxu0 }
 0x320   : > { %v2378_v7 = vpop.f32.mrf.mxu2 }
 0x321   : > { %v2379_v27 = vadd.f32 %v2378_v7, %v2350_v36 }
 0x324   : > { %v1691_v12 = vpop.f32.mrf.mxu3  ;;  %v2354_v45 = vpop.f32.mrf.mxu1 }
 0x325   : > { %v1692_v33 = vadd.f32 %v1691_v12, %v7651_v0  ;;  %v2761_v0 = vmul.f32 %v7692_v38, %v2749_v60  ;;  %v2355_v52 = vadd.f32 %v7746_v34, %v2354_v45 }
 0x327   : > { %v1785_v19 = vmax.f32 %v1692_v33, 0.0  ;;  %2865 = vmatmul.bf16.gmra.mxu1 %v2777_v61  ;;  %v2773_v3 = vadd.f32 %v7698_v44, %v2761_v0  ;;  %v2441_v58 = vpop.f32.mrf.mxu0 }
 0x328   : > { %v7804_v62 = vpop.f32.mrf.mxu2 }
 0x329   : > { %v1817_v16 = vpack.c.bf16 %v1785_v19, %v1777_v43  ;;  %v2778_v8 = vpack.c.bf16 %v2774_v49, %v2773_v3  ;;  %v6117_v43 = vld [vmem:[#allocation15 + $0x1dc] sm:$0xf0]  ;;  %v6113_v3 = vld [vmem:[#allocation15 + $0x1c4] sm:$0xf] }
 0x32a   : > { %v5622_v22 = vor.u32 %v6117_v43, %v5621_v56  ;;  %v5623_v49 = vld [vmem:[#allocation15 + $0x1e0] sm:$0xf0]  ;;  %v6101_v43 = vld [vmem:[#allocation15 + $0x15c] sm:$0xf0] }
 0x32b   : > { %2532 = vmatmul.bf16.gmra.mxu3 %v1817_v16 }
 0x32c   : > { %v7810_v48 = vpop.f32.mrf.mxu1  ;;  %3411 = vmatpush.bf16.msrb.mxu2 %v5622_v22  ;;  %v5629_v22 = vld [vmem:[#allocation15 + $0x1c8] sm:$0xf] }
 0x32f   : > { %v7827_v28 = vpop.f32.mrf.mxu0 }
 0x330   : > { %v2383_v20 = vpop.f32.mrf.mxu2 }
 0x331   : > { %v2384_v25 = vadd.f32 %v2383_v20, %v2355_v52  ;;  %v2376_v52 = vadd.f32 %v7783_v55, %v2347_v51 }
 0x334   : > { %v2359_v42 = vpop.f32.mrf.mxu1 }
 0x335   : > { %v2360_v6 = vadd.f32 %v7746_v34, %v2359_v42 }
 0x337   : > { %2870 = vmatmul.bf16.gmra.mxu1 %v2778_v8  ;;  %v2446_v7 = vpop.f32.mrf.mxu0  ;;  %v5626_v8 = vor.u32 %v6113_v3, %v5623_v49  ;;  %v5559_v3 = vld [vmem:[#allocation15 + $0x160] sm:$0xf0]  ;;  %v6114_v49 = vld [vmem:[#allocation15 + $0x1cc] sm:$0xf] }
 0x338   : > { %v7817_v21 = vpop.f32.mrf.mxu2 }
 0x339   : > { %3440 = vmatpush.bf16.msrb.mxu3 %v5626_v8 }
 0x33c   : > { %v7819_v57 = vpop.f32.mrf.mxu1 }
 0x33e   : > { %v2402_v39 = vpop.f32.mrf.mxu3 }
 0x33f   : > { %v2403_v38 = vadd.f32 %v2402_v39, %v7761_v18  ;;  %v7843_v50 = vpop.f32.mrf.mxu0  ;;  %v6109_v39 = vld [vmem:[#allocation15 + $0x19c] sm:$0xf0] }
 0x340   : > { %v2388_v14 = vpop.f32.mrf.mxu2 }
 0x341   : > { %v2389_v15 = vadd.f32 %v2388_v14, %v2360_v6  ;;  %v2432_v13 = vadd.f32 %v2431_v9, %v2403_v38 }
 0x344   : > { %v2460_v30 = vpop.f32.mrf.mxu1 }
 0x345   : > { %v2461_v31 = vadd.f32 %v2460_v30, %v2432_v13  ;;  %v2352_v13 = vadd.f32 %v7746_v34, %v7787_v29 }
 0x346   : > { %v2404_v44 = vpop.f32.mrf.mxu3 }
 0x347   : > { %v2547_v19 = vpop.f32.mrf.mxu0  ;;  %v2405_v42 = vadd.f32 %v2404_v44, %v2376_v52  ;;  %v2381_v51 = vadd.f32 %v7804_v62, %v2352_v13  ;;  %v6093_v62 = vld [vmem:[#allocation15 + $0x11c] sm:$0xf0]  ;;  %v6106_v13 = vld [vmem:[#allocation15 + $0x18c] sm:$0xf] }
 0x348   : > { %v7837_v10 = vpop.f32.mrf.mxu2 }
 0x349   : > { %v2434_v55 = vadd.f32 %v7808_v41, %v2405_v42 }
 0x34c   : > { %v2462_v24 = vpop.f32.mrf.mxu1 }
 0x34e   : > { %v2407_v2 = vpop.f32.mrf.mxu3 }
 0x34f   : > { %v2408_v35 = vadd.f32 %v2407_v2, %v2379_v27  ;;  %v2549_v20 = vpop.f32.mrf.mxu0 }
 0x350   : > { %v2489_v12 = vpop.f32.mrf.mxu2 }
 0x351   : > { %v7825_v47 = vadd.f32 %v2436_v4, %v2408_v35  ;;  %v5589_v4 = vld [vmem:[#allocation15 + $0x180] sm:$0xf] }
 0x352   : > { %v5590_v38 = vor.u32 %v6109_v39, %v5589_v4  ;;  %v5631_v4 = vld [vmem:[#allocation15 + $0x1e8] sm:$0xf0] }
 0x354   : > { %v7829_v26 = vpop.f32.mrf.mxu1  ;;  %3412 = vmatpush.bf16.msrb.mxu2 %v5590_v38 }
 0x356   : > { %v7831_v36 = vpop.f32.mrf.mxu3 }
 0x357   : > { %v2410_v39 = vadd.f32 %v7831_v36, %v2381_v51  ;;  %v2466_v36 = vadd.f32 %v7829_v26, %v7825_v47 }
 0x358   : > { %v2491_v16 = vpop.f32.mrf.mxu2 }
 0x35c   : > { %v7833_v18 = vpop.f32.mrf.mxu1 }
 0x35e   : > { %v2412_v32 = vpop.f32.mrf.mxu3 }
 0x35f   : > { %v2413_v54 = vadd.f32 %v2412_v32, %v2384_v25 }
 0x360   : > { %v7859_v14 = vpop.f32.mrf.mxu2 }
 0x361   : > { %v7835_v37 = vadd.f32 %v2441_v58, %v2413_v54  ;;  %v2490_v58 = vadd.f32 %v2489_v12, %v2461_v31  ;;  %v5591_v12 = vld [vmem:[#allocation15 + $0x1a0] sm:$0xf0]  ;;  %v5525_v31 = vld [vmem:[#allocation15 + $0x100] sm:$0xf] }
 0x364   : > { %v7839_v9 = vpop.f32.mrf.mxu1 }
 0x366   : > { %v7841_v27 = vpop.f32.mrf.mxu3 }
 0x36c   : > { %v7845_v45 = vpop.f32.mrf.mxu1 }
 0x36e   : > { %v2417_v33 = vpop.f32.mrf.mxu3 }
 0x36f   : > { %v2418_v61 = vadd.f32 %v2417_v33, %v2389_v15  ;;  %v2463_v15 = vadd.f32 %v2462_v24, %v2434_v55  ;;  %v6105_v24 = vld [vmem:[#allocation15 + $0x184] sm:$0xf]  ;;  %v5557_v33 = vld [vmem:[#allocation15 + $0x140] sm:$0xf]  ;;  %v5597_v55 = vld [vmem:[#allocation15 + $0x188] sm:$0xf] }
 0x370   : > { %v5594_v56 = vor.u32 %v6105_v24, %v5591_v12 }
 0x371   : > { %v7847_v63 = vadd.f32 %v2446_v7, %v2418_v61  ;;  %v2492_v2 = vadd.f32 %v2491_v16, %v2463_v15  ;;  %v7867_v7 = vpop.f32.mrf.mxu0  ;;  %v2496_v61 = vpop.f32.mrf.mxu2  ;;  %v6118_v16 = vld [vmem:[#allocation15 + $0x1e4] sm:$0xf0]  ;;  %v5526_v15 = vor.u32 %v6093_v62, %v5525_v31  ;;  %v6081_v31 = vld [vmem:[#allocation15 + $0xc4] sm:$0xf] }
 0x372   : > { %v5630_v52 = vor.u32 %v6118_v16, %v5629_v22  ;;  %3441 = vmatpush.bf16.msrb.mxu3 %v5594_v56  ;;  %v6085_v56 = vld [vmem:[#allocation15 + $0xdc] sm:$0xf0]  ;;  %v6102_v16 = vld [vmem:[#allocation15 + $0x164] sm:$0xf0]  ;;  %v5495_v62 = vld [vmem:[#allocation15 + $0xe0] sm:$0xf0] }
 0x374   : > { %v7849_v60 = vpop.f32.mrf.mxu1  ;;  %3469 = vmatpush.bf16.msrb.mxu0 %v5630_v52 }
 0x376   : > { %v7851_v0 = vpop.f32.mrf.mxu3 }
 0x379   : > { %v2499_v52 = vpop.f32.mrf.mxu2 }
 0x37c   : > { %v7856_v25 = vpop.f32.mrf.mxu1 }
 0x37e   : > { %v2518_v6 = vpop.f32.mrf.mxu3 }
 0x37f   : > { %v2519_v35 = vadd.f32 %v2518_v6, %v2490_v58  ;;  %v5634_v6 = vor.u32 %v6114_v49, %v5631_v4  ;;  %v6110_v58 = vld [vmem:[#allocation15 + $0x1a4] sm:$0xf0] }
 0x381   : > { %v2548_v30 = vadd.f32 %v2547_v19, %v2519_v35  ;;  %v5558_v19 = vor.u32 %v6101_v43, %v5557_v33  ;;  %3498 = vmatpush.bf16.msrb.mxu1 %v5634_v6  ;;  %v2554_v35 = vpop.f32.mrf.mxu0  ;;  %v5493_v33 = vld [vmem:[#allocation15 + $0xc0] sm:$0xf]  ;;  %v5565_v43 = vld [vmem:[#allocation15 + $0x148] sm:$0xf] }
 0x382   : > { %v5494_v22 = vor.u32 %v6085_v56, %v5493_v33 }
 0x383   : > { %3413 = vmatpush.bf16.msrb.mxu2 %v5558_v19  ;;  %v5566_v19 = vor.u32 %v6102_v16, %v5565_v43  ;;  %v6086_v16 = vld [vmem:[#allocation15 + $0xe4] sm:$0xf0] }
 0x384   : > { %v7865_v44 = vpop.f32.mrf.mxu1 }
 0x386   : > { %v2520_v32 = vpop.f32.mrf.mxu3 }
 0x387   : > { %v2521_v54 = vadd.f32 %v2520_v32, %v2492_v2  ;;  %v6089_v2 = vld [vmem:[#allocation15 + $0x104] sm:$0xf]  ;;  %v5598_v32 = vor.u32 %v6110_v58, %v5597_v55  ;;  %3414 = vmatpush.bf16.msrb.mxu2 %v5526_v15  ;;  %v5567_v55 = vld [vmem:[#allocation15 + $0x168] sm:$0xf0]  ;;  %v2501_v58 = vpop.f32.mrf.mxu2 }
 0x389   : > { %v2550_v41 = vadd.f32 %v2549_v20, %v2521_v54  ;;  %v6097_v20 = vld [vmem:[#allocation15 + $0x144] sm:$0xf]  ;;  %3470 = vmatpush.bf16.msrb.mxu0 %v5598_v32  ;;  %v6077_v32 = vld [vmem:[#allocation15 + $0x9c] sm:$0xf0] }
 0x38a   : > { %v5562_v8 = vor.u32 %v6097_v20, %v5559_v3  ;;  %v5527_v54 = vld [vmem:[#allocation15 + $0x120] sm:$0xf0] }
 0x38b   : > { %v6188_v29 = vpack.c.bf16 %v2550_v41, %v2548_v30  ;;  %v5599_v30 = vld [vmem:[#allocation15 + $0x1a8] sm:$0xf0]  ;;  %v2439_v41 = vadd.f32 %v7823_v11, %v2410_v39  ;;  %v5530_v24 = vor.u32 %v6089_v2, %v5527_v54  ;;  %3415 = vmatpush.bf16.msrb.mxu2 %v5494_v22  ;;  %v5533_v54 = vld [vmem:[#allocation15 + $0x108] sm:$0xf] }
 0x38c   : > { %v7880_v42 = vpop.f32.mrf.mxu1  ;;  %3442 = vmatpush.bf16.msrb.mxu3 %v5562_v8  ;;  %v5602_v12 = vor.u32 %v6106_v13, %v5599_v30  ;;  %v6094_v13 = vld [vmem:[#allocation15 + $0x124] sm:$0xf0]  ;;  %v6090_v30 = vld [vmem:[#allocation15 + $0x10c] sm:$0xf] }
 0x38d   : > { %6189 = vst [vmem:[%s7877_s5] sm:$0xff] %v6188_v29   ;;  %v2468_v51 = vadd.f32 %v7833_v18, %v2439_v41  ;;  %v2495_v29 = vadd.f32 %v7859_v14, %v2466_v36  ;;  %3471 = vmatpush.bf16.msrb.mxu0 %v5566_v19  ;;  %v2357_v18 = vadd.f32 %v7746_v34, %v7810_v48  ;;  %v2557_v14 = vpop.f32.mrf.mxu0  ;;  %v5535_v36 = vld [vmem:[#allocation15 + $0x128] sm:$0xf0]  ;;  %v5501_v22 = vld [vmem:[#allocation15 + $0xc8] sm:$0xf] }
 0x38e   : > { %v2523_v38 = vpop.f32.mrf.mxu3  ;;  %3499 = vmatpush.bf16.msrb.mxu1 %v5602_v12  ;;  %v5538_v41 = vor.u32 %v6090_v30, %v5535_v36  ;;  %v6066_v36 = vld [vmem:[#allocation15 + $0x4c] sm:$0xf] }
 0x38f   : > { %v2497_v11 = vadd.f32 %v2496_v61, %v2468_v51  ;;  %v2524_v47 = vadd.f32 %v2523_v38, %v2495_v29  ;;  %v2386_v39 = vadd.f32 %v7817_v21, %v2357_v18  ;;  %v5498_v61 = vor.u32 %v6081_v31, %v5495_v62  ;;  %v6098_v38 = vld [vmem:[#allocation15 + $0x14c] sm:$0xf] }
 0x390   : > { %3443 = vmatpush.bf16.msrb.mxu3 %v5530_v24  ;;  %v5534_v21 = vor.u32 %v6094_v13, %v5533_v54  ;;  %v2471_v24 = vadd.f32 %v7839_v9, %v7835_v37  ;;  %v6082_v51 = vld [vmem:[#allocation15 + $0xcc] sm:$0xf]  ;;  %v2504_v37 = vpop.f32.mrf.mxu2  ;;  %v5437_v54 = vld [vmem:[#allocation15 + $0x48] sm:$0xf] }
 0x391   : > { %v2553_v49 = vadd.f32 %v7867_v7, %v2524_v47  ;;  %v2415_v15 = vadd.f32 %v7841_v27, %v2386_v39  ;;  %v5570_v7 = vor.u32 %v6098_v38, %v5567_v55  ;;  %v5503_v29 = vld [vmem:[#allocation15 + $0xe8] sm:$0xf0] }
 0x392   : > { %3472 = vmatpush.bf16.msrb.mxu0 %v5534_v21  ;;  %v2500_v56 = vadd.f32 %v2499_v52, %v2471_v24  ;;  %v5469_v52 = vld [vmem:[#allocation15 + $0x88] sm:$0xf]  ;;  %v6074_v39 = vld [vmem:[#allocation15 + $0x8c] sm:$0xf] }
 0x393   : > { %3500 = vmatpush.bf16.msrb.mxu1 %v5570_v7  ;;  %v2444_v27 = vadd.f32 %v7827_v28, %v2415_v15  ;;  %v2362_v28 = vadd.f32 %v7746_v34, %v7819_v57  ;;  %v5471_v55 = vld [vmem:[#allocation15 + $0xa8] sm:$0xf0]  ;;  %v5429_v7 = vld [vmem:[#allocation15 + $0x40] sm:$0xf] }
 0x394   : > { %v7889_v20 = vpop.f32.mrf.mxu1  ;;  %3444 = vmatpush.bf16.msrb.mxu3 %v5498_v61  ;;  %v5474_v57 = vor.u32 %v6074_v39, %v5471_v55 }
 0x395   : > { %v2473_v12 = vadd.f32 %v7845_v45, %v2444_v27  ;;  %v2559_v33 = vpop.f32.mrf.mxu0  ;;  %v6073_v45 = vld [vmem:[#allocation15 + $0x84] sm:$0xf]  ;;  %v2391_v31 = vadd.f32 %v7837_v10, %v2362_v28 }
 0x396   : > { %v2525_v26 = vpop.f32.mrf.mxu3 }
 0x397   : > { %v2526_v3 = vadd.f32 %v2525_v26, %v2497_v11  ;;  %3501 = vmatpush.bf16.msrb.mxu1 %v5538_v41  ;;  %v2502_v19 = vadd.f32 %v2501_v58, %v2473_v12  ;;  %v5502_v26 = vor.u32 %v6086_v16, %v5501_v22  ;;  %v2420_v15 = vadd.f32 %v7851_v0, %v2391_v31  ;;  %v5439_v0 = vld [vmem:[#allocation15 + $0x68] sm:$0xf0]  ;;  %v5397_v12 = vld [vmem:[#allocation15] sm:$0xf] }
 0x398   : > { %v5442_v24 = vor.u32 %v6066_v36, %v5439_v0  ;;  %v2476_v22 = vadd.f32 %v7849_v60, %v7847_v63 }
 0x399   : > { %v2555_v8 = vadd.f32 %v2554_v35, %v2526_v3  ;;  %v5461_v35 = vld [vmem:[#allocation15 + $0x80] sm:$0xf]  ;;  %v5506_v3 = vor.u32 %v6082_v51, %v5503_v29  ;;  %3473 = vmatpush.bf16.msrb.mxu0 %v5502_v26  ;;  %v2449_v27 = vadd.f32 %v7843_v50, %v2420_v15  ;;  %v5399_v51 = vld [vmem:[#allocation15 + $0x20] sm:$0xf0]  ;;  %v5405_v29 = vld [vmem:[#allocation15 + $0x8] sm:$0xf] }
 0x39a   : > { %v5462_v48 = vor.u32 %v6077_v32, %v5461_v35  ;;  %v6069_v35 = vld [vmem:[#allocation15 + $0x5c] sm:$0xf0]  ;;  %v6065_v32 = vld [vmem:[#allocation15 + $0x44] sm:$0xf]  ;;  %v6871_v26 = vmov 1983009808  }
 0x39b   : > { %v6193_v4 = vpack.c.bf16 %v2555_v8, %v2553_v49  ;;  %v5463_v49 = vld [vmem:[#allocation15 + $0xa0] sm:$0xf0]  ;;  %3502 = vmatpush.bf16.msrb.mxu1 %v5506_v3  ;;  %v7905_v8 = vld [vmem:[#allocation7] ss:$0 sm:$0xff]  ;;  %v5430_v10 = vor.u32 %v6069_v35, %v5429_v7  ;;  %v2882_v3 = vunpack.c.l.s4 %v6871_v26 }
 0x39c   : > { %v2863_v6 = vpop.f32.mrf.mxu1  ;;  %3416 = vmatpush.bf16.msrb.mxu2 %v5462_v48  ;;  %v5466_v18 = vor.u32 %v6073_v45, %v5463_v49  ;;  %v6070_v48 = vld [vmem:[#allocation15 + $0x64] sm:$0xf0]  ;;  %v5407_v45 = vld [vmem:[#allocation15 + $0x28] sm:$0xf0]  ;;  %v2505_v49 = vadd.f32 %v2504_v37, %v2476_v22  ;;  %v7928_v63 = vadd.f32 %v7905_v8, %v7889_v20  ;;  %v6111_v37 = vld [vmem:[#allocation15 + $0x1ac] sm:$0xf0] }
 0x39d   : > { %6225 = vst [vmem:[%s7877_s5 + $0x8] sm:$0xff] %v6193_v4   ;;  %v6078_v4 = vld [vmem:[#allocation15 + $0xa4] sm:$0xf0]  ;;  %v7909_v34 = vadd.f32 %v7905_v8, %v2863_v6  ;;  %v7914_v13 = vpop.f32.mrf.mxu0  ;;  %v5438_v30 = vor.u32 %v6070_v48, %v5437_v54  ;;  %v5607_v15 = vld [vmem:[#allocation15 + $0x1b0] sm:$0xf0] }
 0x39e   : > { %v2528_v2 = vpop.f32.mrf.mxu3  ;;  %v5470_v38 = vor.u32 %v6078_v4, %v5469_v52  ;;  %3445 = vmatpush.bf16.msrb.mxu3 %v5466_v18  ;;  %v7924_v52 = vadd.f32 %v7905_v8, %v7880_v42  ;;  %v5637_v18 = vld [vmem:[#allocation15 + $0x1d0] sm:$0xf]  ;;  %v6115_v4 = vld [vmem:[#allocation15 + $0x1d4] sm:$0xf] }
 0x39f   : > { %v2529_v11 = vadd.f32 %v2528_v2, %v2500_v56  ;;  %3503 = vmatpush.bf16.msrb.mxu1 %v5474_v57  ;;  %v2889_v41 = vrot.slane %v7909_v34, 4  ;;  %v6057_v56 = vld [vmem:[#allocation15 + $0x4] sm:$0xf]  ;;  %v6107_v57 = vld [vmem:[#allocation15 + $0x194] sm:$0xf] }
 0x3a0   : > { %3474 = vmatpush.bf16.msrb.mxu0 %v5470_v38  ;;  %3417 = vmatpush.bf16.msrb.mxu2 %v5430_v10  ;;  %v5402_v28 = vor.u32 %v6057_v56, %v5399_v51 }
 0x3a1   : > { %v2558_v62 = vadd.f32 %v2557_v14, %v2529_v11  ;;  %v5431_v14 = vld [vmem:[#allocation15 + $0x60] sm:$0xf0]  ;;  %v2478_v11 = vadd.f32 %v7856_v25, %v2449_v27  ;;  %v6119_v25 = vld [vmem:[#allocation15 + $0x1ec] sm:$0xf0]  ;;  %v2890_v42 = vsel %vm2877_vm1, %v2889_v41, %v7924_v52 }
 0x3a2   : > { %v5434_v21 = vor.u32 %v6065_v32, %v5431_v14  ;;  %v5638_v31 = vor.u32 %v6119_v25, %v5637_v18  ;;  %v2876_v32 = vrot.slane %v7928_v63, 4  ;;  %v5610_v14 = vor.u32 %v6107_v57, %v5607_v15 }
 0x3a3   : > { %3504 = vmatpush.bf16.msrb.mxu1 %v5442_v24 }
 0x3a4   : > { %v7901_v43 = vpop.f32.mrf.mxu1  ;;  %3446 = vmatpush.bf16.msrb.mxu3 %v5434_v21  ;;  %3475 = vmatpush.bf16.msrb.mxu0 %v5438_v30 }
 0x3a5   : > { %v2564_v54 = vpop.f32.mrf.mxu0  ;;  %v7952_v22 = vadd.f32 %v7905_v8, %v7901_v43  ;;  %v6103_v43 = vld [vmem:[#allocation15 + $0x16c] sm:$0xf0] }
 0x3a6   : > { %v2530_v47 = vpop.f32.mrf.mxu3 }
 0x3a7   : > { %v2531_v9 = vadd.f32 %v2530_v47, %v2502_v19  ;;  %v6062_v19 = vld [vmem:[#allocation15 + $0x24] sm:$0xf0]  ;;  %v2506_v47 = vpop.f32.mrf.mxu2 }
 0x3a8   : > { %v5406_v50 = vor.u32 %v6062_v19, %v5405_v29  ;;  %3447 = vmatpush.bf16.msrb.mxu3 %v5402_v28  ;;  %v2507_v38 = vadd.f32 %v2506_v47, %v2478_v11  ;;  %v5573_v28 = vld [vmem:[#allocation15 + $0x150] sm:$0xf] }
 0x3a9   : > { %v2560_v61 = vadd.f32 %v2559_v33, %v2531_v9  ;;  %v6061_v33 = vld [vmem:[#allocation15 + $0x1c] sm:$0xf0]  ;;  %v6058_v9 = vld [vmem:[#allocation15 + $0xc] sm:$0xf] }
 0x3aa   : > { %v5398_v16 = vor.u32 %v6061_v33, %v5397_v12  ;;  %v5410_v60 = vor.u32 %v6058_v9, %v5407_v45  ;;  %3476 = vmatpush.bf16.msrb.mxu0 %v5406_v50  ;;  %v6872_v12 = vmov 1934713408   ;;  %v5645_v50 = vld [vmem:[#allocation15 + $0x1d8] sm:$0xf] }
 0x3ab   : > { %v6198_v58 = vpack.c.bf16 %v2560_v61, %v2558_v62  ;;  %v5639_v62 = vld [vmem:[#allocation15 + $0x1f0] sm:$0xf0]  ;;  %v5605_v61 = vld [vmem:[#allocation15 + $0x190] sm:$0xf]  ;;  %v2930_v33 = vunpack.c.l.s4 %v6872_v12  ;;  %v6120_v45 = vld [vmem:[#allocation15 + $0x1f4] sm:$0xf0] }
 0x3ac   : > { %v7912_v2 = vpop.f32.mrf.mxu1  ;;  %3418 = vmatpush.bf16.msrb.mxu2 %v5398_v16  ;;  %3505 = vmatpush.bf16.msrb.mxu1 %v5410_v60  ;;  %v5642_v20 = vor.u32 %v6115_v4, %v5639_v62  ;;  %v5606_v35 = vor.u32 %v6111_v37, %v5605_v61  ;;  %v5575_v60 = vld [vmem:[#allocation15 + $0x170] sm:$0xf0]  ;;  %v5646_v25 = vor.u32 %v6120_v45, %v5645_v50  ;;  %v6104_v45 = vld [vmem:[#allocation15 + $0x174] sm:$0xf0] }
 0x3ad   : > { %6226 = vst [vmem:[%s7877_s5 + $0x10] sm:$0xff] %v6198_v58   ;;  %v7932_v58 = vunpack.c.0.s8 %v2882_v3  ;;  %v2869_v16 = vadd.f32 %v7905_v8, %v7912_v2  ;;  %v7957_v19 = vunpack.c.0.s8 %v2930_v33  ;;  %v5574_v2 = vor.u32 %v6103_v43, %v5573_v28 }
 0x3ae   : > { %v2533_v6 = vpop.f32.mrf.mxu3  ;;  %3556 = vmatpush.bf16.msra.mxu3 %v5642_v20  ;;  %3585 = vmatpush.bf16.msra.mxu0 %v5646_v25  ;;  %v2903_v43 = vrot.slane %v7952_v22, 4 }
 0x3af   : > { %v2534_v55 = vadd.f32 %v2533_v6, %v2505_v49  ;;  %v2896_v48 = vperm.slane %v2890_v42, %v7932_v58  ;;  %v7938_v6 = vadd.f32 %v7905_v8, %v7865_v44  ;;  %v6099_v49 = vld [vmem:[#allocation15 + $0x154] sm:$0xf]  ;;  %v2915_v37 = vrot.slane %v2869_v16, 4  ;;  %v6116_v42 = vld [vmem:[#allocation15 + $0x1dc] sm:$0xf] }
 0x3b0   : > { %3527 = vmatpush.bf16.msra.mxu2 %v5638_v31  ;;  %v5578_v4 = vor.u32 %v6099_v49, %v5575_v60  ;;  %v6083_v49 = vld [vmem:[#allocation15 + $0xd4] sm:$0xf] }
 0x3b1   : > { %v2563_v21 = vadd.f32 %v7914_v13, %v2534_v55  ;;  %v2878_v0 = vsel %vm2877_vm1, %v2876_v32, %v7938_v6  ;;  %v2925_v24 = vrot.slane %v2896_v48, 4  ;;  %v5647_v55 = vld [vmem:[#allocation15 + $0x1f8] sm:$0xf0]  ;;  %v5511_v60 = vld [vmem:[#allocation15 + $0xf0] sm:$0xf0] }
 0x3b2   : > { %3557 = vmatpush.bf16.msra.mxu3 %v5610_v14  ;;  %v2884_v13 = vperm.slane %v2878_v0, %v7932_v58 }
 0x3b4   : > { %v2871_v39 = vpop.f32.mrf.mxu1  ;;  %3528 = vmatpush.bf16.msra.mxu2 %v5606_v35  ;;  %v2926_v29 = vsel %vm2877_vm1, %v2925_v24, %v2884_v13  ;;  %v2927_v31 = vrot.slane %v2884_v13, 4  ;;  %v5541_v35 = vld [vmem:[#allocation15 + $0x110] sm:$0xf]  ;;  %v6108_v24 = vld [vmem:[#allocation15 + $0x19c] sm:$0xf] }
 0x3b5   : > { %v7942_v30 = vadd.f32 %v7905_v8, %v2871_v39  ;;  %v2932_v3 = vperm.slane %v2926_v29, %v7957_v19  ;;  %v2891_v39 = vrot.slane %v7924_v52, 4  ;;  %v6095_v52 = vld [vmem:[#allocation15 + $0x12c] sm:$0xf0] }
 0x3b6   : > { %v2535_v7 = vpop.f32.mrf.mxu3  ;;  %3558 = vmatpush.bf16.msra.mxu3 %v5578_v4  ;;  %v2928_v57 = vsel %vm2877_vm1, %v2896_v48, %v2927_v31  ;;  %v5615_v48 = vld [vmem:[#allocation15 + $0x1b8] sm:$0xf0]  ;;  %v5514_v4 = vor.u32 %v6083_v49, %v5511_v60  ;;  %v5413_v60 = vld [vmem:[#allocation15 + $0x10] sm:$0xf] }
 0x3b7   : > { %v2536_v10 = vadd.f32 %v2535_v7, %v2507_v38  ;;  %v2901_v56 = vrot.slane %v7942_v30, 4  ;;  %v2975_v62 = vrot.slane %v2932_v3, 4  ;;  %v2892_v20 = vsel %vm2877_vm1, %v7909_v34, %v2891_v39  ;;  %v5543_v34 = vld [vmem:[#allocation15 + $0x130] sm:$0xf0]  ;;  %v6100_v39 = vld [vmem:[#allocation15 + $0x15c] sm:$0xf] }
 0x3b8   : > { %3529 = vmatpush.bf16.msra.mxu2 %v5574_v2  ;;  %v2936_v12 = vperm.slane %v2928_v57, %v7957_v19  ;;  %v5583_v31 = vld [vmem:[#allocation15 + $0x178] sm:$0xf0] }
 0x3b9   : > { %v2565_v36 = vadd.f32 %v2564_v54, %v2536_v10  ;;  %v2902_v11 = vsel %vm2877_vm1, %v2901_v56, %v7952_v22  ;;  %v5613_v54 = vld [vmem:[#allocation15 + $0x198] sm:$0xf]  ;;  %v2904_v22 = vsel %vm2877_vm1, %v7942_v30, %v2903_v43 }
 0x3ba   : > { %v2908_v9 = vperm.slane %v2902_v11, %v7932_v58  ;;  %v5618_v11 = vor.u32 %v6108_v24, %v5615_v48  ;;  %v2979_v28 = vrot.slane %v2936_v12, 4  ;;  %v5485_v43 = vld [vmem:[#allocation15 + $0x98] sm:$0xf] }
 0x3bb   : > { %v6203_v41 = vpack.c.bf16 %v2565_v36, %v2563_v21  ;;  %v6112_v21 = vld [vmem:[#allocation15 + $0x1b4] sm:$0xf0]  ;;  %v6091_v36 = vld [vmem:[#allocation15 + $0x114] sm:$0xf] }
 0x3bc   : > { %v2873_v27 = vpop.f32.mrf.mxu1  ;;  %v2951_v38 = vrot.slane %v2908_v9, 4  ;;  %v5614_v13 = vor.u32 %v6112_v21, %v5613_v54  ;;  %v5546_v29 = vor.u32 %v6091_v36, %v5543_v34 }
 0x3bd   : > { %6227 = vst [vmem:[%s7877_s5 + $0x18] sm:$0xff] %v6203_v41   ;;  %v2874_v44 = vadd.f32 %v7905_v8, %v2873_v27  ;;  %v5650_v41 = vor.u32 %v6116_v42, %v5647_v55  ;;  %v7977_v27 = vperm.slane %v2892_v20, %v7932_v58  ;;  %v5549_v42 = vld [vmem:[#allocation15 + $0x118] sm:$0xf] }
 0x3be   : > { %3586 = vmatpush.bf16.msra.mxu0 %v5614_v13  ;;  %3559 = vmatpush.bf16.msra.mxu3 %v5546_v29  ;;  %v6096_v55 = vld [vmem:[#allocation15 + $0x134] sm:$0xf0]  ;;  %v5519_v29 = vld [vmem:[#allocation15 + $0xf8] sm:$0xf0] }
 0x3bf   : > { %v2913_v51 = vrot.slane %v2874_v44, 4  ;;  %v2916_v32 = vsel %vm2877_vm1, %v2874_v44, %v2915_v37  ;;  %3614 = vmatpush.bf16.msra.mxu1 %v5650_v41  ;;  %v5542_v44 = vor.u32 %v6095_v52, %v5541_v35  ;;  %v5586_v37 = vor.u32 %v6100_v39, %v5583_v31  ;;  %v6092_v35 = vld [vmem:[#allocation15 + $0x11c] sm:$0xf]  ;;  %v6072_v39 = vld [vmem:[#allocation15 + $0x74] sm:$0xf0] }
 0x3c0   : > { %v7982_v56 = vperm.slane %v2916_v32, %v7932_v58  ;;  %v5550_v57 = vor.u32 %v6096_v55, %v5549_v42  ;;  %v2912_v52 = vperm.slane %v2904_v22, %v7932_v58  ;;  %v6063_v22 = vld [vmem:[#allocation15 + $0x2c] sm:$0xf0]  ;;  %v6068_v31 = vld [vmem:[#allocation15 + $0x5c] sm:$0xf] }
 0x3c1   : > { %v2914_v47 = vsel %vm2877_vm1, %v2913_v51, %v2869_v16  ;;  %3530 = vmatpush.bf16.msra.mxu2 %v5542_v44  ;;  %v5517_v44 = vld [vmem:[#allocation15 + $0xd8] sm:$0xf] }
 0x3c2   : > { %v2920_v26 = vperm.slane %v2914_v47, %v7932_v58  ;;  %v2961_v50 = vrot.slane %v7982_v56, 4  ;;  %3560 = vmatpush.bf16.msra.mxu3 %v5514_v4  ;;  %v5414_v4 = vor.u32 %v6063_v22, %v5413_v60  ;;  %v6146_v60 = vld [vmem:[#allocation16 + $0xc8] sm:$0xff]  ;;  %v6137_v22 = vld [vmem:[#allocation16 + $0x80] sm:$0xff] }
 0x3c3   : > { %3615 = vmatpush.bf16.msra.mxu1 %v5618_v11 }
 0x3c4   : > { %v2949_v8 = vrot.slane %v2920_v26, 4  ;;  %v2952_v10 = vsel %vm2877_vm1, %v2920_v26, %v2951_v38  ;;  %v2879_v26 = vrot.slane %v7938_v6, 4  ;;  %v5581_v6 = vld [vmem:[#allocation15 + $0x158] sm:$0xf]  ;;  %v6079_v38 = vld [vmem:[#allocation15 + $0xac] sm:$0xf0]  ;;  %v2962_v21 = vsel %vm2877_vm1, %v2961_v50, %v2912_v52 }
 0x3c5   : > { %v5582_v25 = vor.u32 %v6104_v45, %v5581_v6  ;;  %v5487_v6 = vld [vmem:[#allocation15 + $0xb8] sm:$0xf0] }
 0x3c6   : > { %v2950_v18 = vsel %vm2877_vm1, %v2949_v8, %v2908_v9  ;;  %v5509_v9 = vld [vmem:[#allocation15 + $0xd0] sm:$0xf] }
 0x3c7   : > { %v2956_v61 = vperm.slane %v2950_v18, %v7957_v19  ;;  %v6087_v8 = vld [vmem:[#allocation15 + $0xec] sm:$0xf0]  ;;  %3587 = vmatpush.bf16.msra.mxu0 %v5582_v25  ;;  %3616 = vmatpush.bf16.msra.mxu1 %v5586_v37  ;;  %v5415_v37 = vld [vmem:[#allocation15 + $0x30] sm:$0xf0] }
 0x3c8   : > { %v5510_v2 = vor.u32 %v6087_v8, %v5509_v9  ;;  %v6080_v9 = vld [vmem:[#allocation15 + $0xb4] sm:$0xf0]  ;;  %v6076_v8 = vld [vmem:[#allocation15 + $0x9c] sm:$0xf] }
 0x3c9   : > { %v2973_v15 = vrot.slane %v2956_v61, 4  ;;  %v2976_v7 = vsel %vm2877_vm1, %v2956_v61, %v2975_v62  ;;  %v5477_v62 = vld [vmem:[#allocation15 + $0x90] sm:$0xf]  ;;  %v2880_v61 = vsel %vm2877_vm1, %v7928_v63, %v2879_v26  ;;  %v5486_v45 = vor.u32 %v6080_v9, %v5485_v43  ;;  %v6140_v9 = vld [vmem:[#allocation16 + $0x98] sm:$0xff] }
 0x3ca   : > { %v2990_v14 = vadd.f32 %v2976_v7, %v7461_v59  ;;  %v2960_v59 = vperm.slane %v2952_v10, %v7957_v19  ;;  %3531 = vmatpush.bf16.msra.mxu2 %v5510_v2  ;;  %v5478_v30 = vor.u32 %v6079_v38, %v5477_v62  ;;  %v5479_v7 = vld [vmem:[#allocation15 + $0xb0] sm:$0xf0]  ;;  %v5551_v10 = vld [vmem:[#allocation15 + $0x138] sm:$0xf0]  ;;  %v5490_v49 = vor.u32 %v6076_v8, %v5487_v6  ;;  %v6122_v6 = vld [vmem:[#allocation16 + $0x8] sm:$0xff] }
 0x3cb   : > { %v2974_v0 = vsel %vm2877_vm1, %v2973_v15, %v2932_v3  ;;  %v2937_v3 = vrot.slane %v7977_v27, 4  ;;  %v6075_v15 = vld [vmem:[#allocation15 + $0x94] sm:$0xf]  ;;  %v5554_v54 = vor.u32 %v6092_v35, %v5551_v10  ;;  %3588 = vmatpush.bf16.msra.mxu0 %v5550_v57  ;;  %v5455_v62 = vld [vmem:[#allocation15 + $0x78] sm:$0xf0] }
 0x3cc   : > { %v2989_v33 = vadd.f32 %v2974_v0, %v7458_v5  ;;  %v2998_v51 = vmul.f32 0.5, %v2990_v14  ;;  %v2977_v5 = vrot.slane %v2960_v59, 4  ;;  %v2980_v20 = vsel %vm2877_vm1, %v2960_v59, %v2979_v28  ;;  %v6071_v59 = vld [vmem:[#allocation15 + $0x6c] sm:$0xf0]  ;;  %v5447_v28 = vld [vmem:[#allocation15 + $0x70] sm:$0xf0] }
 0x3cd   : > { %v5482_v63 = vor.u32 %v6075_v15, %v5479_v7  ;;  %v8004_v14 = vperm.slane %v2880_v61, %v7932_v58  ;;  %v2992_v36 = vadd.f32 %v2980_v20, %v7488_v23  ;;  %3617 = vmatpush.bf16.msra.mxu1 %v5554_v54  ;;  %v5445_v23 = vld [vmem:[#allocation15 + $0x50] sm:$0xf]  ;;  %v6059_v61 = vld [vmem:[#allocation15 + $0x14] sm:$0xf]  ;;  %v5421_v15 = vld [vmem:[#allocation15 + $0x18] sm:$0xf] }
 0x3ce   : > { %v2997_v16 = vmul.f32 0.5, %v2989_v33  ;;  %v2978_v18 = vsel %vm2877_vm1, %v2977_v5, %v2936_v12  ;;  %3532 = vmatpush.bf16.msra.mxu2 %v5478_v30  ;;  %v2963_v33 = vrot.slane %v2912_v52, 4  ;;  %v5446_v13 = vor.u32 %v6071_v59, %v5445_v23  ;;  %v6064_v35 = vld [vmem:[#allocation15 + $0x34] sm:$0xf0]  ;;  %v6060_v52 = vld [vmem:[#allocation15 + $0x1c] sm:$0xf] }
 0x3cf   : > { %v2991_v32 = vadd.f32 %v2978_v18, %v7481_v53  ;;  %v2938_v0 = vsel %vm2877_vm1, %v2937_v3, %v8004_v14  ;;  %3561 = vmatpush.bf16.msra.mxu3 %v5482_v63  ;;  %v2968_v53 = vperm.slane %v2962_v21, %v7957_v19  ;;  %v3000_v24 = vmul.f32 0.5, %v2992_v36  ;;  %v6067_v3 = vld [vmem:[#allocation15 + $0x54] sm:$0xf]  ;;  %v5453_v18 = vld [vmem:[#allocation15 + $0x58] sm:$0xf]  ;;  %v6126_v59 = vld [vmem:[#allocation16 + $0x28] sm:$0xff] }
 0x3d0   : > { %v7985_v47 = vpack.c.bf16 %v2998_v51, %v2997_v16  ;;  %v2944_v34 = vperm.slane %v2938_v0, %v7957_v19  ;;  %v6088_v16 = vld [vmem:[#allocation15 + $0xf4] sm:$0xf0]  ;;  %v6084_v51 = vld [vmem:[#allocation15 + $0xdc] sm:$0xf]  ;;  %v5450_v50 = vor.u32 %v6067_v3, %v5447_v28  ;;  %v2964_v38 = vsel %vm2877_vm1, %v7982_v56, %v2963_v33  ;;  %v6141_v3 = vld [vmem:[#allocation16 + $0xa0] sm:$0xff] }
 0x3d1   : > { %v2999_v41 = vmul.f32 0.5, %v2991_v32  ;;  %v2981_v48 = vrot.slane %v2968_v53, 4  ;;  %v5518_v26 = vor.u32 %v6088_v16, %v5517_v44  ;;  %v5522_v5 = vor.u32 %v6084_v51, %v5519_v29  ;;  %v5423_v32 = vld [vmem:[#allocation15 + $0x38] sm:$0xf0]  ;;  %v6134_v44 = vld [vmem:[#allocation16 + $0x68] sm:$0xff]  ;;  %v6151_v16 = vld [vmem:[#allocation16 + $0xf0] sm:$0xff] }
 0x3d2   : > { %3419 = vmatmul.bf16.vlgmr.msrb.gmra.mxu2 %v7985_v47  ;;  %3448 = vmatmul.bf16.vlgmr.msrb.gmra.mxu3 %v7985_v47  ;;  %v2983_v12 = vrot.slane %v2944_v34, 4  ;;  %v5418_v55 = vor.u32 %v6059_v61, %v5415_v37  ;;  %v5454_v20 = vor.u32 %v6072_v39, %v5453_v18  ;;  %v5458_v30 = vor.u32 %v6068_v31, %v5455_v62  ;;  %v6144_v33 = vld [vmem:[#allocation16 + $0xb8] sm:$0xff]  ;;  %v6125_v51 = vld [vmem:[#allocation16 + $0x20] sm:$0xff]  ;;  %v6123_v43 = vld [vmem:[#allocation16 + $0x10] sm:$0xff] }
 0x3d3   : > { %3477 = vmatmul.bf16.vlgmr.msrb.gmra.mxu0 %v7985_v47  ;;  %3506 = vmatmul.bf16.vlgmr.msrb.gmra.mxu1 %v7985_v47  ;;  %v8012_v58 = vpack.c.bf16 %v3000_v24, %v2999_v41  ;;  %v2982_v11 = vsel %vm2877_vm1, %v2981_v48, %v2944_v34  ;;  %v2972_v7 = vperm.slane %v2964_v38, %v7957_v19  ;;  %v6128_v48 = vld [vmem:[#allocation16 + $0x38] sm:$0xff]  ;;  %v6133_v29 = vld [vmem:[#allocation16 + $0x60] sm:$0xff]  ;;  %v6159_v62 = vld [vmem:[#allocation16 + $0x130] sm:$0xff] }
 0x3d4   : > { %3533 = vmatpush.bf16.msra.mxu2 %v5446_v13  ;;  %v2984_v2 = vsel %vm2877_vm1, %v2968_v53, %v2983_v12  ;;  %3589 = vmatpush.bf16.msra.mxu0 %v5518_v26  ;;  %v2993_v25 = vadd.f32 %v2982_v11, %v7475_v1  ;;  %v2939_v1 = vrot.slane %v8004_v14, 4  ;;  %v5422_v10 = vor.u32 %v6064_v35, %v5421_v15  ;;  %v6136_v12 = vld [vmem:[#allocation16 + $0x78] sm:$0xff]  ;;  %v6143_v13 = vld [vmem:[#allocation16 + $0xb0] sm:$0xff]  ;;  %v6142_v11 = vld [vmem:[#allocation16 + $0xa8] sm:$0xff] }
 0x3d5   : > { %3618 = vmatpush.bf16.msra.mxu1 %v5522_v5  ;;  %3562 = vmatpush.bf16.msra.mxu3 %v5450_v50  ;;  %v2994_v42 = vadd.f32 %v2984_v2, %v7478_v40  ;;  %v5426_v54 = vor.u32 %v6060_v52, %v5423_v32  ;;  %v2985_v21 = vrot.slane %v2972_v7, 4  ;;  %v6152_v23 = vld [vmem:[#allocation16 + $0xf8] sm:$0xff]  ;;  %v6150_v26 = vld [vmem:[#allocation16 + $0xe8] sm:$0xff]  ;;  %v6149_v28 = vld [vmem:[#allocation16 + $0xe0] sm:$0xff] }
 0x3d6   : > { %v3001_v57 = vmul.f32 0.5, %v2993_v25  ;;  %v2940_v56 = vsel %vm2877_vm1, %v7977_v27, %v2939_v1  ;;  %v6132_v5 = vld [vmem:[#allocation16 + $0x58] sm:$0xff]  ;;  %v6131_v50 = vld [vmem:[#allocation16 + $0x50] sm:$0xff]  ;;  %v6145_v18 = vld [vmem:[#allocation16 + $0xc0] sm:$0xff] }
 0x3d7   : > { %v3002_v40 = vmul.f32 0.5, %v2994_v42  ;;  %v2948_v14 = vperm.slane %v2940_v56, %v7957_v19  ;;  %v6148_v8 = vld [vmem:[#allocation16 + $0xd8] sm:$0xff]  ;;  %v6147_v2 = vld [vmem:[#allocation16 + $0xd0] sm:$0xff]  ;;  %v6121_v25 = vld [vmem:[#allocation16] sm:$0xff] }
 0x3d8   : > { %3534 = vmatpush.bf16.msra.mxu2 %v5414_v4  ;;  %3590 = vmatpush.bf16.msra.mxu0 %v5486_v45  ;;  %v6130_v45 = vld [vmem:[#allocation16 + $0x48] sm:$0xff]  ;;  %v6129_v4 = vld [vmem:[#allocation16 + $0x40] sm:$0xff]  ;;  %v6160_v39 = vld [vmem:[#allocation16 + $0x138] sm:$0xff] }
 0x3d9   : > { %3619 = vmatpush.bf16.msra.mxu1 %v5490_v49  ;;  %3563 = vmatpush.bf16.msra.mxu3 %v5418_v55  ;;  %v8028_v63 = vpack.c.bf16 %v3002_v40, %v3001_v57  ;;  %v2987_v27 = vrot.slane %v2948_v14, 4  ;;  %v2986_v36 = vsel %vm2877_vm1, %v2985_v21, %v2948_v14  ;;  %v6138_v49 = vld [vmem:[#allocation16 + $0x88] sm:$0xff]  ;;  %v6168_v31 = vld [vmem:[#allocation16 + $0x178] sm:$0xff]  ;;  %v6167_v42 = vld [vmem:[#allocation16 + $0x170] sm:$0xff] }
 0x3da   : > { %v2995_v41 = vadd.f32 %v2986_v36, %v7499_v46  ;;  %v6127_v46 = vld [vmem:[#allocation16 + $0x30] sm:$0xff]  ;;  %v6176_v55 = vld [vmem:[#allocation16 + $0x1b8] sm:$0xff]  ;;  %v6158_v57 = vld [vmem:[#allocation16 + $0x128] sm:$0xff] }
 0x3db   : > { %v2988_v0 = vsel %vm2877_vm1, %v2972_v7, %v2987_v27  ;;  %v8064_v61 = vld [vmem:[%s8292_s6] sm:$0xff] }
 0x3dc   : > { %3591 = vmatpush.bf16.msra.mxu0 %v5454_v20  ;;  %v2996_v19 = vadd.f32 %v2988_v0, %v7502_v17  ;;  %v3003_v53 = vmul.f32 0.5, %v2995_v41  ;;  %4255 = vmatpush.bf16.msrb.mxu2 %v6128_v48  ;;  %v6135_v17 = vld [vmem:[#allocation16 + $0x70] sm:$0xff]  ;;  %v8067_v20 = vperm.slane %v8064_v61, 2  ;;  %v6184_v1 = vld [vmem:[#allocation16 + $0x1f8] sm:$0xff]  ;;  %v8075_v32 = vperm.slane %v8064_v61, 0 }
 0x3dd   : > { %3620 = vmatpush.bf16.msra.mxu1 %v5458_v30  ;;  %4284 = vmatpush.bf16.msrb.mxu3 %v6136_v12  ;;  %v8070_v30 = vperm.slane %v8064_v61, 3  ;;  %v8078_v56 = vperm.slane %v8064_v61, 1 }
 0x3de   : > { %v3004_v34 = vmul.f32 0.5, %v2996_v19  ;;  %v6183_v19 = vld [vmem:[#allocation16 + $0x1f0] sm:$0xff] }
 0x3e0   : > { %3592 = vmatpush.bf16.msra.mxu0 %v5422_v10  ;;  %v8039_v24 = vpack.c.bf16 %v3004_v34, %v3003_v53  ;;  %4256 = vmatpush.bf16.msrb.mxu2 %v6127_v46  ;;  %v6166_v10 = vld [vmem:[#allocation16 + $0x168] sm:$0xff]  ;;  %v6157_v53 = vld [vmem:[#allocation16 + $0x120] sm:$0xff] }
 0x3e1   : > { %3621 = vmatpush.bf16.msra.mxu1 %v5426_v54  ;;  %4285 = vmatpush.bf16.msrb.mxu3 %v6135_v17  ;;  %v6175_v54 = vld [vmem:[#allocation16 + $0x1b0] sm:$0xff] }
 0x3e2   : > { %3424 = vmatmul.bf16.gmra.mxu2 %v8012_v58  ;;  %3453 = vmatmul.bf16.gmra.mxu3 %v8012_v58 }
 0x3e3   : > { %3482 = vmatmul.bf16.gmra.mxu0 %v8012_v58  ;;  %3511 = vmatmul.bf16.gmra.mxu1 %v8012_v58 }
 0x3e4   : > { %4313 = vmatpush.bf16.msrb.mxu0 %v6144_v33  ;;  %4257 = vmatpush.bf16.msrb.mxu2 %v6126_v59 }
 0x3e5   : > { %4342 = vmatpush.bf16.msrb.mxu1 %v6152_v23  ;;  %4286 = vmatpush.bf16.msrb.mxu3 %v6134_v44 }
 0x3e8   : > { %4314 = vmatpush.bf16.msrb.mxu0 %v6143_v13  ;;  %4258 = vmatpush.bf16.msrb.mxu2 %v6125_v51 }
 0x3e9   : > { %4343 = vmatpush.bf16.msrb.mxu1 %v6151_v16  ;;  %4287 = vmatpush.bf16.msrb.mxu3 %v6133_v29 }
 0x3ec   : > { %4315 = vmatpush.bf16.msrb.mxu0 %v6142_v11  ;;  %v6165_v11 = vld [vmem:[#allocation16 + $0x160] sm:$0xff] }
 0x3ed   : > { %4344 = vmatpush.bf16.msrb.mxu1 %v6150_v26  ;;  %4288 = vmatpush.bf16.msrb.mxu3 %v6132_v5  ;;  %v6174_v26 = vld [vmem:[#allocation16 + $0x1a8] sm:$0xff] }
 0x3f0   : > { %4316 = vmatpush.bf16.msrb.mxu0 %v6141_v3  ;;  %v6182_v3 = vld [vmem:[#allocation16 + $0x1e8] sm:$0xff] }
 0x3f1   : > { %4345 = vmatpush.bf16.msrb.mxu1 %v6149_v28  ;;  %4289 = vmatpush.bf16.msrb.mxu3 %v6131_v50  ;;  %v6156_v28 = vld [vmem:[#allocation16 + $0x118] sm:$0xff] }
 0x3f2   : > { %3429 = vmatmul.bf16.gmra.mxu2 %v8028_v63  ;;  %3458 = vmatmul.bf16.gmra.mxu3 %v8028_v63 }
 0x3f3   : > { %3487 = vmatmul.bf16.gmra.mxu0 %v8028_v63  ;;  %3516 = vmatmul.bf16.gmra.mxu1 %v8028_v63 }
 0x3f4   : > { %4317 = vmatpush.bf16.msrb.mxu0 %v6140_v9 }
 0x3f5   : > { %4346 = vmatpush.bf16.msrb.mxu1 %v6148_v8  ;;  %4290 = vmatpush.bf16.msrb.mxu3 %v6130_v45  ;;  %v6173_v45 = vld [vmem:[#allocation16 + $0x1a0] sm:$0xff] }
 0x3f9   : > { %4347 = vmatpush.bf16.msrb.mxu1 %v6147_v2  ;;  %4291 = vmatpush.bf16.msrb.mxu3 %v6129_v4  ;;  %v6164_v2 = vld [vmem:[#allocation16 + $0x158] sm:$0xff] }
 0x3fd   : > { %4348 = vmatpush.bf16.msrb.mxu1 %v6146_v60 }
 0x401   : > { %4349 = vmatpush.bf16.msrb.mxu1 %v6145_v18 }
 0x402   : > { %3434 = vmatmul.bf16.gmra.mxu2 %v8039_v24  ;;  %3463 = vmatmul.bf16.gmra.mxu3 %v8039_v24 }
 0x403   : > { %3492 = vmatmul.bf16.gmra.mxu0 %v8039_v24  ;;  %3521 = vmatmul.bf16.gmra.mxu1 %v8039_v24 }
 0x412   : > { %3535 = vmatmul.bf16.vlgmr.msra.gmra.mxu2 %v7985_v47  ;;  %3564 = vmatmul.bf16.vlgmr.msra.gmra.mxu3 %v7985_v47 }
 0x413   : > { %3593 = vmatmul.bf16.vlgmr.msra.gmra.mxu0 %v7985_v47  ;;  %3622 = vmatmul.bf16.vlgmr.msra.gmra.mxu1 %v7985_v47  ;;  %v6124_v47 = vld [vmem:[#allocation16 + $0x18] sm:$0xff] }
 0x414   : > { %4259 = vmatpush.bf16.msrb.mxu2 %v6124_v47  ;;  %4400 = vmatpush.bf16.msra.mxu3 %v6168_v31  ;;  %v6155_v31 = vld [vmem:[#allocation16 + $0x110] sm:$0xff] }
 0x415   : > { %4458 = vmatpush.bf16.msra.mxu1 %v6184_v1 }
 0x418   : > { %4260 = vmatpush.bf16.msrb.mxu2 %v6123_v43  ;;  %4401 = vmatpush.bf16.msra.mxu3 %v6167_v42 }
 0x419   : > { %4459 = vmatpush.bf16.msra.mxu1 %v6183_v19  ;;  %v6154_v19 = vld [vmem:[#allocation16 + $0x108] sm:$0xff] }
 0x41c   : > { %4261 = vmatpush.bf16.msrb.mxu2 %v6122_v6  ;;  %4402 = vmatpush.bf16.msra.mxu3 %v6166_v10 }
 0x41d   : > { %4460 = vmatpush.bf16.msra.mxu1 %v6182_v3 }
 0x420   : > { %4262 = vmatpush.bf16.msrb.mxu2 %v6121_v25  ;;  %4403 = vmatpush.bf16.msra.mxu3 %v6165_v11 }
 0x422   : > { %3540 = vmatmul.bf16.gmra.mxu2 %v8012_v58  ;;  %3569 = vmatmul.bf16.gmra.mxu3 %v8012_v58 }
 0x423   : > { %3598 = vmatmul.bf16.gmra.mxu0 %v8012_v58  ;;  %3627 = vmatmul.bf16.gmra.mxu1 %v8012_v58  ;;  %v6139_v58 = vld [vmem:[#allocation16 + $0x90] sm:$0xff] }
 0x424   : > { %4318 = vmatpush.bf16.msrb.mxu0 %v6139_v58  ;;  %4371 = vmatpush.bf16.msra.mxu2 %v6160_v39  ;;  %v6181_v39 = vld [vmem:[#allocation16 + $0x1e0] sm:$0xff] }
 0x425   : > { %4404 = vmatpush.bf16.msra.mxu3 %v6164_v2  ;;  %4461 = vmatpush.bf16.msra.mxu1 %v6181_v39 }
 0x428   : > { %4319 = vmatpush.bf16.msrb.mxu0 %v6138_v49  ;;  %4372 = vmatpush.bf16.msra.mxu2 %v6159_v62 }
 0x42c   : > { %4320 = vmatpush.bf16.msrb.mxu0 %v6137_v22  ;;  %4373 = vmatpush.bf16.msra.mxu2 %v6158_v57 }
 0x430   : > { %4429 = vmatpush.bf16.msra.mxu0 %v6176_v55  ;;  %4374 = vmatpush.bf16.msra.mxu2 %v6157_v53 }
 0x432   : > { %3545 = vmatmul.bf16.gmra.mxu2 %v8028_v63  ;;  %3574 = vmatmul.bf16.gmra.mxu3 %v8028_v63 }
 0x433   : > { %3603 = vmatmul.bf16.gmra.mxu0 %v8028_v63  ;;  %3632 = vmatmul.bf16.gmra.mxu1 %v8028_v63 }
 0x434   : > { %4430 = vmatpush.bf16.msra.mxu0 %v6175_v54  ;;  %4375 = vmatpush.bf16.msra.mxu2 %v6156_v28  ;;  %v6163_v54 = vld [vmem:[#allocation16 + $0x150] sm:$0xff] }
 0x435   : > { %4405 = vmatpush.bf16.msra.mxu3 %v6163_v54 }
 0x438   : > { %4431 = vmatpush.bf16.msra.mxu0 %v6174_v26  ;;  %4376 = vmatpush.bf16.msra.mxu2 %v6155_v31 }
 0x43c   : > { %4432 = vmatpush.bf16.msra.mxu0 %v6173_v45  ;;  %4377 = vmatpush.bf16.msra.mxu2 %v6154_v19 }
 0x442   : > { %3550 = vmatmul.bf16.gmra.mxu2 %v8039_v24  ;;  %3579 = vmatmul.bf16.gmra.mxu3 %v8039_v24 }
 0x443   : > { %3608 = vmatmul.bf16.gmra.mxu0 %v8039_v24  ;;  %3637 = vmatmul.bf16.gmra.mxu1 %v8039_v24 }
 0x450   : > { %v3478_v37 = vpop.f32.mrf.mxu0  ;;  %v3507_v38 = vpop.f32.mrf.mxu1 }
 0x451   : > { %v3479_v35 = vadd.f32 %v3478_v37, %v8067_v20  ;;  %v3508_v52 = vadd.f32 %v3507_v38, %v8070_v30 }
 0x453   : > { %v3645_v27 = vmax.f32 %v3479_v35, 0.0  ;;  %v3646_v36 = vmax.f32 %v3508_v52, 0.0 }
 0x455   : > { %v3420_v15 = vpop.f32.mrf.mxu2  ;;  %v3449_v7 = vpop.f32.mrf.mxu3 }
 0x456   : > { %v3421_v34 = vadd.f32 %v3420_v15, %v8075_v32  ;;  %v3450_v24 = vadd.f32 %v3449_v7, %v8078_v56 }
 0x458   : > { %v3480_v40 = vpop.f32.mrf.mxu0  ;;  %v3509_v63 = vpop.f32.mrf.mxu1  ;;  %v3643_v59 = vmax.f32 %v3421_v34, 0.0  ;;  %v3644_v44 = vmax.f32 %v3450_v24, 0.0 }
 0x459   : > { %v3481_v14 = vadd.f32 %v3480_v40, %v8067_v20  ;;  %v3510_v21 = vadd.f32 %v3509_v63, %v8070_v30 }
 0x45b   : > { %v3653_v0 = vmax.f32 %v3481_v14, 0.0  ;;  %v3654_v41 = vmax.f32 %v3510_v21, 0.0  ;;  %v6172_v14 = vld [vmem:[#allocation16 + $0x198] sm:$0xff] }
 0x45c   : > { %v6180_v21 = vld [vmem:[#allocation16 + $0x1d8] sm:$0xff]  ;;  %4433 = vmatpush.bf16.msra.mxu0 %v6172_v14 }
 0x45d   : > { %v3709_v48 = vpack.c.bf16 %v3653_v0, %v3645_v27  ;;  %v3710_v12 = vpack.c.bf16 %v3654_v41, %v3646_v36  ;;  %v3422_v33 = vpop.f32.mrf.mxu2  ;;  %v3451_v23 = vpop.f32.mrf.mxu3  ;;  %4462 = vmatpush.bf16.msra.mxu1 %v6180_v21  ;;  %v6171_v0 = vld [vmem:[#allocation16 + $0x190] sm:$0xff] }
 0x45e   : > { %v3423_v46 = vadd.f32 %v3422_v33, %v8075_v32  ;;  %v3452_v17 = vadd.f32 %v3451_v23, %v8078_v56  ;;  %v6179_v41 = vld [vmem:[#allocation16 + $0x1d0] sm:$0xff]  ;;  %v6162_v23 = vld [vmem:[#allocation16 + $0x148] sm:$0xff] }
 0x45f   : > { %4321 = vmatmul.bf16.vlgmr.msrb.gmra.mxu0 %v3709_v48  ;;  %4350 = vmatmul.bf16.vlgmr.msrb.gmra.mxu1 %v3710_v12 }
 0x460   : > { %v3651_v13 = vmax.f32 %v3423_v46, 0.0  ;;  %v3652_v16 = vmax.f32 %v3452_v17, 0.0  ;;  %v3483_v51 = vpop.f32.mrf.mxu0  ;;  %v3512_v29 = vpop.f32.mrf.mxu1  ;;  %4434 = vmatpush.bf16.msra.mxu0 %v6171_v0  ;;  %4406 = vmatpush.bf16.msra.mxu3 %v6162_v23  ;;  %v8119_v23 = vperm.slane %v8064_v61, 4 }
 0x461   : > { %v3484_v9 = vadd.f32 %v3483_v51, %v8067_v20  ;;  %v3513_v8 = vadd.f32 %v3512_v29, %v8070_v30  ;;  %4463 = vmatpush.bf16.msra.mxu1 %v6179_v41 }
 0x462   : > { %v3707_v47 = vpack.c.bf16 %v3651_v13, %v3643_v59  ;;  %v3708_v5 = vpack.c.bf16 %v3652_v16, %v3644_v44  ;;  %v6170_v59 = vld [vmem:[#allocation16 + $0x188] sm:$0xff] }
 0x463   : > { %v3661_v22 = vmax.f32 %v3484_v9, 0.0  ;;  %v3662_v18 = vmax.f32 %v3513_v8, 0.0  ;;  %v6178_v44 = vld [vmem:[#allocation16 + $0x1c8] sm:$0xff]  ;;  %v6153_v9 = vld [vmem:[#allocation16 + $0x100] sm:$0xff] }
 0x464   : > { %4263 = vmatmul.bf16.vlgmr.msrb.gmra.mxu2 %v3707_v47  ;;  %4292 = vmatmul.bf16.vlgmr.msrb.gmra.mxu3 %v3708_v5 }
 0x465   : > { %v3425_v43 = vpop.f32.mrf.mxu2  ;;  %v3454_v50 = vpop.f32.mrf.mxu3  ;;  %4435 = vmatpush.bf16.msra.mxu0 %v6170_v59  ;;  %4464 = vmatpush.bf16.msra.mxu1 %v6178_v44 }
 0x466   : > { %v3426_v62 = vadd.f32 %v3425_v43, %v8075_v32  ;;  %v3455_v37 = vadd.f32 %v3454_v50, %v8078_v56  ;;  %v6169_v43 = vld [vmem:[#allocation16 + $0x180] sm:$0xff]  ;;  %4378 = vmatpush.bf16.msra.mxu2 %v6153_v9 }
 0x467   : > { %v6177_v50 = vld [vmem:[#allocation16 + $0x1c0] sm:$0xff] }
 0x468   : > { %v3485_v58 = vpop.f32.mrf.mxu0  ;;  %v3514_v6 = vpop.f32.mrf.mxu1  ;;  %v3659_v7 = vmax.f32 %v3426_v62, 0.0  ;;  %v3660_v35 = vmax.f32 %v3455_v37, 0.0 }
 0x469   : > { %v3486_v49 = vadd.f32 %v3485_v58, %v8067_v20  ;;  %v3515_v60 = vadd.f32 %v3514_v6, %v8070_v30  ;;  %4436 = vmatpush.bf16.msra.mxu0 %v6169_v43  ;;  %4465 = vmatpush.bf16.msra.mxu1 %v6177_v50 }
 0x46b   : > { %v3669_v25 = vmax.f32 %v3486_v49, 0.0  ;;  %v3670_v4 = vmax.f32 %v3515_v60, 0.0 }
 0x46d   : > { %v3427_v38 = vpop.f32.mrf.mxu2  ;;  %v3456_v42 = vpop.f32.mrf.mxu3  ;;  %v3717_v55 = vpack.c.bf16 %v3669_v25, %v3661_v22  ;;  %v3718_v1 = vpack.c.bf16 %v3670_v4, %v3662_v18  ;;  %v6161_v4 = vld [vmem:[#allocation16 + $0x140] sm:$0xff] }
 0x46e   : > { %v3428_v57 = vadd.f32 %v3427_v38, %v8075_v32  ;;  %v3457_v15 = vadd.f32 %v3456_v42, %v8078_v56  ;;  %4407 = vmatpush.bf16.msra.mxu3 %v6161_v4 }
 0x46f   : > { %4326 = vmatmul.bf16.gmra.mxu0 %v3717_v55  ;;  %4355 = vmatmul.bf16.gmra.mxu1 %v3718_v1 }
 0x470   : > { %v3667_v52 = vmax.f32 %v3428_v57, 0.0  ;;  %v3668_v40 = vmax.f32 %v3457_v15, 0.0  ;;  %v3488_v63 = vpop.f32.mrf.mxu0  ;;  %v3517_v10 = vpop.f32.mrf.mxu1 }
 0x471   : > { %v3489_v24 = vadd.f32 %v3488_v63, %v8067_v20  ;;  %v3518_v48 = vadd.f32 %v3517_v10, %v8070_v30 }
 0x472   : > { %v3715_v27 = vpack.c.bf16 %v3667_v52, %v3659_v7  ;;  %v3716_v36 = vpack.c.bf16 %v3668_v40, %v3660_v35 }
 0x473   : > { %v3677_v13 = vmax.f32 %v3489_v24, 0.0  ;;  %v3678_v16 = vmax.f32 %v3518_v48, 0.0  ;;  %v8111_v24 = vperm.slane %v8064_v61, 6  ;;  %v8114_v48 = vperm.slane %v8064_v61, 7 }
 0x474   : > { %4268 = vmatmul.bf16.gmra.mxu2 %v3715_v27  ;;  %4297 = vmatmul.bf16.gmra.mxu3 %v3716_v36 }
 0x475   : > { %v3430_v53 = vpop.f32.mrf.mxu2  ;;  %v3459_v34 = vpop.f32.mrf.mxu3 }
 0x476   : > { %v3431_v11 = vadd.f32 %v3430_v53, %v8075_v32  ;;  %v3460_v26 = vadd.f32 %v3459_v34, %v8078_v56 }
 0x478   : > { %v3490_v12 = vpop.f32.mrf.mxu0  ;;  %v3519_v33 = vpop.f32.mrf.mxu1  ;;  %v3675_v6 = vmax.f32 %v3431_v11, 0.0  ;;  %v3676_v2 = vmax.f32 %v3460_v26, 0.0 }
 0x479   : > { %v3491_v46 = vadd.f32 %v3490_v12, %v8067_v20  ;;  %v3520_v17 = vadd.f32 %v3519_v33, %v8070_v30 }
 0x47b   : > { %v3685_v51 = vmax.f32 %v3491_v46, 0.0  ;;  %v3686_v29 = vmax.f32 %v3520_v17, 0.0  ;;  %v8122_v46 = vperm.slane %v8064_v61, 5 }
 0x47d   : > { %v3432_v47 = vpop.f32.mrf.mxu2  ;;  %v3461_v5 = vpop.f32.mrf.mxu3  ;;  %v3725_v3 = vpack.c.bf16 %v3685_v51, %v3677_v13  ;;  %v3726_v28 = vpack.c.bf16 %v3686_v29, %v3678_v16 }
 0x47e   : > { %v3433_v8 = vadd.f32 %v3432_v47, %v8075_v32  ;;  %v3462_v58 = vadd.f32 %v3461_v5, %v8078_v56 }
 0x47f   : > { %4331 = vmatmul.bf16.gmra.mxu0 %v3725_v3  ;;  %4360 = vmatmul.bf16.gmra.mxu1 %v3726_v28 }
 0x480   : > { %v3683_v45 = vmax.f32 %v3433_v8, 0.0  ;;  %v3684_v49 = vmax.f32 %v3462_v58, 0.0  ;;  %v3493_v60 = vpop.f32.mrf.mxu0  ;;  %v3522_v22 = vpop.f32.mrf.mxu1 }
 0x481   : > { %v3494_v62 = vadd.f32 %v3493_v60, %v8067_v20  ;;  %v3523_v37 = vadd.f32 %v3522_v22, %v8070_v30 }
 0x482   : > { %v3723_v18 = vpack.c.bf16 %v3683_v45, %v3675_v6  ;;  %v3724_v25 = vpack.c.bf16 %v3684_v49, %v3676_v2 }
 0x483   : > { %v3693_v57 = vmax.f32 %v3494_v62, 0.0  ;;  %v3694_v15 = vmax.f32 %v3523_v37, 0.0 }
 0x484   : > { %4273 = vmatmul.bf16.gmra.mxu2 %v3723_v18  ;;  %4302 = vmatmul.bf16.gmra.mxu3 %v3724_v25 }
 0x485   : > { %v3435_v39 = vpop.f32.mrf.mxu2  ;;  %v3464_v31 = vpop.f32.mrf.mxu3 }
 0x486   : > { %v3436_v52 = vadd.f32 %v3435_v39, %v8075_v32  ;;  %v3465_v40 = vadd.f32 %v3464_v31, %v8078_v56 }
 0x488   : > { %v3495_v38 = vpop.f32.mrf.mxu0  ;;  %v3524_v42 = vpop.f32.mrf.mxu1 }
 0x489   : > { %v3496_v55 = vadd.f32 %v3495_v38, %v8067_v20  ;;  %v3525_v1 = vadd.f32 %v3524_v42, %v8070_v30  ;;  %v3691_v20 = vmax.f32 %v3436_v52, 0.0  ;;  %v3692_v30 = vmax.f32 %v3465_v40, 0.0 }
 0x48b   : > { %v3701_v7 = vmax.f32 %v3496_v55, 0.0  ;;  %v3702_v35 = vmax.f32 %v3525_v1, 0.0 }
 0x48d   : > { %v3437_v63 = vpop.f32.mrf.mxu2  ;;  %v3466_v10 = vpop.f32.mrf.mxu3  ;;  %v3733_v54 = vpack.c.bf16 %v3701_v7, %v3693_v57  ;;  %v3734_v14 = vpack.c.bf16 %v3702_v35, %v3694_v15 }
 0x48e   : > { %v3438_v21 = vadd.f32 %v3437_v63, %v8075_v32  ;;  %v3467_v27 = vadd.f32 %v3466_v10, %v8078_v56 }
 0x48f   : > { %4336 = vmatmul.bf16.gmra.mxu0 %v3733_v54  ;;  %4365 = vmatmul.bf16.gmra.mxu1 %v3734_v14 }
 0x490   : > { %v3699_v36 = vmax.f32 %v3438_v21, 0.0  ;;  %v3700_v0 = vmax.f32 %v3467_v27, 0.0  ;;  %v3594_v41 = vpop.f32.mrf.mxu0  ;;  %v3623_v19 = vpop.f32.mrf.mxu1 }
 0x491   : > { %v3595_v12 = vadd.f32 %v3594_v41, %v8111_v24  ;;  %v3624_v33 = vadd.f32 %v3623_v19, %v8114_v48 }
 0x492   : > { %v3731_v53 = vpack.c.bf16 %v3699_v36, %v3691_v20  ;;  %v3732_v34 = vpack.c.bf16 %v3700_v0, %v3692_v30 }
 0x493   : > { %v3649_v16 = vmax.f32 %v3595_v12, 0.0  ;;  %v3650_v51 = vmax.f32 %v3624_v33, 0.0 }
 0x494   : > { %4278 = vmatmul.bf16.gmra.mxu2 %v3731_v53  ;;  %4307 = vmatmul.bf16.gmra.mxu3 %v3732_v34 }
 0x495   : > { %v3536_v32 = vpop.f32.mrf.mxu2  ;;  %v3565_v56 = vpop.f32.mrf.mxu3 }
 0x496   : > { %v3537_v26 = vadd.f32 %v3536_v32, %v8119_v23  ;;  %v3566_v47 = vadd.f32 %v3565_v56, %v8122_v46 }
 0x498   : > { %v3596_v17 = vpop.f32.mrf.mxu0  ;;  %v3625_v59 = vpop.f32.mrf.mxu1  ;;  %v3647_v9 = vmax.f32 %v3537_v26, 0.0  ;;  %v3648_v8 = vmax.f32 %v3566_v47, 0.0 }
 0x499   : > { %v3597_v44 = vadd.f32 %v3596_v17, %v8111_v24  ;;  %v3626_v13 = vadd.f32 %v3625_v59, %v8114_v48 }
 0x49b   : > { %v3657_v29 = vmax.f32 %v3597_v44, 0.0  ;;  %v3658_v11 = vmax.f32 %v3626_v13, 0.0 }
 0x49d   : > { %v3713_v5 = vpack.c.bf16 %v3657_v29, %v3649_v16  ;;  %v3714_v3 = vpack.c.bf16 %v3658_v11, %v3650_v51  ;;  %v3538_v28 = vpop.f32.mrf.mxu2  ;;  %v3567_v43 = vpop.f32.mrf.mxu3 }
 0x49e   : > { %v3539_v61 = vadd.f32 %v3538_v28, %v8119_v23  ;;  %v3568_v50 = vadd.f32 %v3567_v43, %v8122_v46 }
 0x49f   : > { %4437 = vmatmul.bf16.vlgmr.msra.gmra.mxu0 %v3713_v5  ;;  %4466 = vmatmul.bf16.vlgmr.msra.gmra.mxu1 %v3714_v3 }
 0x4a0   : > { %v3655_v58 = vmax.f32 %v3539_v61, 0.0  ;;  %v3656_v6 = vmax.f32 %v3568_v50, 0.0  ;;  %v3599_v2 = vpop.f32.mrf.mxu0  ;;  %v3628_v45 = vpop.f32.mrf.mxu1 }
 0x4a1   : > { %v3600_v25 = vadd.f32 %v3599_v2, %v8111_v24  ;;  %v3629_v4 = vadd.f32 %v3628_v45, %v8114_v48 }
 0x4a2   : > { %v3711_v49 = vpack.c.bf16 %v3655_v58, %v3647_v9  ;;  %v3712_v60 = vpack.c.bf16 %v3656_v6, %v3648_v8 }
 0x4a3   : > { %v3665_v38 = vmax.f32 %v3600_v25, 0.0  ;;  %v3666_v42 = vmax.f32 %v3629_v4, 0.0 }
 0x4a4   : > { %4379 = vmatmul.bf16.vlgmr.msra.gmra.mxu2 %v3711_v49  ;;  %4408 = vmatmul.bf16.vlgmr.msra.gmra.mxu3 %v3712_v60 }
 0x4a5   : > { %v3541_v22 = vpop.f32.mrf.mxu2  ;;  %v3570_v18 = vpop.f32.mrf.mxu3 }
 0x4a6   : > { %v3542_v57 = vadd.f32 %v3541_v22, %v8119_v23  ;;  %v3571_v15 = vadd.f32 %v3570_v18, %v8122_v46 }
 0x4a8   : > { %v3601_v39 = vpop.f32.mrf.mxu0  ;;  %v3630_v31 = vpop.f32.mrf.mxu1  ;;  %v3663_v54 = vmax.f32 %v3542_v57, 0.0  ;;  %v3664_v14 = vmax.f32 %v3571_v15, 0.0 }
 0x4a9   : > { %v3602_v62 = vadd.f32 %v3601_v39, %v8111_v24  ;;  %v3631_v37 = vadd.f32 %v3630_v31, %v8114_v48 }
 0x4ab   : > { %v3673_v55 = vmax.f32 %v3602_v62, 0.0  ;;  %v3674_v1 = vmax.f32 %v3631_v37, 0.0 }
 0x4ad   : > { %v3721_v7 = vpack.c.bf16 %v3673_v55, %v3665_v38  ;;  %v3722_v35 = vpack.c.bf16 %v3674_v1, %v3666_v42  ;;  %v3543_v52 = vpop.f32.mrf.mxu2  ;;  %v3572_v40 = vpop.f32.mrf.mxu3 }
 0x4ae   : > { %v3544_v63 = vadd.f32 %v3543_v52, %v8119_v23  ;;  %v3573_v10 = vadd.f32 %v3572_v40, %v8122_v46 }
 0x4af   : > { %4442 = vmatmul.bf16.gmra.mxu0 %v3721_v7  ;;  %4471 = vmatmul.bf16.gmra.mxu1 %v3722_v35 }
 0x4b0   : > { %v3671_v21 = vmax.f32 %v3544_v63, 0.0  ;;  %v3672_v27 = vmax.f32 %v3573_v10, 0.0  ;;  %v3604_v20 = vpop.f32.mrf.mxu0  ;;  %v3633_v30 = vpop.f32.mrf.mxu1 }
 0x4b1   : > { %v3605_v53 = vadd.f32 %v3604_v20, %v8111_v24  ;;  %v3634_v34 = vadd.f32 %v3633_v30, %v8114_v48  ;;  %v8154_v20 = vld [vmem:[#allocation18] ss:$0 sm:$0xff] }
 0x4b2   : > { %v3719_v36 = vpack.c.bf16 %v3671_v21, %v3663_v54  ;;  %v3720_v0 = vpack.c.bf16 %v3672_v27, %v3664_v14 }
 0x4b3   : > { %v3681_v17 = vmax.f32 %v3605_v53, 0.0  ;;  %v3682_v59 = vmax.f32 %v3634_v34, 0.0 }
 0x4b4   : > { %4384 = vmatmul.bf16.gmra.mxu2 %v3719_v36  ;;  %4413 = vmatmul.bf16.gmra.mxu3 %v3720_v0 }
 0x4b5   : > { %v3546_v41 = vpop.f32.mrf.mxu2  ;;  %v3575_v19 = vpop.f32.mrf.mxu3 }
 0x4b6   : > { %v3547_v16 = vadd.f32 %v3546_v41, %v8119_v23  ;;  %v3576_v51 = vadd.f32 %v3575_v19, %v8122_v46 }
 0x4b8   : > { %v3606_v32 = vpop.f32.mrf.mxu0  ;;  %v3635_v56 = vpop.f32.mrf.mxu1  ;;  %v3679_v28 = vmax.f32 %v3547_v16, 0.0  ;;  %v3680_v43 = vmax.f32 %v3576_v51, 0.0 }
 0x4b9   : > { %v3607_v12 = vadd.f32 %v3606_v32, %v8111_v24  ;;  %v3636_v33 = vadd.f32 %v3635_v56, %v8114_v48 }
 0x4bb   : > { %v3689_v44 = vmax.f32 %v3607_v12, 0.0  ;;  %v3690_v13 = vmax.f32 %v3636_v33, 0.0 }
 0x4bd   : > { %v3729_v29 = vpack.c.bf16 %v3689_v44, %v3681_v17  ;;  %v3730_v11 = vpack.c.bf16 %v3690_v13, %v3682_v59  ;;  %v3548_v26 = vpop.f32.mrf.mxu2  ;;  %v3577_v47 = vpop.f32.mrf.mxu3 }
 0x4be   : > { %v3549_v5 = vadd.f32 %v3548_v26, %v8119_v23  ;;  %v3578_v3 = vadd.f32 %v3577_v47, %v8122_v46 }
 0x4bf   : > { %4447 = vmatmul.bf16.gmra.mxu0 %v3729_v29  ;;  %4476 = vmatmul.bf16.gmra.mxu1 %v3730_v11 }
 0x4c0   : > { %v3687_v61 = vmax.f32 %v3549_v5, 0.0  ;;  %v3688_v50 = vmax.f32 %v3578_v3, 0.0  ;;  %v3609_v9 = vpop.f32.mrf.mxu0  ;;  %v3638_v8 = vpop.f32.mrf.mxu1 }
 0x4c1   : > { %v3610_v49 = vadd.f32 %v3609_v9, %v8111_v24  ;;  %v3639_v60 = vadd.f32 %v3638_v8, %v8114_v48 }
 0x4c2   : > { %v3727_v58 = vpack.c.bf16 %v3687_v61, %v3679_v28  ;;  %v3728_v6 = vpack.c.bf16 %v3688_v50, %v3680_v43 }
 0x4c3   : > { %v3697_v39 = vmax.f32 %v3610_v49, 0.0  ;;  %v3698_v31 = vmax.f32 %v3639_v60, 0.0 }
 0x4c4   : > { %4389 = vmatmul.bf16.gmra.mxu2 %v3727_v58  ;;  %4418 = vmatmul.bf16.gmra.mxu3 %v3728_v6 }
 0x4c5   : > { %v3551_v2 = vpop.f32.mrf.mxu2  ;;  %v3580_v45 = vpop.f32.mrf.mxu3 }
 0x4c6   : > { %v3552_v38 = vadd.f32 %v3551_v2, %v8119_v23  ;;  %v3581_v42 = vadd.f32 %v3580_v45, %v8122_v46 }
 0x4c8   : > { %v3611_v22 = vpop.f32.mrf.mxu0  ;;  %v3640_v18 = vpop.f32.mrf.mxu1 }
 0x4c9   : > { %v3612_v25 = vadd.f32 %v3611_v22, %v8111_v24  ;;  %v3641_v4 = vadd.f32 %v3640_v18, %v8114_v48  ;;  %v3695_v24 = vmax.f32 %v3552_v38, 0.0  ;;  %v3696_v48 = vmax.f32 %v3581_v42, 0.0 }
 0x4cb   : > { %v3705_v62 = vmax.f32 %v3612_v25, 0.0  ;;  %v3706_v37 = vmax.f32 %v3641_v4, 0.0 }
 0x4cd   : > { %v3737_v55 = vpack.c.bf16 %v3705_v62, %v3697_v39  ;;  %v3738_v1 = vpack.c.bf16 %v3706_v37, %v3698_v31  ;;  %v3553_v57 = vpop.f32.mrf.mxu2  ;;  %v3582_v15 = vpop.f32.mrf.mxu3 }
 0x4ce   : > { %v3554_v7 = vadd.f32 %v3553_v57, %v8119_v23  ;;  %v3583_v35 = vadd.f32 %v3582_v15, %v8122_v46 }
 0x4cf   : > { %4452 = vmatmul.bf16.gmra.mxu0 %v3737_v55  ;;  %4481 = vmatmul.bf16.gmra.mxu1 %v3738_v1 }
 0x4d0   : > { %v3703_v52 = vmax.f32 %v3554_v7, 0.0  ;;  %v3704_v40 = vmax.f32 %v3583_v35, 0.0 }
 0x4d2   : > { %v3735_v63 = vpack.c.bf16 %v3703_v52, %v3695_v24  ;;  %v3736_v10 = vpack.c.bf16 %v3704_v40, %v3696_v48 }
 0x4d4   : > { %4394 = vmatmul.bf16.gmra.mxu2 %v3735_v63  ;;  %4423 = vmatmul.bf16.gmra.mxu3 %v3736_v10 }
 0x4dc   : > { %v4322_v54 = vpop.f32.mrf.mxu0  ;;  %v4351_v14 = vpop.f32.mrf.mxu1 }
 0x4e4   : > { %v4324_v21 = vpop.f32.mrf.mxu0  ;;  %v4353_v27 = vpop.f32.mrf.mxu1 }
 0x4e7   : > { %v4264_v30 = vpop.f32.mrf.mxu2  ;;  %v4293_v23 = vpop.f32.mrf.mxu3 }
 0x4e8   : > { %v4265_v46 = vadd.f32 %v8154_v20, %v4264_v30 }
 0x4ea   : > { %v4294_v36 = vadd.f32 %v4293_v23, %v4265_v46 }
 0x4ec   : > { %v4323_v0 = vadd.f32 %v4322_v54, %v4294_v36  ;;  %v4327_v41 = vpop.f32.mrf.mxu0  ;;  %v4356_v19 = vpop.f32.mrf.mxu1 }
 0x4ee   : > { %v4352_v53 = vadd.f32 %v4351_v14, %v4323_v0 }
 0x4ef   : > { %v4266_v34 = vpop.f32.mrf.mxu2  ;;  %v4295_v32 = vpop.f32.mrf.mxu3 }
 0x4f0   : > { %v4267_v42 = vadd.f32 %v8154_v20, %v4266_v34 }
 0x4f2   : > { %v4296_v55 = vadd.f32 %v4295_v32, %v4267_v42 }
 0x4f4   : > { %v4329_v56 = vpop.f32.mrf.mxu0  ;;  %v8157_v12 = vpop.f32.mrf.mxu1  ;;  %v4325_v35 = vadd.f32 %v4324_v21, %v4296_v55 }
 0x4f6   : > { %v4354_v52 = vadd.f32 %v4353_v27, %v4325_v35 }
 0x4f7   : > { %v4269_v33 = vpop.f32.mrf.mxu2  ;;  %v4298_v17 = vpop.f32.mrf.mxu3 }
 0x4f8   : > { %v4270_v59 = vadd.f32 %v8154_v20, %v4269_v33 }
 0x4fa   : > { %v4299_v44 = vadd.f32 %v4298_v17, %v4270_v59 }
 0x4fc   : > { %v4328_v13 = vadd.f32 %v4327_v41, %v4299_v44  ;;  %v4332_v16 = vpop.f32.mrf.mxu0  ;;  %v4361_v51 = vpop.f32.mrf.mxu1 }
 0x4fe   : > { %v4357_v29 = vadd.f32 %v4356_v19, %v4328_v13 }
 0x4ff   : > { %v4271_v11 = vpop.f32.mrf.mxu2  ;;  %v4300_v26 = vpop.f32.mrf.mxu3 }
 0x500   : > { %v4272_v14 = vadd.f32 %v8154_v20, %v4271_v11 }
 0x502   : > { %v4301_v0 = vadd.f32 %v4300_v26, %v4272_v14 }
 0x504   : > { %v8160_v47 = vpop.f32.mrf.mxu0  ;;  %v8162_v5 = vpop.f32.mrf.mxu1  ;;  %v4330_v34 = vadd.f32 %v4329_v56, %v4301_v0 }
 0x506   : > { %v4359_v44 = vadd.f32 %v8157_v12, %v4330_v34 }
 0x507   : > { %v4274_v3 = vpop.f32.mrf.mxu2  ;;  %v4303_v28 = vpop.f32.mrf.mxu3 }
 0x508   : > { %v4275_v43 = vadd.f32 %v8154_v20, %v4274_v3 }
 0x50a   : > { %v4304_v61 = vadd.f32 %v4303_v28, %v4275_v43 }
 0x50c   : > { %v4333_v50 = vadd.f32 %v4332_v16, %v4304_v61  ;;  %v4337_v9 = vpop.f32.mrf.mxu0  ;;  %v4366_v8 = vpop.f32.mrf.mxu1 }
 0x50e   : > { %v8165_v58 = vadd.f32 %v4361_v51, %v4333_v50 }
 0x50f   : > { %v4276_v6 = vpop.f32.mrf.mxu2  ;;  %v4305_v2 = vpop.f32.mrf.mxu3 }
 0x510   : > { %v4277_v11 = vadd.f32 %v8154_v20, %v4276_v6 }
 0x512   : > { %v4306_v61 = vadd.f32 %v4305_v2, %v4277_v11 }
 0x514   : > { %v8167_v45 = vpop.f32.mrf.mxu0  ;;  %v8169_v49 = vpop.f32.mrf.mxu1 }
 0x517   : > { %v4279_v60 = vpop.f32.mrf.mxu2  ;;  %v4308_v22 = vpop.f32.mrf.mxu3 }
 0x518   : > { %v4280_v18 = vadd.f32 %v8154_v20, %v4279_v60 }
 0x51a   : > { %v4309_v25 = vadd.f32 %v4308_v22, %v4280_v18  ;;  %v4335_v22 = vadd.f32 %v8160_v47, %v4306_v61 }
 0x51c   : > { %v4338_v4 = vadd.f32 %v4337_v9, %v4309_v25  ;;  %v4438_v39 = vpop.f32.mrf.mxu0  ;;  %v4467_v31 = vpop.f32.mrf.mxu1  ;;  %v4364_v6 = vadd.f32 %v8162_v5, %v4335_v22 }
 0x51e   : > { %v8172_v62 = vadd.f32 %v4366_v8, %v4338_v4 }
 0x51f   : > { %v4281_v37 = vpop.f32.mrf.mxu2  ;;  %v8174_v38 = vpop.f32.mrf.mxu3 }
 0x520   : > { %v4282_v42 = vadd.f32 %v8154_v20, %v4281_v37 }
 0x524   : > { %v4440_v1 = vpop.f32.mrf.mxu0  ;;  %v4469_v7 = vpop.f32.mrf.mxu1 }
 0x527   : > { %v4380_v57 = vpop.f32.mrf.mxu2  ;;  %v4409_v15 = vpop.f32.mrf.mxu3 }
 0x528   : > { %v4381_v24 = vadd.f32 %v4380_v57, %v4352_v53 }
 0x52a   : > { %v4410_v48 = vadd.f32 %v4409_v15, %v4381_v24  ;;  %v4311_v15 = vadd.f32 %v8174_v38, %v4282_v42 }
 0x52c   : > { %v4443_v10 = vpop.f32.mrf.mxu0  ;;  %v4439_v30 = vadd.f32 %v4438_v39, %v4410_v48  ;;  %v4472_v23 = vpop.f32.mrf.mxu1  ;;  %v4340_v5 = vadd.f32 %v8167_v45, %v4311_v15 }
 0x52e   : > { %v4468_v41 = vadd.f32 %v4467_v31, %v4439_v30  ;;  %v4369_v20 = vadd.f32 %v8169_v49, %v4340_v5 }
 0x52f   : > { %v4382_v40 = vpop.f32.mrf.mxu2  ;;  %v4411_v63 = vpop.f32.mrf.mxu3 }
 0x530   : > { %v4383_v54 = vadd.f32 %v4382_v40, %v4354_v52 }
 0x532   : > { %v4412_v46 = vadd.f32 %v4411_v63, %v4383_v54 }
 0x534   : > { %v4441_v36 = vadd.f32 %v4440_v1, %v4412_v46  ;;  %v4445_v32 = vpop.f32.mrf.mxu0  ;;  %v4474_v17 = vpop.f32.mrf.mxu1 }
 0x536   : > { %v4470_v19 = vadd.f32 %v4469_v7, %v4441_v36 }
 0x537   : > { %v4385_v21 = vpop.f32.mrf.mxu2  ;;  %v4414_v27 = vpop.f32.mrf.mxu3 }
 0x538   : > { %v6208_v53 = vpack.c.bf16 %v4470_v19, %v4468_v41  ;;  %v4386_v33 = vadd.f32 %v4385_v21, %v4357_v29 }
 0x53a   : > { %6209 = vst [vmem:[%s8183_s17] sm:$0xff] %v6208_v53   ;;  %v4415_v59 = vadd.f32 %v4414_v27, %v4386_v33 }
 0x53c   : > { %v4444_v26 = vadd.f32 %v4443_v10, %v4415_v59  ;;  %v4448_v28 = vpop.f32.mrf.mxu0  ;;  %v4477_v56 = vpop.f32.mrf.mxu1 }
 0x53e   : > { %v4473_v50 = vadd.f32 %v4472_v23, %v4444_v26 }
 0x53f   : > { %v4387_v13 = vpop.f32.mrf.mxu2  ;;  %v4416_v16 = vpop.f32.mrf.mxu3 }
 0x540   : > { %v4388_v51 = vadd.f32 %v4387_v13, %v4359_v44 }
 0x542   : > { %v4417_v3 = vadd.f32 %v4416_v16, %v4388_v51 }
 0x544   : > { %v4446_v43 = vadd.f32 %v4445_v32, %v4417_v3  ;;  %v4450_v18 = vpop.f32.mrf.mxu0  ;;  %v4479_v2 = vpop.f32.mrf.mxu1 }
 0x546   : > { %v4475_v9 = vadd.f32 %v4474_v17, %v4446_v43 }
 0x547   : > { %v4390_v8 = vpop.f32.mrf.mxu2  ;;  %v4419_v29 = vpop.f32.mrf.mxu3 }
 0x548   : > { %v6213_v60 = vpack.c.bf16 %v4475_v9, %v4473_v50  ;;  %v4391_v12 = vadd.f32 %v4390_v8, %v8165_v58 }
 0x54a   : > { %6228 = vst [vmem:[%s8183_s17 + $0x8] sm:$0xff] %v6213_v60   ;;  %v4420_v25 = vadd.f32 %v4419_v29, %v4391_v12 }
 0x54c   : > { %v4449_v55 = vadd.f32 %v4448_v28, %v4420_v25  ;;  %v4453_v48 = vpop.f32.mrf.mxu0  ;;  %v4482_v40 = vpop.f32.mrf.mxu1 }
 0x54e   : > { %v4478_v47 = vadd.f32 %v4477_v56, %v4449_v55 }
 0x54f   : > { %v4392_v4 = vpop.f32.mrf.mxu2  ;;  %v4421_v39 = vpop.f32.mrf.mxu3 }
 0x550   : > { %v4393_v31 = vadd.f32 %v4392_v4, %v4364_v6 }
 0x552   : > { %v4422_v1 = vadd.f32 %v4421_v39, %v4393_v31 }
 0x554   : > { %v4451_v57 = vadd.f32 %v4450_v18, %v4422_v1  ;;  %v4455_v30 = vpop.f32.mrf.mxu0  ;;  %v4484_v46 = vpop.f32.mrf.mxu1 }
 0x556   : > { %v4480_v7 = vadd.f32 %v4479_v2, %v4451_v57 }
 0x557   : > { %v4395_v35 = vpop.f32.mrf.mxu2  ;;  %v4424_v58 = vpop.f32.mrf.mxu3 }
 0x558   : > { %v6218_v24 = vpack.c.bf16 %v4480_v7, %v4478_v47  ;;  %v4396_v52 = vadd.f32 %v4395_v35, %v8172_v62 }
 0x55a   : > { %6229 = vst [vmem:[%s8183_s17 + $0x10] sm:$0xff] %v6218_v24   ;;  %v4425_v63 = vadd.f32 %v4424_v58, %v4396_v52 }
 0x55c   : > { %v4454_v38 = vadd.f32 %v4453_v48, %v4425_v63 }
 0x55e   : > { %v4483_v36 = vadd.f32 %v4482_v40, %v4454_v38 }
 0x55f   : > { %v4397_v37 = vpop.f32.mrf.mxu2  ;;  %v4426_v54 = vpop.f32.mrf.mxu3 }
 0x560   : > { %v4398_v10 = vadd.f32 %v4397_v37, %v4369_v20 }
 0x562   : > { %v4427_v14 = vadd.f32 %v4426_v54, %v4398_v10 }
 0x564   : > { %v4456_v23 = vadd.f32 %v4455_v30, %v4427_v14 }
 0x566   : > { %v4485_v0 = vadd.f32 %v4484_v46, %v4456_v23 }
 0x568   : > { %v6223_v41 = vpack.c.bf16 %v4485_v0, %v4483_v36 }
 0x56a   : > { %6230 = vst [vmem:[%s8183_s17 + $0x18] sm:$0xff] %v6223_v41  }
 0x56b PF: > { %s36_s23 = sadd.s32 1, %s6853_s23   ;;  %s8294_s18 = smov %s6837_s19 }
 0x56c   : > { %p33_p2 = scmp.ge.s32.totalorder %s36_s23, 4   ;;  %s8295_s19 = smov %s6841_s20 }
 0x56d   : > { %s8296_s20 = smov %s7083_s30  ;;  %s8297_s21 = smov %s6849_s22 }
 0x56e   : > { %s8298_s22 = smov %s8300_s27  ;;  %35 = sbr.rel (!%p33_p2) target bundleno = 22 (0x16), region = 177 }
 0x573   :  { %4570 = vsyncpa [#allocation3], 1 }
 0x574   :  { %4572 = vsyncpa [#allocation3 + $0x1], 1 }
 0x575   :  { %4573 = vsyncpa [#allocation5], 1 }
 0x576   :  { %4575 = vsyncpa [#allocation5 + $0x1], 1 }
 0x577   :  { %4576 = vsyncpa [#allocation8], 1 }
 0x578   :  { %4577 = vsyncpa [#allocation11], 1 }
 0x579   :  { %4578 = vsyncpa [#allocation14], 1 }
 0x57a   :  { %4579 = vsyncpa [#allocation17], 1 }

</bundles_post_ra>
